<compile_context>
chip_gen: v7x
topology: tpu7x:2x2x1
jax: 0.10.0
libtpu: 0.0.40
codegen_flags: <defaults>
</compile_context>

<pallas_src>
import functools

import jax
import jax.numpy as jnp
from jax.experimental import pallas as pl
from jax.experimental.pallas import tpu as pltpu  # noqa: F401  (kept for parity with the TPU backend)


# ----------------------------------------------------------------------------
# helpers
# ----------------------------------------------------------------------------
def _layernorm(x, g, b, eps=1e-5):
    m = jnp.mean(x, axis=-1, keepdims=True)
    v = jnp.mean((x - m) ** 2, axis=-1, keepdims=True)
    return (x - m) * jax.lax.rsqrt(v + eps) * g + b


def _mm(a, b):
    return jnp.dot(a, b, preferred_element_type=jnp.float32)


# ----------------------------------------------------------------------------
# Fused forward kernel: everything in one VMEM-resident step (no grid)
# ----------------------------------------------------------------------------
def _spec2label_kernel(
    x_ref,        # (BS, Din)   flattened input
    add0_ref,     # (BS, C)     positional rows (Emb[b] per row) + input-proj bias
    neg_ref,      # (BS, BS)    additive block-diagonal batch mask (0 / -1e30)
    proj_w_ref,   # (Din, C)
    wstack_ref,   # (4, L, C, C)   [Wq*scale, Wk, Wv, Wout]
    vecc_ref,     # (9, L, 1, C)   [bq*scale, bk, bv, out_b, ln1_g, ln1_b, ffn_b2, ln2_g, ln2_b]
    w1_ref,       # (L, C, 4C)
    b1_ref,       # (L, 1, 4C)
    w2_ref,       # (L, 4C, C)
    fc1_w_ref,    # (C, 64)
    fc2_w_ref,    # (64, n_out)
    head_b_ref,   # (1, 64 + n_out)   [fc1_b | fc2_b]
    o_ref,        # (BS, n_out)
    *, n_heads,
):
    BS = x_ref.shape[0]
    C = proj_w_ref.shape[1]
    L = w1_ref.shape[0]
    Dh = C // n_heads
    F1 = fc1_w_ref.shape[1]

    # hoisted once: block-diagonal additive mask (rows of different batches -> -1e30)
    neg = neg_ref[...]

    # ---- input projection + (quirky) positional add + proj bias (pre-fused on host) ----
    cur = _mm(x_ref[...], proj_w_ref[...]) + add0_ref[...]          # (BS, C) f32

    # ---- encoder stack (static unrolled over layers) -----------------------------------
    for l in range(L):
        wq = wstack_ref[0, l]                                        # (C, C), scale pre-folded
        wk = wstack_ref[1, l]
        wv = wstack_ref[2, l]
        wo = wstack_ref[3, l]

        q = _mm(cur, wq) + vecc_ref[0, l]                            # (BS, C)
        k = _mm(cur, wk) + vecc_ref[1, l]
        v = _mm(cur, wv) + vecc_ref[2, l]

        attn = jnp.zeros((BS, C), jnp.float32)
        for h in range(n_heads):                                     # static, tiny (H=4)
            sl = slice(h * Dh, (h + 1) * Dh)
            # flat block-diagonal attention: one (BS,Dh)x(Dh,BS) score matmul per head,
            # mask added BEFORE the row-max so the softmax normalization is unchanged.
            s = jnp.einsum("id,jd->ij", q[:, sl], k[:, sl],
                           preferred_element_type=jnp.float32) + neg  # (BS, BS)
            s = s - jnp.max(s, axis=-1, keepdims=True)
            p = jnp.exp(s)
            p = p * pl.reciprocal(jnp.sum(p, axis=-1, keepdims=True), approx=False)
            ctx = _mm(p, v[:, sl])                                   # (BS, Dh)
            # fold this head straight into the output projection (row slice of Wout is
            # 8-sublane aligned -> no relayout)
            attn = attn + _mm(ctx, wo[sl, :])
        attn = attn + vecc_ref[3, l]

        # residual + norm1 (post-norm)
        y1 = _layernorm(cur + attn, vecc_ref[4, l], vecc_ref[5, l])

        # feed-forward (hidden kept at full 4C = 128 lane width)
        ff = jnp.maximum(_mm(y1, w1_ref[l]) + b1_ref[l], 0.0)
        ff = _mm(ff, w2_ref[l]) + vecc_ref[6, l]

        # residual + norm2
        cur = _layernorm(y1 + ff, vecc_ref[7, l], vecc_ref[8, l])

    # ---- head: relu -> fc1 -> relu -> (dropout=identity) -> fc2 -------------------------
    hb = head_b_ref[...]
    h = jnp.maximum(cur, 0.0)
    h = jnp.maximum(_mm(h, fc1_w_ref[...]) + hb[:, :F1], 0.0)
    o_ref[...] = _mm(h, fc2_w_ref[...]) + hb[:, F1:]


# ----------------------------------------------------------------------------
# Wrapper
# ----------------------------------------------------------------------------
def spec2label_forward(x, kp, *, n_heads):
    B, S, Din = x.shape
    # The original code's broadcast (B,S,C)+(S,B,C) requires B == S.
    assert B == S, "Spec2label's positional-embedding broadcast requires batch == seq"
    C = kp["proj_w_t"].shape[1]
    n_out = kp["fc2_w_t"].shape[1]
    BS = B * S

    out_bs = pl.pallas_call(
        functools.partial(_spec2label_kernel, n_heads=n_heads),
        out_shape=jax.ShapeDtypeStruct((BS, n_out), jnp.float32),
    )(
        x.reshape(BS, Din), kp["add0"], kp["neg_mask"], kp["proj_w_t"],
        kp["wstack"], kp["vec_c"], kp["w1"], kp["b1"], kp["w2"],
        kp["fc1_w_t"], kp["fc2_w_t"], kp["head_b"],
    )

    # Kernel rows are in (b*S + s) order; the module's permute(1,0,2).view(-1,C)
    # wants (s*B + b).  The head is row-wise so permuting the tiny output is exact.
    return out_bs.reshape(B, S, n_out).transpose(1, 0, 2).reshape(S * B, n_out)


# ----------------------------------------------------------------------------
# Host-side packing of canonical (PyTorch-layout) params into kernel operands
# ----------------------------------------------------------------------------
def prepare_kernel_params(params, batch, seq, n_heads):
    C = params["proj_w_t"].shape[1]
    Dh = C // n_heads
    scale = 1.0 / (Dh ** 0.5)
    B, S = batch, seq
    BS = B * S

    in_w = params["in_w_t"]          # (L, C, 3C)
    in_b = params["in_b"]            # (L, 1, 3C)
    wq = in_w[:, :, :C] * scale      # fold 1/sqrt(Dh) into Q weights/bias (free, host-side)
    wk = in_w[:, :, C:2 * C]
    wv = in_w[:, :, 2 * C:]
    bq = in_b[:, :, :C] * scale
    bk = in_b[:, :, C:2 * C]
    bv = in_b[:, :, 2 * C:]

    # positional quirk: flat row (b*S + s) receives Embedding[b]; fuse input-proj bias in
    add0 = jnp.repeat(params["pos_table"][:B], S, axis=0) + params["proj_b"]   # (BS, C)

    # additive block-diagonal batch mask (applied before the row-max inside the kernel)
    rb = jnp.arange(BS) // S
    neg_mask = jnp.where(rb[:, None] == rb[None, :], 0.0, -1e30).astype(jnp.float32)

    return {
        "add0": add0,
        "neg_mask": neg_mask,
        "proj_w_t": params["proj_w_t"],
        "wstack": jnp.stack([wq, wk, wv, params["out_w_t"]], axis=0),          # (4, L, C, C)
        "vec_c": jnp.stack([bq, bk, bv, params["out_b"],
                            params["ln1_g"], params["ln1_b"], params["b2"],
                            params["ln2_g"], params["ln2_b"]], axis=0),        # (9, L, 1, C)
        "w1": params["w1_t"], "b1": params["b1"], "w2": params["w2_t"],
        "fc1_w_t": params["fc1_w_t"], "fc2_w_t": params["fc2_w_t"],
        "head_b": jnp.concatenate([params["fc1_b"], params["fc2_b"]], axis=1),  # (1, 64+n_out)
    }


# ----------------------------------------------------------------------------
# Pure-JAX reference (PyTorch semantics) for self-validation
# ----------------------------------------------------------------------------
def _reference_forward(x, params, *, n_heads):
    B, S, _ = x.shape
    C = params["proj_w_t"].shape[1]
    L = params["in_w_t"].shape[0]
    Dh = C // n_heads

    def ln(z, g, b, eps=1e-5):
        m = z.mean(-1, keepdims=True)
        v = ((z - m) ** 2).mean(-1, keepdims=True)
        return (z - m) / jnp.sqrt(v + eps) * g + b

    y = x @ params["proj_w_t"] + params["proj_b"]
    y = y + params["pos_table"][:B][:, None, :]      # Emb[b] added to every s (the quirk)
    cur = y
    for l in range(L):
        qkv = cur @ params["in_w_t"][l] + params["in_b"][l]
        q, k, v = qkv[..., :C], qkv[..., C:2 * C], qkv[..., 2 * C:]
        q = q.reshape(B, S, n_heads, Dh)
        k = k.reshape(B, S, n_heads, Dh)
        v = v.reshape(B, S, n_heads, Dh)
        s = jnp.einsum("bihd,bjhd->bhij", q, k) / (Dh ** 0.5)
        p = jax.nn.softmax(s, axis=-1)
        ctx = jnp.einsum("bhij,bjhd->bihd", p, v).reshape(B, S, C)
        attn = ctx @ params["out_w_t"][l] + params["out_b"][l]
        y1 = ln(cur + attn, params["ln1_g"][l], params["ln1_b"][l])
        ff = jax.nn.relu(y1 @ params["w1_t"][l] + params["b1"][l])
        ff = ff @ params["w2_t"][l] + params["b2"][l]
        cur = ln(y1 + ff, params["ln2_g"][l], params["ln2_b"][l])
    src = jax.nn.relu(cur)
    flat = jnp.transpose(src, (1, 0, 2)).reshape(-1, C)
    h = jax.nn.relu(flat @ params["fc1_w_t"] + params["fc1_b"])
    return h @ params["fc2_w_t"] + params["fc2_b"]


# ----------------------------------------------------------------------------
# Deterministic parameter construction (synthetic weights, PyTorch shapes)
# ----------------------------------------------------------------------------
def make_params(key, n_encoder_inputs, n_outputs, channels, n_layers):
    C = channels
    F = 4 * C

    def nrm(k, shape, scale=0.05):
        return scale * jax.random.normal(k, shape, jnp.float32)

    keys = iter(jax.random.split(key, 16 + 12 * n_layers))

    params = {
        # nn.Linear stores (out, in); kernels consume the transpose (in, out)
        "proj_w_t": nrm(next(keys), (C, n_encoder_inputs)).T,
        "proj_b": nrm(next(keys), (1, C)),
        # Embedding(128, C); only rows [0, B) are ever used by the forward pass
        "pos_table": nrm(next(keys), (128, C)),
        "fc1_w_t": nrm(next(keys), (64, C)).T,
        "fc1_b": nrm(next(keys), (1, 64)),
        "fc2_w_t": nrm(next(keys), (n_outputs, 64)).T,
        "fc2_b": nrm(next(keys), (1, n_outputs)),
    }

    names = ("in_w_t", "in_b", "out_w_t", "out_b", "ln1_g", "ln1_b",
             "w1_t", "b1", "w2_t", "b2", "ln2_g", "ln2_b")
    stk = {n: [] for n in names}
    for _ in range(n_layers):
        stk["in_w_t"].append(nrm(next(keys), (3 * C, C)).T)
        stk["in_b"].append(nrm(next(keys), (1, 3 * C)))
        stk["out_w_t"].append(nrm(next(keys), (C, C)).T)
        stk["out_b"].append(nrm(next(keys), (1, C)))
        stk["ln1_g"].append(jnp.ones((1, C), jnp.float32))
        stk["ln1_b"].append(jnp.zeros((1, C), jnp.float32))
        stk["w1_t"].append(nrm(next(keys), (F, C)).T)
        stk["b1"].append(nrm(next(keys), (1, F)))
        stk["w2_t"].append(nrm(next(keys), (C, F)).T)
        stk["b2"].append(nrm(next(keys), (1, C)))
        stk["ln2_g"].append(jnp.ones((1, C), jnp.float32))
        stk["ln2_b"].append(jnp.zeros((1, C), jnp.float32))
    for n in names:
        params[n] = jnp.stack(stk[n], axis=0)     # stacked (L, ...) for static indexing
    return params


if __name__ == "__main__":
    # Small config consistent with the module: channels % n_heads == 0,
    # dim_feedforward = 4*channels, fc1 hidden fixed at 64.
    n_encoder_inputs = 16
    n_outputs = 4
    channels = 32
    n_heads = 4
    n_layers = 2
    batch = 8
    seq = 8          # must equal batch (original broadcast constraint)

    key = jax.random.PRNGKey(0)
    pkey, xkey = jax.random.split(key)

    params = make_params(pkey, n_encoder_inputs, n_outputs, channels, n_layers)
    kp = prepare_kernel_params(params, batch, seq, n_heads)

    x = jax.random.normal(xkey, (batch, seq, n_encoder_inputs), jnp.float32)

    out = spec2label_forward(x, kp, n_heads=n_heads)
    out = jax.block_until_ready(out)

    assert out.shape == (seq * batch, n_outputs), out.shape
    assert bool(jnp.all(jnp.isfinite(out)))

    ref = _reference_forward(x, params, n_heads=n_heads)
    assert jnp.allclose(out, ref, rtol=1e-2, atol=1e-2), float(jnp.max(jnp.abs(out - ref)))
    print("KERNEL_OK")
</pallas_src>

<mosaic_0001>
module attributes {stable_mosaic.version = 11 : i64} {
  func.func @_spec2label_kernel(%arg0: memref<64x16xf32, #tpu.memory_space<vmem>>, %arg1: memref<64x32xf32, #tpu.memory_space<vmem>>, %arg2: memref<64x64xf32, #tpu.memory_space<vmem>>, %arg3: memref<16x32xf32, #tpu.memory_space<vmem>>, %arg4: memref<4x2x32x32xf32, #tpu.memory_space<vmem>>, %arg5: memref<9x2x1x32xf32, #tpu.memory_space<vmem>>, %arg6: memref<2x32x128xf32, #tpu.memory_space<vmem>>, %arg7: memref<2x1x128xf32, #tpu.memory_space<vmem>>, %arg8: memref<2x128x32xf32, #tpu.memory_space<vmem>>, %arg9: memref<32x64xf32, #tpu.memory_space<vmem>>, %arg10: memref<64x4xf32, #tpu.memory_space<vmem>>, %arg11: memref<1x68xf32, #tpu.memory_space<vmem>>, %arg12: memref<64x4xf32, #tpu.memory_space<vmem>>) attributes {dimension_semantics = [], scalar_prefetch = 0 : i64, scratch_operands = 0 : i64, tpu.core_type = #tpu.core_type<tc>} {
    %c0 = arith.constant 0 : index
    %c0_0 = arith.constant 0 : index
    %0 = vector.load %arg2[%c0, %c0_0] : memref<64x64xf32, #tpu.memory_space<vmem>>, vector<64x64xf32>
    %c0_1 = arith.constant 0 : index
    %c0_2 = arith.constant 0 : index
    %1 = vector.load %arg0[%c0_1, %c0_2] : memref<64x16xf32, #tpu.memory_space<vmem>>, vector<64x16xf32>
    %c0_3 = arith.constant 0 : index
    %c0_4 = arith.constant 0 : index
    %2 = vector.load %arg3[%c0_3, %c0_4] : memref<16x32xf32, #tpu.memory_space<vmem>>, vector<16x32xf32>
    %cst = arith.constant dense<0.000000e+00> : vector<64x32xf32>
    %3 = tpu.matmul %1, %2, %cst {dimension_numbers = #tpu.dot_dimension_numbers<[1], [0], [0], [1], [0, 0, 1, 1], [], []>} : vector<64x16xf32>, vector<16x32xf32>, vector<64x32xf32> -> vector<64x32xf32>
    %c0_5 = arith.constant 0 : index
    %c0_6 = arith.constant 0 : index
    %4 = vector.load %arg1[%c0_5, %c0_6] : memref<64x32xf32, #tpu.memory_space<vmem>>, vector<64x32xf32>
    %5 = arith.addf %3, %4 : vector<64x32xf32>
    %c0_7 = arith.constant 0 : index
    %c0_8 = arith.constant 0 : index
    %c0_9 = arith.constant 0 : index
    %c0_10 = arith.constant 0 : index
    %6 = vector.load %arg4[%c0_7, %c0_8, %c0_9, %c0_10] : memref<4x2x32x32xf32, #tpu.memory_space<vmem>>, vector<1x1x32x32xf32>
    %7 = vector.shape_cast %6 : vector<1x1x32x32xf32> to vector<32x32xf32>
    %c1 = arith.constant 1 : index
    %c0_11 = arith.constant 0 : index
    %c0_12 = arith.constant 0 : index
    %c0_13 = arith.constant 0 : index
    %8 = vector.load %arg4[%c1, %c0_11, %c0_12, %c0_13] : memref<4x2x32x32xf32, #tpu.memory_space<vmem>>, vector<1x1x32x32xf32>
    %9 = vector.shape_cast %8 : vector<1x1x32x32xf32> to vector<32x32xf32>
    %c2 = arith.constant 2 : index
    %c0_14 = arith.constant 0 : index
    %c0_15 = arith.constant 0 : index
    %c0_16 = arith.constant 0 : index
    %10 = vector.load %arg4[%c2, %c0_14, %c0_15, %c0_16] : memref<4x2x32x32xf32, #tpu.memory_space<vmem>>, vector<1x1x32x32xf32>
    %11 = vector.shape_cast %10 : vector<1x1x32x32xf32> to vector<32x32xf32>
    %c3 = arith.constant 3 : index
    %c0_17 = arith.constant 0 : index
    %c0_18 = arith.constant 0 : index
    %c0_19 = arith.constant 0 : index
    %12 = vector.load %arg4[%c3, %c0_17, %c0_18, %c0_19] : memref<4x2x32x32xf32, #tpu.memory_space<vmem>>, vector<1x1x32x32xf32>
    %13 = vector.shape_cast %12 : vector<1x1x32x32xf32> to vector<32x32xf32>
    %cst_20 = arith.constant dense<0.000000e+00> : vector<64x32xf32>
    %14 = tpu.matmul %5, %7, %cst_20 {dimension_numbers = #tpu.dot_dimension_numbers<[1], [0], [0], [1], [0, 0, 1, 1], [], []>} : vector<64x32xf32>, vector<32x32xf32>, vector<64x32xf32> -> vector<64x32xf32>
    %c0_21 = arith.constant 0 : index
    %c0_22 = arith.constant 0 : index
    %c0_23 = arith.constant 0 : index
    %c0_24 = arith.constant 0 : index
    %15 = vector.load %arg5[%c0_21, %c0_22, %c0_23, %c0_24] : memref<9x2x1x32xf32, #tpu.memory_space<vmem>>, vector<1x1x1x32xf32>
    %16 = vector.shape_cast %15 : vector<1x1x1x32xf32> to vector<1x32xf32>
    %17 = vector.broadcast %16 : vector<1x32xf32> to vector<64x32xf32>
    %18 = arith.addf %14, %17 : vector<64x32xf32>
    %cst_25 = arith.constant dense<0.000000e+00> : vector<64x32xf32>
    %19 = tpu.matmul %5, %9, %cst_25 {dimension_numbers = #tpu.dot_dimension_numbers<[1], [0], [0], [1], [0, 0, 1, 1], [], []>} : vector<64x32xf32>, vector<32x32xf32>, vector<64x32xf32> -> vector<64x32xf32>
    %c1_26 = arith.constant 1 : index
    %c0_27 = arith.constant 0 : index
    %c0_28 = arith.constant 0 : index
    %c0_29 = arith.constant 0 : index
    %20 = vector.load %arg5[%c1_26, %c0_27, %c0_28, %c0_29] : memref<9x2x1x32xf32, #tpu.memory_space<vmem>>, vector<1x1x1x32xf32>
    %21 = vector.shape_cast %20 : vector<1x1x1x32xf32> to vector<1x32xf32>
    %22 = vector.broadcast %21 : vector<1x32xf32> to vector<64x32xf32>
    %23 = arith.addf %19, %22 : vector<64x32xf32>
    %cst_30 = arith.constant dense<0.000000e+00> : vector<64x32xf32>
    %24 = tpu.matmul %5, %11, %cst_30 {dimension_numbers = #tpu.dot_dimension_numbers<[1], [0], [0], [1], [0, 0, 1, 1], [], []>} : vector<64x32xf32>, vector<32x32xf32>, vector<64x32xf32> -> vector<64x32xf32>
    %c2_31 = arith.constant 2 : index
    %c0_32 = arith.constant 0 : index
    %c0_33 = arith.constant 0 : index
    %c0_34 = arith.constant 0 : index
    %25 = vector.load %arg5[%c2_31, %c0_32, %c0_33, %c0_34] : memref<9x2x1x32xf32, #tpu.memory_space<vmem>>, vector<1x1x1x32xf32>
    %26 = vector.shape_cast %25 : vector<1x1x1x32xf32> to vector<1x32xf32>
    %27 = vector.broadcast %26 : vector<1x32xf32> to vector<64x32xf32>
    %28 = arith.addf %24, %27 : vector<64x32xf32>
    %cst_35 = arith.constant 0.000000e+00 : f32
    %29 = vector.broadcast %cst_35 : f32 to vector<64x32xf32>
    %30 = vector.extract_strided_slice %18 {offsets = [0, 0], sizes = [64, 8], strides = [1, 1]} : vector<64x32xf32> to vector<64x8xf32>
    %31 = vector.extract_strided_slice %23 {offsets = [0, 0], sizes = [64, 8], strides = [1, 1]} : vector<64x32xf32> to vector<64x8xf32>
    "tpu.trace_start"() <{level = 10 : i32, message = "id,jd->ij"}> : () -> ()
    %cst_36 = arith.constant dense<0.000000e+00> : vector<64x64xf32>
    %32 = tpu.matmul %30, %31, %cst_36 {dimension_numbers = #tpu.dot_dimension_numbers<[1], [1], [0], [0], [0, 0, 1, 0], [], []>} : vector<64x8xf32>, vector<64x8xf32>, vector<64x64xf32> -> vector<64x64xf32>
    "tpu.trace_stop"() : () -> ()
    %33 = arith.addf %32, %0 : vector<64x64xf32>
    %cst_37 = arith.constant dense<0xFF800000> : vector<64xf32>
    %34 = vector.multi_reduction <maximumf>, %33, %cst_37 [1] : vector<64x64xf32> to vector<64xf32>
    %35 = vector.shape_cast %34 : vector<64xf32> to vector<64x1xf32>
    %36 = vector.broadcast %35 : vector<64x1xf32> to vector<64x64xf32>
    %37 = arith.subf %33, %36 : vector<64x64xf32>
    %38 = math.exp %37 : vector<64x64xf32>
    %cst_38 = arith.constant dense<0.000000e+00> : vector<64xf32>
    %39 = vector.multi_reduction <add>, %38, %cst_38 [1] : vector<64x64xf32> to vector<64xf32>
    %40 = vector.shape_cast %39 : vector<64xf32> to vector<64x1xf32>
    %41 = tpu.reciprocal %40 : vector<64x1xf32> -> vector<64x1xf32>
    %42 = vector.broadcast %41 : vector<64x1xf32> to vector<64x64xf32>
    %43 = arith.mulf %38, %42 : vector<64x64xf32>
    %44 = vector.extract_strided_slice %28 {offsets = [0, 0], sizes = [64, 8], strides = [1, 1]} : vector<64x32xf32> to vector<64x8xf32>
    %cst_39 = arith.constant dense<0.000000e+00> : vector<64x8xf32>
    %45 = tpu.matmul %43, %44, %cst_39 {dimension_numbers = #tpu.dot_dimension_numbers<[1], [0], [0], [1], [0, 0, 1, 1], [], []>} : vector<64x64xf32>, vector<64x8xf32>, vector<64x8xf32> -> vector<64x8xf32>
    %46 = vector.extract_strided_slice %13 {offsets = [0, 0], sizes = [8, 32], strides = [1, 1]} : vector<32x32xf32> to vector<8x32xf32>
    %cst_40 = arith.constant dense<0.000000e+00> : vector<64x32xf32>
    %47 = tpu.matmul %45, %46, %cst_40 {dimension_numbers = #tpu.dot_dimension_numbers<[1], [0], [0], [1], [0, 0, 1, 1], [], []>} : vector<64x8xf32>, vector<8x32xf32>, vector<64x32xf32> -> vector<64x32xf32>
    %48 = arith.addf %29, %47 : vector<64x32xf32>
    %49 = vector.extract_strided_slice %18 {offsets = [0, 8], sizes = [64, 8], strides = [1, 1]} : vector<64x32xf32> to vector<64x8xf32>
    %50 = vector.extract_strided_slice %23 {offsets = [0, 8], sizes = [64, 8], strides = [1, 1]} : vector<64x32xf32> to vector<64x8xf32>
    "tpu.trace_start"() <{level = 10 : i32, message = "id,jd->ij"}> : () -> ()
    %cst_41 = arith.constant dense<0.000000e+00> : vector<64x64xf32>
    %51 = tpu.matmul %49, %50, %cst_41 {dimension_numbers = #tpu.dot_dimension_numbers<[1], [1], [0], [0], [0, 0, 1, 0], [], []>} : vector<64x8xf32>, vector<64x8xf32>, vector<64x64xf32> -> vector<64x64xf32>
    "tpu.trace_stop"() : () -> ()
    %52 = arith.addf %51, %0 : vector<64x64xf32>
    %cst_42 = arith.constant dense<0xFF800000> : vector<64xf32>
    %53 = vector.multi_reduction <maximumf>, %52, %cst_42 [1] : vector<64x64xf32> to vector<64xf32>
    %54 = vector.shape_cast %53 : vector<64xf32> to vector<64x1xf32>
    %55 = vector.broadcast %54 : vector<64x1xf32> to vector<64x64xf32>
    %56 = arith.subf %52, %55 : vector<64x64xf32>
    %57 = math.exp %56 : vector<64x64xf32>
    %cst_43 = arith.constant dense<0.000000e+00> : vector<64xf32>
    %58 = vector.multi_reduction <add>, %57, %cst_43 [1] : vector<64x64xf32> to vector<64xf32>
    %59 = vector.shape_cast %58 : vector<64xf32> to vector<64x1xf32>
    %60 = tpu.reciprocal %59 : vector<64x1xf32> -> vector<64x1xf32>
    %61 = vector.broadcast %60 : vector<64x1xf32> to vector<64x64xf32>
    %62 = arith.mulf %57, %61 : vector<64x64xf32>
    %63 = vector.extract_strided_slice %28 {offsets = [0, 8], sizes = [64, 8], strides = [1, 1]} : vector<64x32xf32> to vector<64x8xf32>
    %cst_44 = arith.constant dense<0.000000e+00> : vector<64x8xf32>
    %64 = tpu.matmul %62, %63, %cst_44 {dimension_numbers = #tpu.dot_dimension_numbers<[1], [0], [0], [1], [0, 0, 1, 1], [], []>} : vector<64x64xf32>, vector<64x8xf32>, vector<64x8xf32> -> vector<64x8xf32>
    %65 = vector.extract_strided_slice %13 {offsets = [8, 0], sizes = [8, 32], strides = [1, 1]} : vector<32x32xf32> to vector<8x32xf32>
    %cst_45 = arith.constant dense<0.000000e+00> : vector<64x32xf32>
    %66 = tpu.matmul %64, %65, %cst_45 {dimension_numbers = #tpu.dot_dimension_numbers<[1], [0], [0], [1], [0, 0, 1, 1], [], []>} : vector<64x8xf32>, vector<8x32xf32>, vector<64x32xf32> -> vector<64x32xf32>
    %67 = arith.addf %48, %66 : vector<64x32xf32>
    %68 = vector.extract_strided_slice %18 {offsets = [0, 16], sizes = [64, 8], strides = [1, 1]} : vector<64x32xf32> to vector<64x8xf32>
    %69 = vector.extract_strided_slice %23 {offsets = [0, 16], sizes = [64, 8], strides = [1, 1]} : vector<64x32xf32> to vector<64x8xf32>
    "tpu.trace_start"() <{level = 10 : i32, message = "id,jd->ij"}> : () -> ()
    %cst_46 = arith.constant dense<0.000000e+00> : vector<64x64xf32>
    %70 = tpu.matmul %68, %69, %cst_46 {dimension_numbers = #tpu.dot_dimension_numbers<[1], [1], [0], [0], [0, 0, 1, 0], [], []>} : vector<64x8xf32>, vector<64x8xf32>, vector<64x64xf32> -> vector<64x64xf32>
    "tpu.trace_stop"() : () -> ()
    %71 = arith.addf %70, %0 : vector<64x64xf32>
    %cst_47 = arith.constant dense<0xFF800000> : vector<64xf32>
    %72 = vector.multi_reduction <maximumf>, %71, %cst_47 [1] : vector<64x64xf32> to vector<64xf32>
    %73 = vector.shape_cast %72 : vector<64xf32> to vector<64x1xf32>
    %74 = vector.broadcast %73 : vector<64x1xf32> to vector<64x64xf32>
    %75 = arith.subf %71, %74 : vector<64x64xf32>
    %76 = math.exp %75 : vector<64x64xf32>
    %cst_48 = arith.constant dense<0.000000e+00> : vector<64xf32>
    %77 = vector.multi_reduction <add>, %76, %cst_48 [1] : vector<64x64xf32> to vector<64xf32>
    %78 = vector.shape_cast %77 : vector<64xf32> to vector<64x1xf32>
    %79 = tpu.reciprocal %78 : vector<64x1xf32> -> vector<64x1xf32>
    %80 = vector.broadcast %79 : vector<64x1xf32> to vector<64x64xf32>
    %81 = arith.mulf %76, %80 : vector<64x64xf32>
    %82 = vector.extract_strided_slice %28 {offsets = [0, 16], sizes = [64, 8], strides = [1, 1]} : vector<64x32xf32> to vector<64x8xf32>
    %cst_49 = arith.constant dense<0.000000e+00> : vector<64x8xf32>
    %83 = tpu.matmul %81, %82, %cst_49 {dimension_numbers = #tpu.dot_dimension_numbers<[1], [0], [0], [1], [0, 0, 1, 1], [], []>} : vector<64x64xf32>, vector<64x8xf32>, vector<64x8xf32> -> vector<64x8xf32>
    %84 = vector.extract_strided_slice %13 {offsets = [16, 0], sizes = [8, 32], strides = [1, 1]} : vector<32x32xf32> to vector<8x32xf32>
    %cst_50 = arith.constant dense<0.000000e+00> : vector<64x32xf32>
    %85 = tpu.matmul %83, %84, %cst_50 {dimension_numbers = #tpu.dot_dimension_numbers<[1], [0], [0], [1], [0, 0, 1, 1], [], []>} : vector<64x8xf32>, vector<8x32xf32>, vector<64x32xf32> -> vector<64x32xf32>
    %86 = arith.addf %67, %85 : vector<64x32xf32>
    %87 = vector.extract_strided_slice %18 {offsets = [0, 24], sizes = [64, 8], strides = [1, 1]} : vector<64x32xf32> to vector<64x8xf32>
    %88 = vector.extract_strided_slice %23 {offsets = [0, 24], sizes = [64, 8], strides = [1, 1]} : vector<64x32xf32> to vector<64x8xf32>
    "tpu.trace_start"() <{level = 10 : i32, message = "id,jd->ij"}> : () -> ()
    %cst_51 = arith.constant dense<0.000000e+00> : vector<64x64xf32>
    %89 = tpu.matmul %87, %88, %cst_51 {dimension_numbers = #tpu.dot_dimension_numbers<[1], [1], [0], [0], [0, 0, 1, 0], [], []>} : vector<64x8xf32>, vector<64x8xf32>, vector<64x64xf32> -> vector<64x64xf32>
    "tpu.trace_stop"() : () -> ()
    %90 = arith.addf %89, %0 : vector<64x64xf32>
    %cst_52 = arith.constant dense<0xFF800000> : vector<64xf32>
    %91 = vector.multi_reduction <maximumf>, %90, %cst_52 [1] : vector<64x64xf32> to vector<64xf32>
    %92 = vector.shape_cast %91 : vector<64xf32> to vector<64x1xf32>
    %93 = vector.broadcast %92 : vector<64x1xf32> to vector<64x64xf32>
    %94 = arith.subf %90, %93 : vector<64x64xf32>
    %95 = math.exp %94 : vector<64x64xf32>
    %cst_53 = arith.constant dense<0.000000e+00> : vector<64xf32>
    %96 = vector.multi_reduction <add>, %95, %cst_53 [1] : vector<64x64xf32> to vector<64xf32>
    %97 = vector.shape_cast %96 : vector<64xf32> to vector<64x1xf32>
    %98 = tpu.reciprocal %97 : vector<64x1xf32> -> vector<64x1xf32>
    %99 = vector.broadcast %98 : vector<64x1xf32> to vector<64x64xf32>
    %100 = arith.mulf %95, %99 : vector<64x64xf32>
    %101 = vector.extract_strided_slice %28 {offsets = [0, 24], sizes = [64, 8], strides = [1, 1]} : vector<64x32xf32> to vector<64x8xf32>
    %cst_54 = arith.constant dense<0.000000e+00> : vector<64x8xf32>
    %102 = tpu.matmul %100, %101, %cst_54 {dimension_numbers = #tpu.dot_dimension_numbers<[1], [0], [0], [1], [0, 0, 1, 1], [], []>} : vector<64x64xf32>, vector<64x8xf32>, vector<64x8xf32> -> vector<64x8xf32>
    %103 = vector.extract_strided_slice %13 {offsets = [24, 0], sizes = [8, 32], strides = [1, 1]} : vector<32x32xf32> to vector<8x32xf32>
    %cst_55 = arith.constant dense<0.000000e+00> : vector<64x32xf32>
    %104 = tpu.matmul %102, %103, %cst_55 {dimension_numbers = #tpu.dot_dimension_numbers<[1], [0], [0], [1], [0, 0, 1, 1], [], []>} : vector<64x8xf32>, vector<8x32xf32>, vector<64x32xf32> -> vector<64x32xf32>
    %105 = arith.addf %86, %104 : vector<64x32xf32>
    %c3_56 = arith.constant 3 : index
    %c0_57 = arith.constant 0 : index
    %c0_58 = arith.constant 0 : index
    %c0_59 = arith.constant 0 : index
    %106 = vector.load %arg5[%c3_56, %c0_57, %c0_58, %c0_59] : memref<9x2x1x32xf32, #tpu.memory_space<vmem>>, vector<1x1x1x32xf32>
    %107 = vector.shape_cast %106 : vector<1x1x1x32xf32> to vector<1x32xf32>
    %108 = vector.broadcast %107 : vector<1x32xf32> to vector<64x32xf32>
    %109 = arith.addf %105, %108 : vector<64x32xf32>
    %110 = arith.addf %5, %109 : vector<64x32xf32>
    %c4 = arith.constant 4 : index
    %c0_60 = arith.constant 0 : index
    %c0_61 = arith.constant 0 : index
    %c0_62 = arith.constant 0 : index
    %111 = vector.load %arg5[%c4, %c0_60, %c0_61, %c0_62] : memref<9x2x1x32xf32, #tpu.memory_space<vmem>>, vector<1x1x1x32xf32>
    %112 = vector.shape_cast %111 : vector<1x1x1x32xf32> to vector<1x32xf32>
    %c5 = arith.constant 5 : index
    %c0_63 = arith.constant 0 : index
    %c0_64 = arith.constant 0 : index
    %c0_65 = arith.constant 0 : index
    %113 = vector.load %arg5[%c5, %c0_63, %c0_64, %c0_65] : memref<9x2x1x32xf32, #tpu.memory_space<vmem>>, vector<1x1x1x32xf32>
    %114 = vector.shape_cast %113 : vector<1x1x1x32xf32> to vector<1x32xf32>
    %cst_66 = arith.constant dense<0.000000e+00> : vector<64xf32>
    %115 = vector.multi_reduction <add>, %110, %cst_66 [1] : vector<64x32xf32> to vector<64xf32>
    %116 = vector.shape_cast %115 : vector<64xf32> to vector<64x1xf32>
    %cst_67 = arith.constant 3.200000e+01 : f32
    %117 = vector.broadcast %cst_67 : f32 to vector<64x1xf32>
    %118 = arith.divf %116, %117 : vector<64x1xf32>
    %119 = vector.broadcast %118 : vector<64x1xf32> to vector<64x32xf32>
    %120 = arith.subf %110, %119 : vector<64x32xf32>
    %121 = arith.mulf %120, %120 : vector<64x32xf32>
    %cst_68 = arith.constant dense<0.000000e+00> : vector<64xf32>
    %122 = vector.multi_reduction <add>, %121, %cst_68 [1] : vector<64x32xf32> to vector<64xf32>
    %123 = vector.shape_cast %122 : vector<64xf32> to vector<64x1xf32>
    %cst_69 = arith.constant 3.200000e+01 : f32
    %124 = vector.broadcast %cst_69 : f32 to vector<64x1xf32>
    %125 = arith.divf %123, %124 : vector<64x1xf32>
    %126 = vector.broadcast %118 : vector<64x1xf32> to vector<64x32xf32>
    %127 = arith.subf %110, %126 : vector<64x32xf32>
    %cst_70 = arith.constant 9.99999974E-6 : f32
    %128 = vector.broadcast %cst_70 : f32 to vector<64x1xf32>
    %129 = arith.addf %125, %128 : vector<64x1xf32>
    %130 = math.rsqrt %129 : vector<64x1xf32>
    %131 = vector.broadcast %130 : vector<64x1xf32> to vector<64x32xf32>
    %132 = arith.mulf %127, %131 : vector<64x32xf32>
    %133 = vector.broadcast %112 : vector<1x32xf32> to vector<64x32xf32>
    %134 = arith.mulf %132, %133 : vector<64x32xf32>
    %135 = vector.broadcast %114 : vector<1x32xf32> to vector<64x32xf32>
    %136 = arith.addf %134, %135 : vector<64x32xf32>
    %c0_71 = arith.constant 0 : index
    %c0_72 = arith.constant 0 : index
    %c0_73 = arith.constant 0 : index
    %137 = vector.load %arg6[%c0_71, %c0_72, %c0_73] : memref<2x32x128xf32, #tpu.memory_space<vmem>>, vector<1x32x128xf32>
    %138 = vector.shape_cast %137 : vector<1x32x128xf32> to vector<32x128xf32>
    %cst_74 = arith.constant dense<0.000000e+00> : vector<64x128xf32>
    %139 = tpu.matmul %136, %138, %cst_74 {dimension_numbers = #tpu.dot_dimension_numbers<[1], [0], [0], [1], [0, 0, 1, 1], [], []>} : vector<64x32xf32>, vector<32x128xf32>, vector<64x128xf32> -> vector<64x128xf32>
    %c0_75 = arith.constant 0 : index
    %c0_76 = arith.constant 0 : index
    %c0_77 = arith.constant 0 : index
    %140 = vector.load %arg7[%c0_75, %c0_76, %c0_77] : memref<2x1x128xf32, #tpu.memory_space<vmem>>, vector<1x1x128xf32>
    %141 = vector.shape_cast %140 : vector<1x1x128xf32> to vector<1x128xf32>
    %142 = vector.broadcast %141 : vector<1x128xf32> to vector<64x128xf32>
    %143 = arith.addf %139, %142 : vector<64x128xf32>
    %cst_78 = arith.constant 0.000000e+00 : f32
    %144 = vector.broadcast %cst_78 : f32 to vector<64x128xf32>
    %145 = arith.maximumf %143, %144 : vector<64x128xf32>
    %c0_79 = arith.constant 0 : index
    %c0_80 = arith.constant 0 : index
    %c0_81 = arith.constant 0 : index
    %146 = vector.load %arg8[%c0_79, %c0_80, %c0_81] : memref<2x128x32xf32, #tpu.memory_space<vmem>>, vector<1x128x32xf32>
    %147 = vector.shape_cast %146 : vector<1x128x32xf32> to vector<128x32xf32>
    %cst_82 = arith.constant dense<0.000000e+00> : vector<64x32xf32>
    %148 = tpu.matmul %145, %147, %cst_82 {dimension_numbers = #tpu.dot_dimension_numbers<[1], [0], [0], [1], [0, 0, 1, 1], [], []>} : vector<64x128xf32>, vector<128x32xf32>, vector<64x32xf32> -> vector<64x32xf32>
    %c6 = arith.constant 6 : index
    %c0_83 = arith.constant 0 : index
    %c0_84 = arith.constant 0 : index
    %c0_85 = arith.constant 0 : index
    %149 = vector.load %arg5[%c6, %c0_83, %c0_84, %c0_85] : memref<9x2x1x32xf32, #tpu.memory_space<vmem>>, vector<1x1x1x32xf32>
    %150 = vector.shape_cast %149 : vector<1x1x1x32xf32> to vector<1x32xf32>
    %151 = vector.broadcast %150 : vector<1x32xf32> to vector<64x32xf32>
    %152 = arith.addf %148, %151 : vector<64x32xf32>
    %153 = arith.addf %136, %152 : vector<64x32xf32>
    %c7 = arith.constant 7 : index
    %c0_86 = arith.constant 0 : index
    %c0_87 = arith.constant 0 : index
    %c0_88 = arith.constant 0 : index
    %154 = vector.load %arg5[%c7, %c0_86, %c0_87, %c0_88] : memref<9x2x1x32xf32, #tpu.memory_space<vmem>>, vector<1x1x1x32xf32>
    %155 = vector.shape_cast %154 : vector<1x1x1x32xf32> to vector<1x32xf32>
    %c8 = arith.constant 8 : index
    %c0_89 = arith.constant 0 : index
    %c0_90 = arith.constant 0 : index
    %c0_91 = arith.constant 0 : index
    %156 = vector.load %arg5[%c8, %c0_89, %c0_90, %c0_91] : memref<9x2x1x32xf32, #tpu.memory_space<vmem>>, vector<1x1x1x32xf32>
    %157 = vector.shape_cast %156 : vector<1x1x1x32xf32> to vector<1x32xf32>
    %cst_92 = arith.constant dense<0.000000e+00> : vector<64xf32>
    %158 = vector.multi_reduction <add>, %153, %cst_92 [1] : vector<64x32xf32> to vector<64xf32>
    %159 = vector.shape_cast %158 : vector<64xf32> to vector<64x1xf32>
    %cst_93 = arith.constant 3.200000e+01 : f32
    %160 = vector.broadcast %cst_93 : f32 to vector<64x1xf32>
    %161 = arith.divf %159, %160 : vector<64x1xf32>
    %162 = vector.broadcast %161 : vector<64x1xf32> to vector<64x32xf32>
    %163 = arith.subf %153, %162 : vector<64x32xf32>
    %164 = arith.mulf %163, %163 : vector<64x32xf32>
    %cst_94 = arith.constant dense<0.000000e+00> : vector<64xf32>
    %165 = vector.multi_reduction <add>, %164, %cst_94 [1] : vector<64x32xf32> to vector<64xf32>
    %166 = vector.shape_cast %165 : vector<64xf32> to vector<64x1xf32>
    %cst_95 = arith.constant 3.200000e+01 : f32
    %167 = vector.broadcast %cst_95 : f32 to vector<64x1xf32>
    %168 = arith.divf %166, %167 : vector<64x1xf32>
    %169 = vector.broadcast %161 : vector<64x1xf32> to vector<64x32xf32>
    %170 = arith.subf %153, %169 : vector<64x32xf32>
    %cst_96 = arith.constant 9.99999974E-6 : f32
    %171 = vector.broadcast %cst_96 : f32 to vector<64x1xf32>
    %172 = arith.addf %168, %171 : vector<64x1xf32>
    %173 = math.rsqrt %172 : vector<64x1xf32>
    %174 = vector.broadcast %173 : vector<64x1xf32> to vector<64x32xf32>
    %175 = arith.mulf %170, %174 : vector<64x32xf32>
    %176 = vector.broadcast %155 : vector<1x32xf32> to vector<64x32xf32>
    %177 = arith.mulf %175, %176 : vector<64x32xf32>
    %178 = vector.broadcast %157 : vector<1x32xf32> to vector<64x32xf32>
    %179 = arith.addf %177, %178 : vector<64x32xf32>
    %c0_97 = arith.constant 0 : index
    %c1_98 = arith.constant 1 : index
    %c0_99 = arith.constant 0 : index
    %c0_100 = arith.constant 0 : index
    %180 = vector.load %arg4[%c0_97, %c1_98, %c0_99, %c0_100] : memref<4x2x32x32xf32, #tpu.memory_space<vmem>>, vector<1x1x32x32xf32>
    %181 = vector.shape_cast %180 : vector<1x1x32x32xf32> to vector<32x32xf32>
    %c1_101 = arith.constant 1 : index
    %c1_102 = arith.constant 1 : index
    %c0_103 = arith.constant 0 : index
    %c0_104 = arith.constant 0 : index
    %182 = vector.load %arg4[%c1_101, %c1_102, %c0_103, %c0_104] : memref<4x2x32x32xf32, #tpu.memory_space<vmem>>, vector<1x1x32x32xf32>
    %183 = vector.shape_cast %182 : vector<1x1x32x32xf32> to vector<32x32xf32>
    %c2_105 = arith.constant 2 : index
    %c1_106 = arith.constant 1 : index
    %c0_107 = arith.constant 0 : index
    %c0_108 = arith.constant 0 : index
    %184 = vector.load %arg4[%c2_105, %c1_106, %c0_107, %c0_108] : memref<4x2x32x32xf32, #tpu.memory_space<vmem>>, vector<1x1x32x32xf32>
    %185 = vector.shape_cast %184 : vector<1x1x32x32xf32> to vector<32x32xf32>
    %c3_109 = arith.constant 3 : index
    %c1_110 = arith.constant 1 : index
    %c0_111 = arith.constant 0 : index
    %c0_112 = arith.constant 0 : index
    %186 = vector.load %arg4[%c3_109, %c1_110, %c0_111, %c0_112] : memref<4x2x32x32xf32, #tpu.memory_space<vmem>>, vector<1x1x32x32xf32>
    %187 = vector.shape_cast %186 : vector<1x1x32x32xf32> to vector<32x32xf32>
    %cst_113 = arith.constant dense<0.000000e+00> : vector<64x32xf32>
    %188 = tpu.matmul %179, %181, %cst_113 {dimension_numbers = #tpu.dot_dimension_numbers<[1], [0], [0], [1], [0, 0, 1, 1], [], []>} : vector<64x32xf32>, vector<32x32xf32>, vector<64x32xf32> -> vector<64x32xf32>
    %c0_114 = arith.constant 0 : index
    %c1_115 = arith.constant 1 : index
    %c0_116 = arith.constant 0 : index
    %c0_117 = arith.constant 0 : index
    %189 = vector.load %arg5[%c0_114, %c1_115, %c0_116, %c0_117] : memref<9x2x1x32xf32, #tpu.memory_space<vmem>>, vector<1x1x1x32xf32>
    %190 = vector.shape_cast %189 : vector<1x1x1x32xf32> to vector<1x32xf32>
    %191 = vector.broadcast %190 : vector<1x32xf32> to vector<64x32xf32>
    %192 = arith.addf %188, %191 : vector<64x32xf32>
    %cst_118 = arith.constant dense<0.000000e+00> : vector<64x32xf32>
    %193 = tpu.matmul %179, %183, %cst_118 {dimension_numbers = #tpu.dot_dimension_numbers<[1], [0], [0], [1], [0, 0, 1, 1], [], []>} : vector<64x32xf32>, vector<32x32xf32>, vector<64x32xf32> -> vector<64x32xf32>
    %c1_119 = arith.constant 1 : index
    %c1_120 = arith.constant 1 : index
    %c0_121 = arith.constant 0 : index
    %c0_122 = arith.constant 0 : index
    %194 = vector.load %arg5[%c1_119, %c1_120, %c0_121, %c0_122] : memref<9x2x1x32xf32, #tpu.memory_space<vmem>>, vector<1x1x1x32xf32>
    %195 = vector.shape_cast %194 : vector<1x1x1x32xf32> to vector<1x32xf32>
    %196 = vector.broadcast %195 : vector<1x32xf32> to vector<64x32xf32>
    %197 = arith.addf %193, %196 : vector<64x32xf32>
    %cst_123 = arith.constant dense<0.000000e+00> : vector<64x32xf32>
    %198 = tpu.matmul %179, %185, %cst_123 {dimension_numbers = #tpu.dot_dimension_numbers<[1], [0], [0], [1], [0, 0, 1, 1], [], []>} : vector<64x32xf32>, vector<32x32xf32>, vector<64x32xf32> -> vector<64x32xf32>
    %c2_124 = arith.constant 2 : index
    %c1_125 = arith.constant 1 : index
    %c0_126 = arith.constant 0 : index
    %c0_127 = arith.constant 0 : index
    %199 = vector.load %arg5[%c2_124, %c1_125, %c0_126, %c0_127] : memref<9x2x1x32xf32, #tpu.memory_space<vmem>>, vector<1x1x1x32xf32>
    %200 = vector.shape_cast %199 : vector<1x1x1x32xf32> to vector<1x32xf32>
    %201 = vector.broadcast %200 : vector<1x32xf32> to vector<64x32xf32>
    %202 = arith.addf %198, %201 : vector<64x32xf32>
    %cst_128 = arith.constant 0.000000e+00 : f32
    %203 = vector.broadcast %cst_128 : f32 to vector<64x32xf32>
    %204 = vector.extract_strided_slice %192 {offsets = [0, 0], sizes = [64, 8], strides = [1, 1]} : vector<64x32xf32> to vector<64x8xf32>
    %205 = vector.extract_strided_slice %197 {offsets = [0, 0], sizes = [64, 8], strides = [1, 1]} : vector<64x32xf32> to vector<64x8xf32>
    "tpu.trace_start"() <{level = 10 : i32, message = "id,jd->ij"}> : () -> ()
    %cst_129 = arith.constant dense<0.000000e+00> : vector<64x64xf32>
    %206 = tpu.matmul %204, %205, %cst_129 {dimension_numbers = #tpu.dot_dimension_numbers<[1], [1], [0], [0], [0, 0, 1, 0], [], []>} : vector<64x8xf32>, vector<64x8xf32>, vector<64x64xf32> -> vector<64x64xf32>
    "tpu.trace_stop"() : () -> ()
    %207 = arith.addf %206, %0 : vector<64x64xf32>
    %cst_130 = arith.constant dense<0xFF800000> : vector<64xf32>
    %208 = vector.multi_reduction <maximumf>, %207, %cst_130 [1] : vector<64x64xf32> to vector<64xf32>
    %209 = vector.shape_cast %208 : vector<64xf32> to vector<64x1xf32>
    %210 = vector.broadcast %209 : vector<64x1xf32> to vector<64x64xf32>
    %211 = arith.subf %207, %210 : vector<64x64xf32>
    %212 = math.exp %211 : vector<64x64xf32>
    %cst_131 = arith.constant dense<0.000000e+00> : vector<64xf32>
    %213 = vector.multi_reduction <add>, %212, %cst_131 [1] : vector<64x64xf32> to vector<64xf32>
    %214 = vector.shape_cast %213 : vector<64xf32> to vector<64x1xf32>
    %215 = tpu.reciprocal %214 : vector<64x1xf32> -> vector<64x1xf32>
    %216 = vector.broadcast %215 : vector<64x1xf32> to vector<64x64xf32>
    %217 = arith.mulf %212, %216 : vector<64x64xf32>
    %218 = vector.extract_strided_slice %202 {offsets = [0, 0], sizes = [64, 8], strides = [1, 1]} : vector<64x32xf32> to vector<64x8xf32>
    %cst_132 = arith.constant dense<0.000000e+00> : vector<64x8xf32>
    %219 = tpu.matmul %217, %218, %cst_132 {dimension_numbers = #tpu.dot_dimension_numbers<[1], [0], [0], [1], [0, 0, 1, 1], [], []>} : vector<64x64xf32>, vector<64x8xf32>, vector<64x8xf32> -> vector<64x8xf32>
    %220 = vector.extract_strided_slice %187 {offsets = [0, 0], sizes = [8, 32], strides = [1, 1]} : vector<32x32xf32> to vector<8x32xf32>
    %cst_133 = arith.constant dense<0.000000e+00> : vector<64x32xf32>
    %221 = tpu.matmul %219, %220, %cst_133 {dimension_numbers = #tpu.dot_dimension_numbers<[1], [0], [0], [1], [0, 0, 1, 1], [], []>} : vector<64x8xf32>, vector<8x32xf32>, vector<64x32xf32> -> vector<64x32xf32>
    %222 = arith.addf %203, %221 : vector<64x32xf32>
    %223 = vector.extract_strided_slice %192 {offsets = [0, 8], sizes = [64, 8], strides = [1, 1]} : vector<64x32xf32> to vector<64x8xf32>
    %224 = vector.extract_strided_slice %197 {offsets = [0, 8], sizes = [64, 8], strides = [1, 1]} : vector<64x32xf32> to vector<64x8xf32>
    "tpu.trace_start"() <{level = 10 : i32, message = "id,jd->ij"}> : () -> ()
    %cst_134 = arith.constant dense<0.000000e+00> : vector<64x64xf32>
    %225 = tpu.matmul %223, %224, %cst_134 {dimension_numbers = #tpu.dot_dimension_numbers<[1], [1], [0], [0], [0, 0, 1, 0], [], []>} : vector<64x8xf32>, vector<64x8xf32>, vector<64x64xf32> -> vector<64x64xf32>
    "tpu.trace_stop"() : () -> ()
    %226 = arith.addf %225, %0 : vector<64x64xf32>
    %cst_135 = arith.constant dense<0xFF800000> : vector<64xf32>
    %227 = vector.multi_reduction <maximumf>, %226, %cst_135 [1] : vector<64x64xf32> to vector<64xf32>
    %228 = vector.shape_cast %227 : vector<64xf32> to vector<64x1xf32>
    %229 = vector.broadcast %228 : vector<64x1xf32> to vector<64x64xf32>
    %230 = arith.subf %226, %229 : vector<64x64xf32>
    %231 = math.exp %230 : vector<64x64xf32>
    %cst_136 = arith.constant dense<0.000000e+00> : vector<64xf32>
    %232 = vector.multi_reduction <add>, %231, %cst_136 [1] : vector<64x64xf32> to vector<64xf32>
    %233 = vector.shape_cast %232 : vector<64xf32> to vector<64x1xf32>
    %234 = tpu.reciprocal %233 : vector<64x1xf32> -> vector<64x1xf32>
    %235 = vector.broadcast %234 : vector<64x1xf32> to vector<64x64xf32>
    %236 = arith.mulf %231, %235 : vector<64x64xf32>
    %237 = vector.extract_strided_slice %202 {offsets = [0, 8], sizes = [64, 8], strides = [1, 1]} : vector<64x32xf32> to vector<64x8xf32>
    %cst_137 = arith.constant dense<0.000000e+00> : vector<64x8xf32>
    %238 = tpu.matmul %236, %237, %cst_137 {dimension_numbers = #tpu.dot_dimension_numbers<[1], [0], [0], [1], [0, 0, 1, 1], [], []>} : vector<64x64xf32>, vector<64x8xf32>, vector<64x8xf32> -> vector<64x8xf32>
    %239 = vector.extract_strided_slice %187 {offsets = [8, 0], sizes = [8, 32], strides = [1, 1]} : vector<32x32xf32> to vector<8x32xf32>
    %cst_138 = arith.constant dense<0.000000e+00> : vector<64x32xf32>
    %240 = tpu.matmul %238, %239, %cst_138 {dimension_numbers = #tpu.dot_dimension_numbers<[1], [0], [0], [1], [0, 0, 1, 1], [], []>} : vector<64x8xf32>, vector<8x32xf32>, vector<64x32xf32> -> vector<64x32xf32>
    %241 = arith.addf %222, %240 : vector<64x32xf32>
    %242 = vector.extract_strided_slice %192 {offsets = [0, 16], sizes = [64, 8], strides = [1, 1]} : vector<64x32xf32> to vector<64x8xf32>
    %243 = vector.extract_strided_slice %197 {offsets = [0, 16], sizes = [64, 8], strides = [1, 1]} : vector<64x32xf32> to vector<64x8xf32>
    "tpu.trace_start"() <{level = 10 : i32, message = "id,jd->ij"}> : () -> ()
    %cst_139 = arith.constant dense<0.000000e+00> : vector<64x64xf32>
    %244 = tpu.matmul %242, %243, %cst_139 {dimension_numbers = #tpu.dot_dimension_numbers<[1], [1], [0], [0], [0, 0, 1, 0], [], []>} : vector<64x8xf32>, vector<64x8xf32>, vector<64x64xf32> -> vector<64x64xf32>
    "tpu.trace_stop"() : () -> ()
    %245 = arith.addf %244, %0 : vector<64x64xf32>
    %cst_140 = arith.constant dense<0xFF800000> : vector<64xf32>
    %246 = vector.multi_reduction <maximumf>, %245, %cst_140 [1] : vector<64x64xf32> to vector<64xf32>
    %247 = vector.shape_cast %246 : vector<64xf32> to vector<64x1xf32>
    %248 = vector.broadcast %247 : vector<64x1xf32> to vector<64x64xf32>
    %249 = arith.subf %245, %248 : vector<64x64xf32>
    %250 = math.exp %249 : vector<64x64xf32>
    %cst_141 = arith.constant dense<0.000000e+00> : vector<64xf32>
    %251 = vector.multi_reduction <add>, %250, %cst_141 [1] : vector<64x64xf32> to vector<64xf32>
    %252 = vector.shape_cast %251 : vector<64xf32> to vector<64x1xf32>
    %253 = tpu.reciprocal %252 : vector<64x1xf32> -> vector<64x1xf32>
    %254 = vector.broadcast %253 : vector<64x1xf32> to vector<64x64xf32>
    %255 = arith.mulf %250, %254 : vector<64x64xf32>
    %256 = vector.extract_strided_slice %202 {offsets = [0, 16], sizes = [64, 8], strides = [1, 1]} : vector<64x32xf32> to vector<64x8xf32>
    %cst_142 = arith.constant dense<0.000000e+00> : vector<64x8xf32>
    %257 = tpu.matmul %255, %256, %cst_142 {dimension_numbers = #tpu.dot_dimension_numbers<[1], [0], [0], [1], [0, 0, 1, 1], [], []>} : vector<64x64xf32>, vector<64x8xf32>, vector<64x8xf32> -> vector<64x8xf32>
    %258 = vector.extract_strided_slice %187 {offsets = [16, 0], sizes = [8, 32], strides = [1, 1]} : vector<32x32xf32> to vector<8x32xf32>
    %cst_143 = arith.constant dense<0.000000e+00> : vector<64x32xf32>
    %259 = tpu.matmul %257, %258, %cst_143 {dimension_numbers = #tpu.dot_dimension_numbers<[1], [0], [0], [1], [0, 0, 1, 1], [], []>} : vector<64x8xf32>, vector<8x32xf32>, vector<64x32xf32> -> vector<64x32xf32>
    %260 = arith.addf %241, %259 : vector<64x32xf32>
    %261 = vector.extract_strided_slice %192 {offsets = [0, 24], sizes = [64, 8], strides = [1, 1]} : vector<64x32xf32> to vector<64x8xf32>
    %262 = vector.extract_strided_slice %197 {offsets = [0, 24], sizes = [64, 8], strides = [1, 1]} : vector<64x32xf32> to vector<64x8xf32>
    "tpu.trace_start"() <{level = 10 : i32, message = "id,jd->ij"}> : () -> ()
    %cst_144 = arith.constant dense<0.000000e+00> : vector<64x64xf32>
    %263 = tpu.matmul %261, %262, %cst_144 {dimension_numbers = #tpu.dot_dimension_numbers<[1], [1], [0], [0], [0, 0, 1, 0], [], []>} : vector<64x8xf32>, vector<64x8xf32>, vector<64x64xf32> -> vector<64x64xf32>
    "tpu.trace_stop"() : () -> ()
    %264 = arith.addf %263, %0 : vector<64x64xf32>
    %cst_145 = arith.constant dense<0xFF800000> : vector<64xf32>
    %265 = vector.multi_reduction <maximumf>, %264, %cst_145 [1] : vector<64x64xf32> to vector<64xf32>
    %266 = vector.shape_cast %265 : vector<64xf32> to vector<64x1xf32>
    %267 = vector.broadcast %266 : vector<64x1xf32> to vector<64x64xf32>
    %268 = arith.subf %264, %267 : vector<64x64xf32>
    %269 = math.exp %268 : vector<64x64xf32>
    %cst_146 = arith.constant dense<0.000000e+00> : vector<64xf32>
    %270 = vector.multi_reduction <add>, %269, %cst_146 [1] : vector<64x64xf32> to vector<64xf32>
    %271 = vector.shape_cast %270 : vector<64xf32> to vector<64x1xf32>
    %272 = tpu.reciprocal %271 : vector<64x1xf32> -> vector<64x1xf32>
    %273 = vector.broadcast %272 : vector<64x1xf32> to vector<64x64xf32>
    %274 = arith.mulf %269, %273 : vector<64x64xf32>
    %275 = vector.extract_strided_slice %202 {offsets = [0, 24], sizes = [64, 8], strides = [1, 1]} : vector<64x32xf32> to vector<64x8xf32>
    %cst_147 = arith.constant dense<0.000000e+00> : vector<64x8xf32>
    %276 = tpu.matmul %274, %275, %cst_147 {dimension_numbers = #tpu.dot_dimension_numbers<[1], [0], [0], [1], [0, 0, 1, 1], [], []>} : vector<64x64xf32>, vector<64x8xf32>, vector<64x8xf32> -> vector<64x8xf32>
    %277 = vector.extract_strided_slice %187 {offsets = [24, 0], sizes = [8, 32], strides = [1, 1]} : vector<32x32xf32> to vector<8x32xf32>
    %cst_148 = arith.constant dense<0.000000e+00> : vector<64x32xf32>
    %278 = tpu.matmul %276, %277, %cst_148 {dimension_numbers = #tpu.dot_dimension_numbers<[1], [0], [0], [1], [0, 0, 1, 1], [], []>} : vector<64x8xf32>, vector<8x32xf32>, vector<64x32xf32> -> vector<64x32xf32>
    %279 = arith.addf %260, %278 : vector<64x32xf32>
    %c3_149 = arith.constant 3 : index
    %c1_150 = arith.constant 1 : index
    %c0_151 = arith.constant 0 : index
    %c0_152 = arith.constant 0 : index
    %280 = vector.load %arg5[%c3_149, %c1_150, %c0_151, %c0_152] : memref<9x2x1x32xf32, #tpu.memory_space<vmem>>, vector<1x1x1x32xf32>
    %281 = vector.shape_cast %280 : vector<1x1x1x32xf32> to vector<1x32xf32>
    %282 = vector.broadcast %281 : vector<1x32xf32> to vector<64x32xf32>
    %283 = arith.addf %279, %282 : vector<64x32xf32>
    %284 = arith.addf %179, %283 : vector<64x32xf32>
    %c4_153 = arith.constant 4 : index
    %c1_154 = arith.constant 1 : index
    %c0_155 = arith.constant 0 : index
    %c0_156 = arith.constant 0 : index
    %285 = vector.load %arg5[%c4_153, %c1_154, %c0_155, %c0_156] : memref<9x2x1x32xf32, #tpu.memory_space<vmem>>, vector<1x1x1x32xf32>
    %286 = vector.shape_cast %285 : vector<1x1x1x32xf32> to vector<1x32xf32>
    %c5_157 = arith.constant 5 : index
    %c1_158 = arith.constant 1 : index
    %c0_159 = arith.constant 0 : index
    %c0_160 = arith.constant 0 : index
    %287 = vector.load %arg5[%c5_157, %c1_158, %c0_159, %c0_160] : memref<9x2x1x32xf32, #tpu.memory_space<vmem>>, vector<1x1x1x32xf32>
    %288 = vector.shape_cast %287 : vector<1x1x1x32xf32> to vector<1x32xf32>
    %cst_161 = arith.constant dense<0.000000e+00> : vector<64xf32>
    %289 = vector.multi_reduction <add>, %284, %cst_161 [1] : vector<64x32xf32> to vector<64xf32>
    %290 = vector.shape_cast %289 : vector<64xf32> to vector<64x1xf32>
    %cst_162 = arith.constant 3.200000e+01 : f32
    %291 = vector.broadcast %cst_162 : f32 to vector<64x1xf32>
    %292 = arith.divf %290, %291 : vector<64x1xf32>
    %293 = vector.broadcast %292 : vector<64x1xf32> to vector<64x32xf32>
    %294 = arith.subf %284, %293 : vector<64x32xf32>
    %295 = arith.mulf %294, %294 : vector<64x32xf32>
    %cst_163 = arith.constant dense<0.000000e+00> : vector<64xf32>
    %296 = vector.multi_reduction <add>, %295, %cst_163 [1] : vector<64x32xf32> to vector<64xf32>
    %297 = vector.shape_cast %296 : vector<64xf32> to vector<64x1xf32>
    %cst_164 = arith.constant 3.200000e+01 : f32
    %298 = vector.broadcast %cst_164 : f32 to vector<64x1xf32>
    %299 = arith.divf %297, %298 : vector<64x1xf32>
    %300 = vector.broadcast %292 : vector<64x1xf32> to vector<64x32xf32>
    %301 = arith.subf %284, %300 : vector<64x32xf32>
    %cst_165 = arith.constant 9.99999974E-6 : f32
    %302 = vector.broadcast %cst_165 : f32 to vector<64x1xf32>
    %303 = arith.addf %299, %302 : vector<64x1xf32>
    %304 = math.rsqrt %303 : vector<64x1xf32>
    %305 = vector.broadcast %304 : vector<64x1xf32> to vector<64x32xf32>
    %306 = arith.mulf %301, %305 : vector<64x32xf32>
    %307 = vector.broadcast %286 : vector<1x32xf32> to vector<64x32xf32>
    %308 = arith.mulf %306, %307 : vector<64x32xf32>
    %309 = vector.broadcast %288 : vector<1x32xf32> to vector<64x32xf32>
    %310 = arith.addf %308, %309 : vector<64x32xf32>
    %c1_166 = arith.constant 1 : index
    %c0_167 = arith.constant 0 : index
    %c0_168 = arith.constant 0 : index
    %311 = vector.load %arg6[%c1_166, %c0_167, %c0_168] : memref<2x32x128xf32, #tpu.memory_space<vmem>>, vector<1x32x128xf32>
    %312 = vector.shape_cast %311 : vector<1x32x128xf32> to vector<32x128xf32>
    %cst_169 = arith.constant dense<0.000000e+00> : vector<64x128xf32>
    %313 = tpu.matmul %310, %312, %cst_169 {dimension_numbers = #tpu.dot_dimension_numbers<[1], [0], [0], [1], [0, 0, 1, 1], [], []>} : vector<64x32xf32>, vector<32x128xf32>, vector<64x128xf32> -> vector<64x128xf32>
    %c1_170 = arith.constant 1 : index
    %c0_171 = arith.constant 0 : index
    %c0_172 = arith.constant 0 : index
    %314 = vector.load %arg7[%c1_170, %c0_171, %c0_172] : memref<2x1x128xf32, #tpu.memory_space<vmem>>, vector<1x1x128xf32>
    %315 = vector.shape_cast %314 : vector<1x1x128xf32> to vector<1x128xf32>
    %316 = vector.broadcast %315 : vector<1x128xf32> to vector<64x128xf32>
    %317 = arith.addf %313, %316 : vector<64x128xf32>
    %cst_173 = arith.constant 0.000000e+00 : f32
    %318 = vector.broadcast %cst_173 : f32 to vector<64x128xf32>
    %319 = arith.maximumf %317, %318 : vector<64x128xf32>
    %c1_174 = arith.constant 1 : index
    %c0_175 = arith.constant 0 : index
    %c0_176 = arith.constant 0 : index
    %320 = vector.load %arg8[%c1_174, %c0_175, %c0_176] : memref<2x128x32xf32, #tpu.memory_space<vmem>>, vector<1x128x32xf32>
    %321 = vector.shape_cast %320 : vector<1x128x32xf32> to vector<128x32xf32>
    %cst_177 = arith.constant dense<0.000000e+00> : vector<64x32xf32>
    %322 = tpu.matmul %319, %321, %cst_177 {dimension_numbers = #tpu.dot_dimension_numbers<[1], [0], [0], [1], [0, 0, 1, 1], [], []>} : vector<64x128xf32>, vector<128x32xf32>, vector<64x32xf32> -> vector<64x32xf32>
    %c6_178 = arith.constant 6 : index
    %c1_179 = arith.constant 1 : index
    %c0_180 = arith.constant 0 : index
    %c0_181 = arith.constant 0 : index
    %323 = vector.load %arg5[%c6_178, %c1_179, %c0_180, %c0_181] : memref<9x2x1x32xf32, #tpu.memory_space<vmem>>, vector<1x1x1x32xf32>
    %324 = vector.shape_cast %323 : vector<1x1x1x32xf32> to vector<1x32xf32>
    %325 = vector.broadcast %324 : vector<1x32xf32> to vector<64x32xf32>
    %326 = arith.addf %322, %325 : vector<64x32xf32>
    %327 = arith.addf %310, %326 : vector<64x32xf32>
    %c7_182 = arith.constant 7 : index
    %c1_183 = arith.constant 1 : index
    %c0_184 = arith.constant 0 : index
    %c0_185 = arith.constant 0 : index
    %328 = vector.load %arg5[%c7_182, %c1_183, %c0_184, %c0_185] : memref<9x2x1x32xf32, #tpu.memory_space<vmem>>, vector<1x1x1x32xf32>
    %329 = vector.shape_cast %328 : vector<1x1x1x32xf32> to vector<1x32xf32>
    %c8_186 = arith.constant 8 : index
    %c1_187 = arith.constant 1 : index
    %c0_188 = arith.constant 0 : index
    %c0_189 = arith.constant 0 : index
    %330 = vector.load %arg5[%c8_186, %c1_187, %c0_188, %c0_189] : memref<9x2x1x32xf32, #tpu.memory_space<vmem>>, vector<1x1x1x32xf32>
    %331 = vector.shape_cast %330 : vector<1x1x1x32xf32> to vector<1x32xf32>
    %cst_190 = arith.constant dense<0.000000e+00> : vector<64xf32>
    %332 = vector.multi_reduction <add>, %327, %cst_190 [1] : vector<64x32xf32> to vector<64xf32>
    %333 = vector.shape_cast %332 : vector<64xf32> to vector<64x1xf32>
    %cst_191 = arith.constant 3.200000e+01 : f32
    %334 = vector.broadcast %cst_191 : f32 to vector<64x1xf32>
    %335 = arith.divf %333, %334 : vector<64x1xf32>
    %336 = vector.broadcast %335 : vector<64x1xf32> to vector<64x32xf32>
    %337 = arith.subf %327, %336 : vector<64x32xf32>
    %338 = arith.mulf %337, %337 : vector<64x32xf32>
    %cst_192 = arith.constant dense<0.000000e+00> : vector<64xf32>
    %339 = vector.multi_reduction <add>, %338, %cst_192 [1] : vector<64x32xf32> to vector<64xf32>
    %340 = vector.shape_cast %339 : vector<64xf32> to vector<64x1xf32>
    %cst_193 = arith.constant 3.200000e+01 : f32
    %341 = vector.broadcast %cst_193 : f32 to vector<64x1xf32>
    %342 = arith.divf %340, %341 : vector<64x1xf32>
    %343 = vector.broadcast %335 : vector<64x1xf32> to vector<64x32xf32>
    %344 = arith.subf %327, %343 : vector<64x32xf32>
    %cst_194 = arith.constant 9.99999974E-6 : f32
    %345 = vector.broadcast %cst_194 : f32 to vector<64x1xf32>
    %346 = arith.addf %342, %345 : vector<64x1xf32>
    %347 = math.rsqrt %346 : vector<64x1xf32>
    %348 = vector.broadcast %347 : vector<64x1xf32> to vector<64x32xf32>
    %349 = arith.mulf %344, %348 : vector<64x32xf32>
    %350 = vector.broadcast %329 : vector<1x32xf32> to vector<64x32xf32>
    %351 = arith.mulf %349, %350 : vector<64x32xf32>
    %352 = vector.broadcast %331 : vector<1x32xf32> to vector<64x32xf32>
    %353 = arith.addf %351, %352 : vector<64x32xf32>
    %c0_195 = arith.constant 0 : index
    %c0_196 = arith.constant 0 : index
    %354 = vector.load %arg11[%c0_195, %c0_196] : memref<1x68xf32, #tpu.memory_space<vmem>>, vector<1x68xf32>
    %cst_197 = arith.constant 0.000000e+00 : f32
    %355 = vector.broadcast %cst_197 : f32 to vector<64x32xf32>
    %356 = arith.maximumf %353, %355 : vector<64x32xf32>
    %c0_198 = arith.constant 0 : index
    %c0_199 = arith.constant 0 : index
    %357 = vector.load %arg9[%c0_198, %c0_199] : memref<32x64xf32, #tpu.memory_space<vmem>>, vector<32x64xf32>
    %cst_200 = arith.constant dense<0.000000e+00> : vector<64x64xf32>
    %358 = tpu.matmul %356, %357, %cst_200 {dimension_numbers = #tpu.dot_dimension_numbers<[1], [0], [0], [1], [0, 0, 1, 1], [], []>} : vector<64x32xf32>, vector<32x64xf32>, vector<64x64xf32> -> vector<64x64xf32>
    %359 = vector.extract_strided_slice %354 {offsets = [0, 0], sizes = [1, 64], strides = [1, 1]} : vector<1x68xf32> to vector<1x64xf32>
    %360 = vector.broadcast %359 : vector<1x64xf32> to vector<64x64xf32>
    %361 = arith.addf %358, %360 : vector<64x64xf32>
    %cst_201 = arith.constant 0.000000e+00 : f32
    %362 = vector.broadcast %cst_201 : f32 to vector<64x64xf32>
    %363 = arith.maximumf %361, %362 : vector<64x64xf32>
    %c0_202 = arith.constant 0 : index
    %c0_203 = arith.constant 0 : index
    %364 = vector.load %arg10[%c0_202, %c0_203] : memref<64x4xf32, #tpu.memory_space<vmem>>, vector<64x4xf32>
    %cst_204 = arith.constant dense<0.000000e+00> : vector<64x4xf32>
    %365 = tpu.matmul %363, %364, %cst_204 {dimension_numbers = #tpu.dot_dimension_numbers<[1], [0], [0], [1], [0, 0, 1, 1], [], []>} : vector<64x64xf32>, vector<64x4xf32>, vector<64x4xf32> -> vector<64x4xf32>
    %366 = vector.extract_strided_slice %354 {offsets = [0, 64], sizes = [1, 4], strides = [1, 1]} : vector<1x68xf32> to vector<1x4xf32>
    %367 = vector.broadcast %366 : vector<1x4xf32> to vector<64x4xf32>
    %368 = arith.addf %365, %367 : vector<64x4xf32>
    %c0_205 = arith.constant 0 : index
    %c0_206 = arith.constant 0 : index
    %369 = vector.load %arg12[%c0_205, %c0_206] : memref<64x4xf32, #tpu.memory_space<vmem>>, vector<64x4xf32>
    tpu.vector_store %arg12[%c0_205, %c0_206], %368 {strides = array<i32>} : memref<64x4xf32, #tpu.memory_space<vmem>>, vector<64x4xf32>,
    return
  }
}

</mosaic_0001>

<bundles_post_ra>
// kernel: tpu_custom_call.1
= control target key start
LH: loop header
LB: loop body
LE: loop exit
PB: predicated region body
PF: predicated region fallthrough
CT: control target
= control target key end

     0   :  { %vm67_vm0 = vcmask 130048   ;;  %vm223_vm1 = vcmask 261120   ;;  %vm579_vm2 = vcmask 64512   ;;  %vm733_vm4 = vcmask 523264   ;;  %s9646_s22 = smov 120   ;;  %s9647_s23 = smov 112   ;;  %s12016_s3 = inlined_call_operand.vmem [shape: f32[16,32], index: 3, kind: input, shape index: {}]   ;;  %s12017_s0 = inlined_call_operand.vmem [shape: f32[64,16], index: 0, kind: input, shape index: {}]   ;;  %s12018_s4 = inlined_call_operand.vmem [shape: f32[4,2,32,32], index: 4, kind: input, shape index: {}]   ;;  %s12019_s1 = inlined_call_operand.vmem [shape: f32[64,32], index: 1, kind: input, shape index: {}]   ;;  %s12020_s5 = inlined_call_operand.vmem [shape: f32[9,2,1,32], index: 5, kind: input, shape index: {}]   ;;  %s12021_s2 = inlined_call_operand.vmem [shape: f32[64,64], index: 2, kind: input, shape index: {}]   ;;  %s12022_s6 = inlined_call_operand.vmem [shape: f32[2,32,128], index: 6, kind: input, shape index: {}]   ;;  %s12023_s8 = inlined_call_operand.vmem [shape: f32[2,128,32], index: 8, kind: input, shape index: {}]   ;;  %s12024_s7 = inlined_call_operand.vmem [shape: f32[2,1,128], index: 7, kind: input, shape index: {}]   ;;  %s12025_s9 = inlined_call_operand.vmem [shape: f32[32,64], index: 9, kind: input, shape index: {}]   ;;  %s12026_s10 = inlined_call_operand.vmem [shape: f32[64,4], index: 10, kind: input, shape index: {}]   ;;  %s12027_s11 = inlined_call_operand.vmem [shape: f32[1,68], index: 11, kind: input, shape index: {}]   ;;  %s12028_s12 = inlined_call_operand.vmem [shape: f32[64,4], index: 12, kind: output, shape index: {}]  }
   0x1   :  { %v57_v0 = vld [vmem:[%s12016_s3] sm:$0xff]  ;;  %v58_v1 = vld [vmem:[%s12016_s3 + $0x8] sm:$0xff]  ;;  %v51_v12 = vld [vmem:[%s12017_s0 + $0x10] sm:$0xff]  ;;  %s9648_s24 = smov 104   ;;  %s9649_s25 = smov 64   ;;  %vm6706_vm5 = vcmask 31744  }
   0x2   :  { %v49_v2 = vld [vmem:[%s12017_s0] sm:$0xff]  ;;  %v8532_v3 = vpack.c.bf16 %v58_v1, %v57_v0  ;;  %v50_v5 = vld [vmem:[%s12017_s0 + $0x8] sm:$0xff]  ;;  %v55_v13 = vld [vmem:[%s12017_s0 + $0x30] sm:$0xff] }
   0x3   :  { %7664 = vmatprep.mubr.msk.f32.mxu0 %vm67_vm0, %v49_v2  ;;  %v53_v4 = vld [vmem:[%s12017_s0 + $0x20] sm:$0xff]  ;;  %v198_v7 = vld [vmem:[%s12018_s4 + $0x8] sm:$0xff]  ;;  %v52_v15 = vld [vmem:[%s12017_s0 + $0x18] sm:$0xff] }
   0x4   :  { %8533 = vmatprep.subr.bf16.mxu0 %v8532_v3  ;;  %9008 = vmatprep.subr.bf16.mxu1 %v8532_v3  ;;  %v197_v6 = vld [vmem:[%s12018_s4] sm:$0xff]  ;;  %v54_v8 = vld [vmem:[%s12017_s0 + $0x28] sm:$0xff]  ;;  %v56_v16 = vld [vmem:[%s12017_s0 + $0x38] sm:$0xff] }
   0x5   :  { %8535 = vmatpush3.bf16.msra.mxu0 %v8532_v3  ;;  %9009 = vmatpush3.bf16.msra.mxu1 %v8532_v3  ;;  %v8536_v9 = vpack.c.bf16 %v198_v7, %v197_v6  ;;  %v6727_v10 = vld [vmem:[%s12018_s4 + $0x40] sm:$0xff]  ;;  %v6728_v11 = vld [vmem:[%s12018_s4 + $0x48] sm:$0xff]  ;;  %v199_v17 = vld [vmem:[%s12018_s4 + $0x10] sm:$0xff] }
   0x6   :  { %7670 = vmatprep.mubr.msk.f32.mxu1 %vm67_vm0, %v53_v4  ;;  %v8544_v14 = vpack.c.bf16 %v6728_v11, %v6727_v10  ;;  %v200_v18 = vld [vmem:[%s12018_s4 + $0x18] sm:$0xff]  ;;  %v6729_v19 = vld [vmem:[%s12018_s4 + $0x50] sm:$0xff]  ;;  %v6731_v23 = vld [vmem:[%s12018_s4 + $0x80] sm:$0xff] }
   0x7   :  { %8537 = vmatprep.subr.bf16.mxu1 %v8536_v9  ;;  %v8540_v20 = vpack.c.bf16 %v200_v18, %v199_v17  ;;  %v6730_v21 = vld [vmem:[%s12018_s4 + $0x58] sm:$0xff]  ;;  %v6732_v24 = vld [vmem:[%s12018_s4 + $0x88] sm:$0xff]  ;;  %v59_v26 = vld [vmem:[%s12019_s1] sm:$0xff] }
   0x8   :  { %7665 = vmatmul.mubr.msk.f32.vlgmr.msra.gmra.mrb[0].mxu0 %vm67_vm0, %v50_v5  ;;  %7671 = vmatmul.mubr.msk.f32.vlgmr.msra.gmra.mrb[0].mxu1 %vm67_vm0, %v54_v8  ;;  %v8548_v22 = vpack.c.bf16 %v6730_v21, %v6729_v19  ;;  %v8552_v25 = vpack.c.bf16 %v6732_v24, %v6731_v23  ;;  %v60_v27 = vld [vmem:[%s12019_s1 + $0x8] sm:$0xff]  ;;  %v6733_v30 = vld [vmem:[%s12018_s4 + $0x90] sm:$0xff]  ;;  %v6734_v31 = vld [vmem:[%s12018_s4 + $0x98] sm:$0xff] }
   0x9   :  { %7667 = vmatprep.mubr.msk.f32.mxu0 %vm67_vm0, %v51_v12  ;;  %7673 = vmatprep.mubr.msk.f32.mxu1 %vm67_vm0, %v55_v13  ;;  %v62_v35 = vld [vmem:[%s12019_s1 + $0x18] sm:$0xff]  ;;  %v61_v37 = vld [vmem:[%s12019_s1 + $0x10] sm:$0xff]  ;;  %v63_v38 = vld [vmem:[%s12019_s1 + $0x20] sm:$0xff]  ;;  %v8556_v39 = vpack.c.bf16 %v6734_v31, %v6733_v30 }
   0xa   :  { %8545 = vmatprep.subr.bf16.mxu0 %v8544_v14  ;;  %8539 = vmatpush3.bf16.msra.mxu1 %v8536_v9  ;;  %v64_v46 = vld [vmem:[%s12019_s1 + $0x28] sm:$0xff]  ;;  %v65_v48 = vld [vmem:[%s12019_s1 + $0x30] sm:$0xff]  ;;  %v66_v50 = vld [vmem:[%s12019_s1 + $0x38] sm:$0xff] }
   0xb   :  { %8547 = vmatpush3.bf16.msra.mxu0 %v8544_v14  ;;  %8541 = vmatprep.subr.bf16.mxu1 %v8540_v20  ;;  %v6749_v53 = vld [vmem:[%s12020_s5 + $0x2] ss:$0 sm:$0xff]  ;;  %v9883_v54 = vld [vmem:[%s12020_s5] ss:$0 sm:$0xff]  ;;  %vm9892_vm3 = vmpackc.low %vm579_vm2, %vm579_vm2 }
   0xc   :  { %7668 = vmatmul.mubr.msk.f32.gmra.mrb[2].mxu0 %vm67_vm0, %v52_v15  ;;  %7674 = vmatmul.mubr.msk.f32.gmra.mrb[2].mxu1 %vm67_vm0, %v56_v16 }
   0xd   :  { %8549 = vmatprep.subr.bf16.mxu0 %v8548_v22 }
   0xe   :  { %8543 = vmatpush3.bf16.msra.mxu1 %v8540_v20 }
   0xf   :  { %8551 = vmatpush3.bf16.msra.mxu0 %v8548_v22  ;;  %8553 = vmatprep.subr.bf16.mxu1 %v8552_v25  ;;  %v6759_v22 = vld [vmem:[%s12020_s5 + $0x4] ss:$0 sm:$0xff] }
  0xdb   :  { %v7666_v28 = vpop.f32.mrb[0].mxu0  ;;  %v7672_v29 = vpop.f32.mrb[0].mxu1 }
  0xdc   :  { %v158_v32 = vpop.f32.mrb[1].mxu0  ;;  %v178_v33 = vpop.f32.mrb[1].mxu1  ;;  %v9800_v36 = vadd.f32 %v7666_v28, %v60_v27  ;;  %v9832_v49 = vadd.f32 %v7672_v29, %v64_v46 }
  0xdd   :  { %v9795_v34 = vadd.f32 %v158_v32, %v59_v26  ;;  %v9823_v47 = vadd.f32 %v178_v33, %v63_v38 }
  0xde   :  { %12046 = vst [vmem:[#allocation3_spill] sm:$0xff] %v9800_v36  ;;  %12050 = vst [vmem:[#allocation7_spill] sm:$0xff] %v9832_v49 }
  0xdf   :  { %12045 = vst [vmem:[#allocation2_spill] sm:$0xff] %v9795_v34  ;;  %v7669_v40 = vpop.f32.mrb[2].mxu0  ;;  %7684 = vmatprep.mubr.msk.f32.mxu1 %vm223_vm1, %v9795_v34  ;;  %7704 = vmatprep.mubr.msk.f32.mxu0 %vm223_vm1, %v9795_v34  ;;  %v7675_v41 = vpop.f32.mrb[2].mxu1  ;;  %12049 = vst [vmem:[#allocation6_spill] sm:$0xff] %v9823_v47 }
  0xe0   :  { %v9812_v42 = vadd.f32 %v7669_v40, %v62_v35  ;;  %v168_v43 = vpop.f32.mrb[3].mxu0  ;;  %7685 = vmatmul.mubr.msk.f32.vlgmr.msra.gmra.mrb[4].mxu1 %vm223_vm1, %v9800_v36  ;;  %7705 = vmatmul.mubr.msk.f32.vlgmr.msra.gmra.mrb[4].mxu0 %vm223_vm1, %v9800_v36  ;;  %v188_v44 = vpop.f32.mrb[3].mxu1  ;;  %v9847_v52 = vadd.f32 %v7675_v41, %v66_v50 }
  0xe1   :  { %v9818_v45 = vadd.f32 %v168_v43, %v61_v37  ;;  %8555 = vmatpush3.bf16.msra.mxu1 %v8552_v25  ;;  %v9843_v51 = vadd.f32 %v188_v44, %v65_v48 }
  0xe2   :  { %12047 = vst [vmem:[#allocation4_spill] sm:$0xff] %v9812_v42  ;;  %8557 = vmatprep.subr.bf16.mxu1 %v8556_v39  ;;  %12052 = vst [vmem:[#allocation9_spill] sm:$0xff] %v9847_v52 }
  0xe3   :  { %12048 = vst [vmem:[#allocation5_spill] sm:$0xff] %v9818_v45  ;;  %7687 = vmatprep.mubr.msk.f32.mxu1 %vm223_vm1, %v9818_v45  ;;  %7707 = vmatprep.mubr.msk.f32.mxu0 %vm223_vm1, %v9818_v45  ;;  %12051 = vst [vmem:[#allocation8_spill] sm:$0xff] %v9843_v51 }
  0xe4   :  { %7688 = vmatmul.mubr.msk.f32.gmra.mrb[6].mxu1 %vm223_vm1, %v9812_v42  ;;  %7708 = vmatmul.mubr.msk.f32.gmra.mrb[6].mxu0 %vm223_vm1, %v9812_v42 }
  0xe5   :  { %7690 = vmatprep.mubr.msk.f32.mxu1 %vm223_vm1, %v9823_v47  ;;  %7710 = vmatprep.mubr.msk.f32.mxu0 %vm223_vm1, %v9823_v47 }
  0xe6   :  { %8559 = vmatpush3.bf16.msra.mxu1 %v8556_v39 }
  0xe8   :  { %7691 = vmatmul.mubr.msk.f32.gmra.mrb[8].mxu1 %vm223_vm1, %v9832_v49  ;;  %7711 = vmatmul.mubr.msk.f32.gmra.mrb[8].mxu0 %vm223_vm1, %v9832_v49 }
  0xe9   :  { %7693 = vmatprep.mubr.msk.f32.mxu1 %vm223_vm1, %v9843_v51  ;;  %7713 = vmatprep.mubr.msk.f32.mxu0 %vm223_vm1, %v9843_v51 }
  0xec   :  { %7694 = vmatmul.mubr.msk.f32.gmra.mrb[10].mxu1 %vm223_vm1, %v9847_v52  ;;  %7714 = vmatmul.mubr.msk.f32.gmra.mrb[10].mxu0 %vm223_vm1, %v9847_v52 }
  0xed   :  { %7724 = vmatprep.mubr.msk.f32.mxu1 %vm223_vm1, %v9795_v34 }
  0xf0   :  { %7725 = vmatmul.mubr.msk.f32.vlgmr.msra.gmra.mrb[12].mxu1 %vm223_vm1, %v9800_v36 }
  0xf1   :  { %7727 = vmatprep.mubr.msk.f32.mxu1 %vm223_vm1, %v9818_v45 }
  0xf4   :  { %7728 = vmatmul.mubr.msk.f32.gmra.mrb[14].mxu1 %vm223_vm1, %v9812_v42 }
  0xf5   :  { %7730 = vmatprep.mubr.msk.f32.mxu1 %vm223_vm1, %v9823_v47 }
  0xf8   :  { %7731 = vmatmul.mubr.msk.f32.gmra.mrb[16].mxu1 %vm223_vm1, %v9832_v49 }
  0xf9   :  { %7733 = vmatprep.mubr.msk.f32.mxu1 %vm223_vm1, %v9843_v51 }
  0xfc   :  { %7734 = vmatmul.mubr.msk.f32.gmra.mrb[18].mxu1 %vm223_vm1, %v9847_v52 }
 0x1b3   :  { %v9885_v55 = vpop.f32.mrb[4].mxu1  ;;  %v7706_v56 = vpop.f32.mrb[4].mxu0 }
 0x1b4   :  { %v433_v57 = vadd.f32 %v7706_v56, %v6749_v53  ;;  %v314_v58 = vpop.f32.mrb[5].mxu1  ;;  %v427_v59 = vpop.f32.mrb[5].mxu0 }
 0x1b5   :  { %v9888_v60 = vadd.f32 %v9883_v54, %v314_v58  ;;  %v428_v61 = vadd.f32 %v6749_v53, %v427_v59 }
 0x1b7   :  { %7752 = vmatprep.mubr.msk.f32.mxu0 %vm579_vm2, %v9888_v60  ;;  %v9898_v63 = vpop.f32.mrb[6].mxu1  ;;  %v7709_v0 = vpop.f32.mrb[6].mxu0  ;;  %v8560_v1 = vpack.c.bf16 %v433_v57, %v428_v61  ;;  %v9900_v2 = vpack.i.bf16 %v433_v57, %v428_v61  ;;  %v9941_v61 = vadd.f32 %v9885_v55, %v9883_v54 }
 0x1b8   :  { %v443_v3 = vadd.f32 %v7709_v0, %v6749_v53  ;;  %v9902_v4 = vpop.f32.mrb[7].mxu1  ;;  %v437_v5 = vpop.f32.mrb[7].mxu0 }
 0x1b9   :  { %v438_v6 = vadd.f32 %v6749_v53, %v437_v5  ;;  %8562 = vmatprep.subr.msk.bf16.mxu0 %vm9892_vm3, %v8560_v1  ;;  %v9945_v0 = vadd.f32 %v9883_v54, %v9902_v4  ;;  %v9981_v5 = vld [vmem:[%s12021_s2] sm:$0xff] }
 0x1ba   :  { %8565 = vmatpush3.bf16.xpose.msk.msra.mxu0 %vm9892_vm3, %v8560_v1  ;;  %v9953_v1 = vadd.f32 %v9898_v63, %v9883_v54 }
 0x1bb   :  { %v8566_v7 = vpack.c.bf16 %v443_v3, %v438_v6  ;;  %v9908_v8 = vpop.f32.mrb[8].mxu1  ;;  %v7712_v9 = vpop.f32.mrb[8].mxu0  ;;  %v9910_v10 = vpack.i.bf16 %v443_v3, %v438_v6 }
 0x1bc   :  { %v334_v11 = vpop.f32.mrb[9].mxu1  ;;  %v453_v12 = vadd.f32 %v7712_v9, %v6749_v53  ;;  %v447_v13 = vpop.f32.mrb[9].mxu0  ;;  %v9964_v55 = vadd.f32 %v9908_v8, %v9883_v54 }
 0x1bd   :  { %8568 = vmatprep.subr.msk.bf16.mxu0 %vm9892_vm3, %v8566_v7  ;;  %v448_v14 = vadd.f32 %v6749_v53, %v447_v13  ;;  %v9956_v3 = vadd.f32 %v9883_v54, %v334_v11  ;;  %v9998_v13 = vld [vmem:[%s12021_s2 + $0x10] sm:$0xff] }
 0x1bf   :  { %v7695_v15 = vpop.f32.mrb[10].mxu1  ;;  %v8572_v16 = vpack.c.bf16 %v453_v12, %v448_v14  ;;  %v7715_v17 = vpop.f32.mrb[10].mxu0  ;;  %v9914_v18 = vpack.i.bf16 %v453_v12, %v448_v14 }
 0x1c0   :  { %v344_v19 = vpop.f32.mrb[11].mxu1  ;;  %v463_v20 = vadd.f32 %v7715_v17, %v6749_v53  ;;  %v457_v21 = vpop.f32.mrb[11].mxu0  ;;  %v9974_v63 = vadd.f32 %v7695_v15, %v9883_v54 }
 0x1c1   :  { %v458_v23 = vadd.f32 %v6749_v53, %v457_v21  ;;  %v9967_v4 = vadd.f32 %v9883_v54, %v344_v19  ;;  %v9992_v54 = vld [vmem:[%s12021_s2 + $0x18] sm:$0xff]  ;;  %v10012_v21 = vld [vmem:[%s12021_s2 + $0x28] sm:$0xff] }
 0x1c2   :  { %8571 = vmatpush3.bf16.xpose.msk.msra.mxu0 %vm9892_vm3, %v8566_v7  ;;  %v9986_v7 = vld [vmem:[%s12021_s2 + $0x8] sm:$0xff] }
 0x1c3   :  { %v7726_v24 = vpop.f32.mrb[12].mxu1  ;;  %8574 = vmatprep.subr.msk.bf16.mxu0 %vm9892_vm3, %v8572_v16  ;;  %v8578_v25 = vpack.c.bf16 %v463_v20, %v458_v23  ;;  %v9923_v26 = vpack.i.bf16 %v463_v20, %v458_v23  ;;  %v10007_v20 = vld [vmem:[%s12021_s2 + $0x20] sm:$0xff] }
 0x1c4   :  { %v546_v27 = vadd.f32 %v7726_v24, %v6759_v22  ;;  %v540_v28 = vpop.f32.mrb[13].mxu1 }
 0x1c5   :  { %v541_v29 = vadd.f32 %v6759_v22, %v540_v28 }
 0x1c7   :  { %v7729_v30 = vpop.f32.mrb[14].mxu1  ;;  %v8584_v31 = vpack.c.bf16 %v546_v27, %v541_v29  ;;  %v9925_v32 = vpack.i.bf16 %v546_v27, %v541_v29  ;;  %v10021_v29 = vld [vmem:[%s12021_s2 + $0x30] sm:$0xff] }
 0x1c8   :  { %v556_v33 = vadd.f32 %v7729_v30, %v6759_v22  ;;  %v550_v35 = vpop.f32.mrb[15].mxu1  ;;  %v10026_v30 = vld [vmem:[%s12021_s2 + $0x38] sm:$0xff] }
 0x1c9   :  { %v551_v37 = vadd.f32 %v6759_v22, %v550_v35  ;;  %8585 = vmatprep.subr.bf16.mxu1 %v8584_v31 }
 0x1ca   :  { %8577 = vmatpush3.bf16.xpose.msk.msra.mxu0 %vm9892_vm3, %v8572_v16  ;;  %8587 = vmatpush3.bf16.msra.mxu1 %v8584_v31 }
 0x1cb   :  { %v7732_v38 = vpop.f32.mrb[16].mxu1  ;;  %v8588_v39 = vpack.c.bf16 %v556_v33, %v551_v37  ;;  %8580 = vmatprep.subr.msk.bf16.mxu0 %vm9892_vm3, %v8578_v25  ;;  %v9931_v40 = vpack.i.bf16 %v556_v33, %v551_v37 }
 0x1cc   :  { %v566_v41 = vadd.f32 %v7732_v38, %v6759_v22  ;;  %v560_v43 = vpop.f32.mrb[17].mxu1 }
 0x1cd   :  { %v561_v44 = vadd.f32 %v6759_v22, %v560_v43  ;;  %8589 = vmatprep.subr.bf16.mxu1 %v8588_v39 }
 0x1ce   :  { %8591 = vmatpush3.bf16.msra.mxu1 %v8588_v39 }
 0x1cf   :  { %v7735_v46 = vpop.f32.mrb[18].mxu1  ;;  %v8592_v48 = vpack.c.bf16 %v566_v41, %v561_v44  ;;  %v9933_v50 = vpack.i.bf16 %v566_v41, %v561_v44 }
 0x1d0   :  { %v576_v53 = vadd.f32 %v7735_v46, %v6759_v22  ;;  %v570_v56 = vpop.f32.mrb[19].mxu1 }
 0x1d1   :  { %v571_v57 = vadd.f32 %v6759_v22, %v570_v56  ;;  %8593 = vmatprep.subr.bf16.mxu1 %v8592_v48 }
 0x1d2   :  { %8583 = vmatpush3.bf16.xpose.msk.msra.mxu0 %vm9892_vm3, %v8578_v25  ;;  %8595 = vmatpush3.bf16.msra.mxu1 %v8592_v48 }
 0x1d3   :  { %v8596_v58 = vpack.c.bf16 %v576_v53, %v571_v57  ;;  %v9937_v59 = vpack.i.bf16 %v576_v53, %v571_v57 }
 0x1d5   :  { %8597 = vmatprep.subr.bf16.mxu1 %v8596_v58 }
 0x1d6   :  { %8599 = vmatpush3.bf16.msra.mxu1 %v8596_v58 }
 0x1d9   :  { %7753 = vmatmul.mubr.msk.f32.vlgmr.msra.gmra.mrb[12].mxu0 %vm579_vm2, %v9941_v61 }
 0x1da   :  { %7755 = vmatprep.mubr.msk.f32.mxu0 %vm579_vm2, %v9945_v0 }
 0x1dd   :  { %7756 = vmatmul.mubr.msk.f32.gmra.mrb[14].mxu0 %vm579_vm2, %v9953_v1 }
 0x1de   :  { %7758 = vmatprep.mubr.msk.f32.mxu0 %vm579_vm2, %v9956_v3 }
 0x1e1   :  { %7759 = vmatmul.mubr.msk.f32.gmra.mrb[16].mxu0 %vm579_vm2, %v9964_v55 }
 0x1e2   :  { %7761 = vmatprep.mubr.msk.f32.mxu0 %vm579_vm2, %v9967_v4 }
 0x1e5   :  { %7762 = vmatmul.mubr.msk.f32.gmra.mrb[18].mxu0 %vm579_vm2, %v9974_v63 }
 0x2ac   :  { %v7754_v6 = vpop.f32.mrb[12].mxu0 }
 0x2ad   :  { %v694_v8 = vpop.f32.mrb[13].mxu0  ;;  %v700_v11 = vadd.f32 %v7754_v6, %v9986_v7 }
 0x2ae   :  { %v695_v9 = vadd.f32 %v694_v8, %v9981_v5 }
 0x2af   :  { %v737_v23 = vsel %vm733_vm4, %v700_v11, -inf }
 0x2b0   :  { %v7757_v12 = vpop.f32.mrb[14].mxu0  ;;  %v734_v14 = vsel %vm733_vm4, %v695_v9, -inf }
 0x2b1   :  { %v710_v15 = vadd.f32 %v7757_v12, %v9992_v54  ;;  %v704_v16 = vpop.f32.mrb[15].mxu0  ;;  %735 = vmax.xlane.f32.xlu0 %v734_v14 }
 0x2b2   :  { %v705_v17 = vadd.f32 %v704_v16, %v9998_v13 }
 0x2b3   :  { %v743_v19 = vsel %vm733_vm4, %v710_v15, -inf }
 0x2b4   :  { %744 = vmax.xlane.f32.xlu1 %v743_v19  ;;  %v7760_v22 = vpop.f32.mrb[16].mxu0  ;;  %v740_v28 = vsel %vm733_vm4, %v705_v17, -inf }
 0x2b5   :  { %v714_v24 = vpop.f32.mrb[17].mxu0  ;;  %738 = vmax.xlane.f32.xlu0 %v737_v23  ;;  %v720_v27 = vadd.f32 %v7760_v22, %v10012_v21 }
 0x2b6   :  { %v715_v25 = vadd.f32 %v714_v24, %v10007_v20 }
 0x2b7   :  { %v749_v39 = vsel %vm733_vm4, %v720_v27, -inf }
 0x2b8   :  { %v7763_v31 = vpop.f32.mrb[18].mxu0  ;;  %741 = vmax.xlane.f32.xlu1 %v740_v28  ;;  %v746_v33 = vsel %vm733_vm4, %v715_v25, -inf }
 0x2b9   :  { %v724_v35 = vpop.f32.mrb[19].mxu0  ;;  %747 = vmax.xlane.f32.xlu0 %v746_v33  ;;  %v10033_v38 = vadd.f32 %v7763_v31, %v10026_v30 }
 0x2ba   :  { %v10030_v37 = vadd.f32 %v724_v35, %v10021_v29 }
 0x2bb   :  { %v755_v43 = vsel %vm733_vm4, %v10033_v38, -inf }
 0x2bc   :  { %750 = vmax.xlane.f32.xlu1 %v749_v39  ;;  %v752_v41 = vsel %vm733_vm4, %v10030_v37, -inf }
 0x2bd   :  { %753 = vmax.xlane.f32.xlu0 %v752_v41 }
 0x2c0   :  { %756 = vmax.xlane.f32.xlu1 %v755_v43 }
 0x33e   :  { %v736_v44 = vpop.xlane.xlu0 %735 }
 0x33f   :  { %v758_v46 = vsub.f32 %v695_v9, %v736_v44 }
 0x341   :  { %v766_v48 = vmul.f32 1.442695, %v758_v46  ;;  %v745_v9 = vpop.xlane.xlu1 %744 }
 0x342   :  { %v739_v53 = vpop.xlane.xlu0 %738  ;;  %v761_v19 = vsub.f32 %v710_v15, %v745_v9 }
 0x343   :  { %9302 = vpow2.f32 %v766_v48  ;;  %v759_v56 = vsub.f32 %v700_v11, %v739_v53 }
 0x344   :  { %v772_v28 = vmul.f32 1.442695, %v761_v19 }
 0x345   :  { %v768_v57 = vmul.f32 1.442695, %v759_v56  ;;  %v742_v11 = vpop.xlane.xlu1 %741 }
 0x346   :  { %v760_v14 = vsub.f32 %v705_v17, %v742_v11  ;;  %v748_v16 = vpop.xlane.xlu0 %747 }
 0x347   :  { %9304 = vpow2.f32 %v768_v57  ;;  %v762_v23 = vsub.f32 %v715_v25, %v748_v16 }
 0x348   :  { %v770_v22 = vmul.f32 1.442695, %v760_v14 }
 0x349   :  { %v751_v24 = vpop.xlane.xlu1 %750  ;;  %v774_v31 = vmul.f32 1.442695, %v762_v23 }
 0x34a   :  { %9306 = vpow2.f32 %v770_v22  ;;  %v763_v33 = vsub.f32 %v720_v27, %v751_v24  ;;  %v754_v53 = vpop.xlane.xlu0 %753 }
 0x34b   :  { %9308 = vpow2.f32 %v772_v28  ;;  %v764_v56 = vsub.f32 %v10030_v37, %v754_v53 }
 0x34c   :  { %9310 = vpow2.f32 %v774_v31  ;;  %v776_v35 = vmul.f32 1.442695, %v763_v33 }
 0x34d   :  { %v10040_v58 = vpop.eup %9302  ;;  %v757_v46 = vpop.xlane.xlu1 %756 }
 0x34e   :  { %v782_v6 = vsel %vm733_vm4, %v10040_v58, 0.0  ;;  %9312 = vpow2.f32 %v776_v35  ;;  %v765_v48 = vsub.f32 %v10033_v38, %v757_v46 }
 0x34f   :  { %783 = vadd.xlane.f32.xlu0 %v782_v6  ;;  %v778_v6 = vmul.f32 1.442695, %v764_v56 }
 0x350   :  { %v780_v57 = vmul.f32 1.442695, %v765_v48 }
 0x351   :  { %v10044_v8 = vpop.eup %9304 }
 0x352   :  { %v785_v12 = vsel %vm733_vm4, %v10044_v8, 0.0  ;;  %9314 = vpow2.f32 %v780_v57 }
 0x353   :  { %786 = vadd.xlane.f32.xlu1 %v785_v12  ;;  %9316 = vpow2.f32 %v778_v6 }
 0x354   :  { %v10052_v39 = vpop.eup %9306 }
 0x355   :  { %v10054_v41 = vpop.eup %9308  ;;  %v788_v17 = vsel %vm733_vm4, %v10052_v39, 0.0 }
 0x356   :  { %v10058_v43 = vpop.eup %9310  ;;  %v791_v15 = vsel %vm733_vm4, %v10054_v41, 0.0 }
 0x357   :  { %v794_v25 = vsel %vm733_vm4, %v10058_v43, 0.0 }
 0x358   :  { %v10064_v27 = vpop.eup %9312 }
 0x359   :  { %v797_v44 = vsel %vm733_vm4, %v10064_v27, 0.0 }
 0x35c   :  { %v10092_v38 = vpop.eup %9314 }
 0x35d   :  { %v803_v37 = vsel %vm733_vm4, %v10092_v38, 0.0  ;;  %v10098_v12 = vpop.eup %9316 }
 0x35e   :  { %v800_v9 = vsel %vm733_vm4, %v10098_v12, 0.0 }
 0x364   :  { %9068 = vrot.lane.b32.xlu1 %v9910_v10, %s9646_s22 }
 0x365   :  { %9063 = vrot.lane.b32.xlu0 %v9900_v2, %s9646_s22 }
 0x384   :  { %789 = vadd.xlane.f32.xlu0 %v788_v17 }
 0x388   :  { %792 = vadd.xlane.f32.xlu1 %v791_v15  ;;  %795 = vadd.xlane.f32.xlu0 %v794_v25 }
 0x38c   :  { %798 = vadd.xlane.f32.xlu1 %v797_v44 }
 0x39d   :  { %9078 = vrot.lane.b32.xlu1 %v9923_v26, %s9646_s22 }
 0x39e   :  { %9073 = vrot.lane.b32.xlu0 %v9914_v18, %s9646_s22 }
 0x3a1   :  { %953 = vrot.lane.b32.xlu1 %v9941_v61, %s9646_s22 }
 0x3a2   :  { %951 = vrot.lane.b32.xlu0 %v9888_v60, %s9646_s22 }
 0x3a6   :  { %955 = vrot.lane.b32.xlu0 %v9945_v0, %s9646_s22 }
 0x3aa   :  { %959 = vrot.lane.b32.xlu0 %v9956_v3, %s9646_s22 }
 0x3ae   :  { %963 = vrot.lane.b32.xlu0 %v9967_v4, %s9646_s22 }
 0x3b2   :  { %9083 = vrot.lane.b32.xlu0 %v9900_v2, %s9647_s23 }
 0x3b6   :  { %9093 = vrot.lane.b32.xlu0 %v9914_v18, %s9647_s23 }
 0x3ba   :  { %1627 = vrot.lane.b32.xlu0 %v9888_v60, %s9647_s23 }
 0x3be   :  { %1631 = vrot.lane.b32.xlu0 %v9945_v0, %s9647_s23 }
 0x3c2   :  { %1635 = vrot.lane.b32.xlu0 %v9956_v3, %s9647_s23 }
 0x3c5   :  { %804 = vadd.xlane.f32.xlu1 %v803_v37 }
 0x3c6   :  { %1639 = vrot.lane.b32.xlu0 %v9967_v4, %s9647_s23 }
 0x3c9   :  { %801 = vadd.xlane.f32.xlu1 %v800_v9 }
 0x3da   :  { %957 = vrot.lane.b32.xlu1 %v9953_v1, %s9646_s22 }
 0x3dc   :  { %v784_v11 = vpop.xlane.xlu0 %783 }
 0x3dd   :  { %9318 = vrcp.f32 %v784_v11 }
 0x3de   :  { %961 = vrot.lane.b32.xlu1 %v9964_v55, %s9646_s22 }
 0x3e0   :  { %v787_v14 = vpop.xlane.xlu1 %786  ;;  %v9064_v16 = vpop.permute.xlu0 %9063 }
 0x3e1   :  { %9320 = vrcp.f32 %v787_v14  ;;  %v9066_v19 = vunpack.i.h.bf16 %v9064_v16  ;;  %v9065_v22 = vunpack.i.l.bf16 %v9064_v16 }
 0x3e2   :  { %965 = vrot.lane.b32.xlu1 %v9974_v63, %s9646_s22 }
 0x3e3   :  { %v8600_v23 = vpack.c.bf16 %v9066_v19, %v9065_v22 }
 0x3e4   :  { %v9069_v28 = vpop.permute.xlu1 %9068 }
 0x3e5   :  { %8602 = vmatprep.subr.msk.bf16.mxu1 %vm9892_vm3, %v8600_v23  ;;  %v9071_v33 = vunpack.i.h.bf16 %v9069_v28  ;;  %v9070_v35 = vunpack.i.l.bf16 %v9069_v28 }
 0x3e6   :  { %9088 = vrot.lane.b32.xlu1 %v9910_v10, %s9647_s23 }
 0x3e7   :  { %v9319_v24 = vpop.eup %9318  ;;  %v8606_v25 = vpack.c.bf16 %v9071_v33, %v9070_v35 }
 0x3e8   :  { %v814_v31 = vmul.f32 %v9319_v24, %v10040_v58 }
 0x3ea   :  { %9098 = vrot.lane.b32.xlu1 %v9923_v26, %s9647_s23  ;;  %7780 = vmatprep.mubr.msk.f32.mxu1 %vm733_vm4, %v814_v31 }
 0x3eb   :  { %v9321_v17 = vpop.eup %9320 }
 0x3ec   :  { %v815_v15 = vmul.f32 %v9321_v17, %v10044_v8 }
 0x3ee   :  { %1629 = vrot.lane.b32.xlu1 %v9941_v61, %s9647_s23  ;;  %7781 = vmatmul.mubr.msk.f32.vlgmr.msra.gmra.mrb[20].mxu1 %vm733_vm4, %v815_v15 }
 0x3ef   :  { %8605 = vmatpush3.bf16.xpose.msk.msra.mxu1 %vm9892_vm3, %v8600_v23 }
 0x3f0   :  { %8608 = vmatprep.subr.msk.bf16.mxu1 %vm9892_vm3, %v8606_v25 }
 0x3f2   :  { %1633 = vrot.lane.b32.xlu1 %v9953_v1, %s9647_s23 }
 0x3f6   :  { %1637 = vrot.lane.b32.xlu1 %v9964_v55, %s9647_s23 }
 0x3f7   :  { %8611 = vmatpush3.bf16.xpose.msk.msra.mxu1 %vm9892_vm3, %v8606_v25 }
 0x3fa   :  { %1641 = vrot.lane.b32.xlu1 %v9974_v63, %s9647_s23 }
 0x411   :  { %v790_v58 = vpop.xlane.xlu0 %789 }
 0x412   :  { %9322 = vrcp.f32 %v790_v58 }
 0x415   :  { %v793_v8 = vpop.xlane.xlu1 %792  ;;  %v796_v44 = vpop.xlane.xlu0 %795 }
 0x416   :  { %9324 = vrcp.f32 %v793_v8 }
 0x417   :  { %9326 = vrcp.f32 %v796_v44 }
 0x419   :  { %v799_v46 = vpop.xlane.xlu1 %798  ;;  %v9074_v48 = vpop.permute.xlu0 %9073 }
 0x41a   :  { %9328 = vrcp.f32 %v799_v46  ;;  %v9076_v53 = vunpack.i.h.bf16 %v9074_v48  ;;  %v9075_v56 = vunpack.i.l.bf16 %v9074_v48 }
 0x41c   :  { %v9323_v57 = vpop.eup %9322  ;;  %v8612_v6 = vpack.c.bf16 %v9076_v53, %v9075_v56 }
 0x41d   :  { %v9079_v37 = vpop.permute.xlu1 %9078  ;;  %v952_v9 = vpop.permute.xlu0 %951  ;;  %v816_v11 = vmul.f32 %v9323_v57, %v10052_v39 }
 0x41e   :  { %v9081_v14 = vunpack.i.h.bf16 %v9079_v37  ;;  %v9080_v16 = vunpack.i.l.bf16 %v9079_v37  ;;  %8614 = vmatprep.subr.msk.bf16.mxu1 %vm9892_vm3, %v8612_v6 }
 0x41f   :  { %7783 = vmatprep.mubr.msk.f32.mxu1 %vm733_vm4, %v816_v11  ;;  %8617 = vmatpush3.bf16.xpose.msk.msra.mxu1 %vm9892_vm3, %v8612_v6 }
 0x420   :  { %v9325_v19 = vpop.eup %9324  ;;  %v8618_v22 = vpack.c.bf16 %v9081_v14, %v9080_v16 }
 0x421   :  { %v9327_v23 = vpop.eup %9326  ;;  %v956_v24 = vpop.permute.xlu0 %955  ;;  %v817_v28 = vmul.f32 %v9325_v19, %v10054_v41 }
 0x422   :  { %8620 = vmatprep.subr.msk.bf16.mxu1 %vm9892_vm3, %v8618_v22  ;;  %v818_v39 = vmul.f32 %v9327_v23, %v10058_v43  ;;  %v954_v43 = vpop.permute.xlu1 %953 }
 0x423   :  { %7784 = vmatmul.mubr.msk.f32.gmra.mrb[22].mxu1 %vm733_vm4, %v817_v28 }
 0x424   :  { %v9329_v31 = vpop.eup %9328  ;;  %7786 = vmatprep.mubr.msk.f32.mxu1 %vm733_vm4, %v818_v39 }
 0x425   :  { %v960_v33 = vpop.permute.xlu0 %959  ;;  %v819_v35 = vmul.f32 %v9329_v31, %v10064_v27 }
 0x427   :  { %7787 = vmatmul.mubr.msk.f32.gmra.mrb[24].mxu1 %vm733_vm4, %v819_v35 }
 0x428   :  { %8623 = vmatpush3.bf16.xpose.msk.msra.mxu1 %vm9892_vm3, %v8618_v22 }
 0x429   :  { %v964_v17 = vpop.permute.xlu0 %963 }
 0x42d   :  { %v9084_v41 = vpop.permute.xlu0 %9083 }
 0x42e   :  { %v9086_v15 = vunpack.i.h.bf16 %v9084_v41  ;;  %v9085_v25 = vunpack.i.l.bf16 %v9084_v41 }
 0x430   :  { %v8640_v58 = vpack.c.bf16 %v9086_v15, %v9085_v25 }
 0x431   :  { %v9094_v19 = vpop.permute.xlu0 %9093 }
 0x432   :  { %8642 = vmatprep.subr.msk.bf16.mxu1 %vm9892_vm3, %v8640_v58 }
 0x435   :  { %v1628_v23 = vpop.permute.xlu0 %1627 }
 0x452   :  { %v805_v8 = vpop.xlane.xlu1 %804 }
 0x453   :  { %9330 = vrcp.f32 %v805_v8 }
 0x456   :  { %v802_v44 = vpop.xlane.xlu1 %801 }
 0x457   :  { %9332 = vrcp.f32 %v802_v44 }
 0x45a   :  { %v958_v46 = vpop.permute.xlu1 %957 }
 0x45d   :  { %v9331_v48 = vpop.eup %9330 }
 0x45e   :  { %v962_v27 = vpop.permute.xlu1 %961  ;;  %v821_v6 = vmul.f32 %v9331_v48, %v10092_v38  ;;  %v9096_v38 = vunpack.i.h.bf16 %v9094_v19 }
 0x461   :  { %v9333_v53 = vpop.eup %9332 }
 0x462   :  { %v966_v56 = vpop.permute.xlu1 %965  ;;  %v820_v57 = vmul.f32 %v9333_v53, %v10098_v12  ;;  %v9095_v12 = vunpack.i.l.bf16 %v9094_v19 }
 0x464   :  { %7789 = vmatprep.mubr.msk.f32.mxu1 %vm733_vm4, %v820_v57 }
 0x465   :  { %7790 = vmatmul.mubr.msk.f32.gmra.mrb[26].mxu1 %vm733_vm4, %v821_v6 }
 0x466   :  { %v9089_v37 = vpop.permute.xlu1 %9088  ;;  %7808 = vmatprep.mubr.msk.f32.mxu1 %vm579_vm2, %v952_v9  ;;  %v8652_v9 = vpack.c.bf16 %v9096_v38, %v9095_v12 }
 0x467   :  { %v9091_v11 = vunpack.i.h.bf16 %v9089_v37  ;;  %v9090_v14 = vunpack.i.l.bf16 %v9089_v37 }
 0x469   :  { %v8646_v16 = vpack.c.bf16 %v9091_v11, %v9090_v14  ;;  %7809 = vmatmul.mubr.msk.f32.vlgmr.msra.gmra.mrb[28].mxu1 %vm579_vm2, %v954_v43 }
 0x46a   :  { %8645 = vmatpush3.bf16.xpose.msk.msra.mxu1 %vm9892_vm3, %v8640_v58  ;;  %7811 = vmatprep.mubr.msk.f32.mxu1 %vm579_vm2, %v956_v24  ;;  %v9099_v22 = vpop.permute.xlu1 %9098 }
 0x46b   :  { %8648 = vmatprep.subr.msk.bf16.mxu1 %vm9892_vm3, %v8646_v16  ;;  %v9101_v24 = vunpack.i.h.bf16 %v9099_v22  ;;  %v9100_v28 = vunpack.i.l.bf16 %v9099_v22 }
 0x46d   :  { %7812 = vmatmul.mubr.msk.f32.gmra.mrb[30].mxu1 %vm579_vm2, %v958_v46  ;;  %v8658_v39 = vpack.c.bf16 %v9101_v24, %v9100_v28 }
 0x46e   :  { %7814 = vmatprep.mubr.msk.f32.mxu1 %vm579_vm2, %v960_v33  ;;  %v1630_v31 = vpop.permute.xlu1 %1629  ;;  %v1632_v33 = vpop.permute.xlu0 %1631 }
 0x471   :  { %7815 = vmatmul.mubr.msk.f32.gmra.mrb[32].mxu1 %vm579_vm2, %v962_v27 }
 0x472   :  { %8651 = vmatpush3.bf16.xpose.msk.msra.mxu1 %vm9892_vm3, %v8646_v16  ;;  %7817 = vmatprep.mubr.msk.f32.mxu1 %vm579_vm2, %v964_v17  ;;  %v1634_v35 = vpop.permute.xlu1 %1633  ;;  %v1636_v17 = vpop.permute.xlu0 %1635 }
 0x473   :  { %8654 = vmatprep.subr.msk.bf16.mxu1 %vm9892_vm3, %v8652_v9 }
 0x475   :  { %7818 = vmatmul.mubr.msk.f32.gmra.mrb[34].mxu1 %vm579_vm2, %v966_v56 }
 0x476   :  { %7892 = vmatprep.mubr.msk.f32.mxu1 %vm579_vm2, %v1628_v23  ;;  %v1638_v41 = vpop.permute.xlu1 %1637  ;;  %v1640_v15 = vpop.permute.xlu0 %1639 }
 0x47a   :  { %8657 = vmatpush3.bf16.xpose.msk.msra.mxu1 %vm9892_vm3, %v8652_v9  ;;  %v1642_v25 = vpop.permute.xlu1 %1641 }
 0x47b   :  { %8660 = vmatprep.subr.msk.bf16.mxu1 %vm9892_vm3, %v8658_v39 }
 0x482   :  { %8663 = vmatpush3.bf16.xpose.msk.msra.mxu1 %vm9892_vm3, %v8658_v39 }
 0x489   :  { %7893 = vmatmul.mubr.msk.f32.vlgmr.msra.gmra.mrb[36].mxu1 %vm579_vm2, %v1630_v31 }
 0x48a   :  { %7895 = vmatprep.mubr.msk.f32.mxu1 %vm579_vm2, %v1632_v33 }
 0x48d   :  { %7896 = vmatmul.mubr.msk.f32.gmra.mrb[38].mxu1 %vm579_vm2, %v1634_v35 }
 0x48e   :  { %7898 = vmatprep.mubr.msk.f32.mxu1 %vm579_vm2, %v1636_v17 }
 0x491   :  { %7899 = vmatmul.mubr.msk.f32.gmra.mrb[40].mxu1 %vm579_vm2, %v1638_v41 }
 0x492   :  { %7901 = vmatprep.mubr.msk.f32.mxu1 %vm579_vm2, %v1640_v15 }
 0x495   :  { %7902 = vmatmul.mubr.msk.f32.gmra.mrb[42].mxu1 %vm579_vm2, %v1642_v25 }
 0x4c1   :  { %v10186_v58 = vpop.f32.mrb[20].mxu1 }
 0x4c2   :  { %v10188_v43 = vpop.f32.mrb[21].mxu1 }
 0x4f6   :  { %v10190_v8 = vpop.f32.mrb[22].mxu1 }
 0x4f7   :  { %v10192_v44 = vpop.f32.mrb[23].mxu1 }
 0x4fa   :  { %v10194_v46 = vpop.f32.mrb[24].mxu1 }
 0x4fb   :  { %v10196_v27 = vpop.f32.mrb[25].mxu1 }
 0x538   :  { %v10198_v48 = vpop.f32.mrb[26].mxu1 }
 0x539   :  { %12055 = vst [vmem:[#allocation10_spill] sm:$0xff] %v10198_v48  ;;  %v10200_v53 = vpop.f32.mrb[27].mxu1 }
 0x53a   :  { %12056 = vst [vmem:[#allocation11_spill] sm:$0xff] %v10200_v53 }
 0x53c   :  { %v7810_v56 = vpop.f32.mrb[28].mxu1 }
 0x53d   :  { %v1087_v57 = vadd.f32 %v7810_v56, %v9986_v7  ;;  %v1081_v6 = vpop.f32.mrb[29].mxu1 }
 0x53e   :  { %v1082_v37 = vadd.f32 %v1081_v6, %v9981_v5 }
 0x53f   :  { %v1123_v11 = vsel %vm733_vm4, %v1087_v57, -inf }
 0x540   :  { %1124 = vmax.xlane.f32.xlu1 %v1123_v11  ;;  %v7813_v14 = vpop.f32.mrb[30].mxu1  ;;  %v1120_v16 = vsel %vm733_vm4, %v1082_v37, -inf }
 0x541   :  { %v1097_v19 = vadd.f32 %v7813_v14, %v9992_v54  ;;  %v1091_v38 = vpop.f32.mrb[31].mxu1  ;;  %1121 = vmax.xlane.f32.xlu0 %v1120_v16 }
 0x542   :  { %v1092_v9 = vadd.f32 %v1091_v38, %v9998_v13 }
 0x543   :  { %v1129_v12 = vsel %vm733_vm4, %v1097_v19, -inf }
 0x544   :  { %v7816_v22 = vpop.f32.mrb[32].mxu1  ;;  %v1126_v33 = vsel %vm733_vm4, %v1092_v9, -inf }
 0x545   :  { %v1107_v23 = vadd.f32 %v7816_v22, %v10012_v21  ;;  %v1101_v24 = vpop.f32.mrb[33].mxu1  ;;  %1130 = vmax.xlane.f32.xlu0 %v1129_v12 }
 0x546   :  { %v1102_v39 = vadd.f32 %v1101_v24, %v10007_v20 }
 0x547   :  { %v1135_v28 = vsel %vm733_vm4, %v1107_v23, -inf }
 0x548   :  { %1136 = vmax.xlane.f32.xlu1 %v1135_v28  ;;  %v7819_v31 = vpop.f32.mrb[34].mxu1  ;;  %v1132_v25 = vsel %vm733_vm4, %v1102_v39, -inf }
 0x549   :  { %v1117_v35 = vadd.f32 %v7819_v31, %v10026_v30  ;;  %v1111_v17 = vpop.f32.mrb[35].mxu1  ;;  %1127 = vmax.xlane.f32.xlu0 %v1126_v33 }
 0x54a   :  { %v1112_v15 = vadd.f32 %v1111_v17, %v10021_v29 }
 0x54b   :  { %v1141_v41 = vsel %vm733_vm4, %v1117_v35, -inf }
 0x54c   :  { %1142 = vmax.xlane.f32.xlu1 %v1141_v41  ;;  %v1138_v56 = vsel %vm733_vm4, %v1112_v15, -inf }
 0x54d   :  { %1133 = vmax.xlane.f32.xlu0 %v1132_v25 }
 0x551   :  { %1139 = vmax.xlane.f32.xlu0 %v1138_v56 }
 0x55c   :  { %v10218_v6 = vpop.f32.mrb[36].mxu1 }
 0x55d   :  { %v10220_v11 = vpop.f32.mrb[37].mxu1  ;;  %9108 = vrot.lane.b32.xlu1 %v9931_v40, %s9646_s22 }
 0x560   :  { %v10224_v14 = vpop.f32.mrb[38].mxu1 }
 0x561   :  { %v10226_v16 = vpop.f32.mrb[39].mxu1 }
 0x564   :  { %v10228_v38 = vpop.f32.mrb[40].mxu1 }
 0x565   :  { %v10230_v12 = vpop.f32.mrb[41].mxu1 }
 0x567   :  { %9103 = vrot.lane.b32.xlu0 %v9925_v32, %s9646_s22 }
 0x568   :  { %v10234_v22 = vpop.f32.mrb[42].mxu1 }
 0x569   :  { %v10236_v24 = vpop.f32.mrb[43].mxu1 }
 0x5cd   :  { %v1125_v28 = vpop.xlane.xlu1 %1124 }
 0x5ce   :  { %v1145_v31 = vsub.f32 %v1087_v57, %v1125_v28  ;;  %v1122_v33 = vpop.xlane.xlu0 %1121 }
 0x5cf   :  { %v1144_v17 = vsub.f32 %v1082_v37, %v1122_v33 }
 0x5d0   :  { %v1154_v41 = vmul.f32 1.442695, %v1145_v31 }
 0x5d1   :  { %v1152_v25 = vmul.f32 1.442695, %v1144_v17 }
 0x5d2   :  { %9334 = vpow2.f32 %v1154_v41  ;;  %v1131_v56 = vpop.xlane.xlu0 %1130 }
 0x5d3   :  { %9336 = vpow2.f32 %v1152_v25  ;;  %v1147_v51 = vsub.f32 %v1097_v19, %v1131_v56 }
 0x5d5   :  { %v1158_v52 = vmul.f32 1.442695, %v1147_v51  ;;  %v1137_v47 = vpop.xlane.xlu1 %1136 }
 0x5d6   :  { %v1149_v49 = vsub.f32 %v1107_v23, %v1137_v47  ;;  %v1128_v45 = vpop.xlane.xlu0 %1127 }
 0x5d7   :  { %9338 = vpow2.f32 %v1158_v52  ;;  %v1146_v42 = vsub.f32 %v1092_v9, %v1128_v45 }
 0x5d8   :  { %v1162_v34 = vmul.f32 1.442695, %v1149_v49 }
 0x5d9   :  { %v1156_v36 = vmul.f32 1.442695, %v1146_v42  ;;  %v1143_v48 = vpop.xlane.xlu1 %1142 }
 0x5da   :  { %9340 = vpow2.f32 %v1162_v34  ;;  %v1151_v53 = vsub.f32 %v1117_v35, %v1143_v48  ;;  %v1134_v57 = vpop.xlane.xlu0 %1133 }
 0x5db   :  { %9342 = vpow2.f32 %v1156_v36  ;;  %v1148_v37 = vsub.f32 %v1102_v39, %v1134_v57 }
 0x5dc   :  { %v10238_v28 = vpop.eup %9334  ;;  %v1166_v31 = vmul.f32 1.442695, %v1151_v53 }
 0x5dd   :  { %v10240_v33 = vpop.eup %9336  ;;  %v1160_v19 = vmul.f32 1.442695, %v1148_v37  ;;  %v1171_v47 = vsel %vm733_vm4, %v10238_v28, 0.0  ;;  %v9109_v49 = vpop.permute.xlu1 %9108 }
 0x5de   :  { %9344 = vpow2.f32 %v1166_v31  ;;  %1172 = vadd.xlane.f32.xlu1 %v1171_v47  ;;  %v1140_v45 = vpop.xlane.xlu0 %1139  ;;  %v1168_v42 = vsel %vm733_vm4, %v10240_v33, 0.0  ;;  %v9111_v39 = vunpack.i.h.bf16 %v9109_v49  ;;  %v9110_v35 = vunpack.i.l.bf16 %v9109_v49 }
 0x5df   :  { %9346 = vpow2.f32 %v1160_v19  ;;  %v1150_v34 = vsub.f32 %v1112_v15, %v1140_v45  ;;  %1169 = vadd.xlane.f32.xlu0 %v1168_v42 }
 0x5e0   :  { %v8628_v57 = vpack.c.bf16 %v9111_v39, %v9110_v35 }
 0x5e1   :  { %v10246_v36 = vpop.eup %9338  ;;  %v1164_v51 = vmul.f32 1.442695, %v1150_v34 }
 0x5e2   :  { %v9104_v52 = vpop.permute.xlu0 %9103  ;;  %v1177_v48 = vsel %vm733_vm4, %v10246_v36, 0.0 }
 0x5e3   :  { %9348 = vpow2.f32 %v1164_v51  ;;  %v9106_v53 = vunpack.i.h.bf16 %v9104_v52  ;;  %v9105_v9 = vunpack.i.l.bf16 %v9104_v52  ;;  %1178 = vadd.xlane.f32.xlu1 %v1177_v48 }
 0x5e4   :  { %v10250_v23 = vpop.eup %9340 }
 0x5e5   :  { %v10252_v17 = vpop.eup %9342  ;;  %v1183_v15 = vsel %vm733_vm4, %v10250_v23, 0.0  ;;  %v8624_v41 = vpack.c.bf16 %v9106_v53, %v9105_v9 }
 0x5e6   :  { %v1174_v25 = vsel %vm733_vm4, %v10252_v17, 0.0 }
 0x5e7   :  { %1184 = vadd.xlane.f32.xlu1 %v1183_v15  ;;  %1175 = vadd.xlane.f32.xlu0 %v1174_v25 }
 0x5e8   :  { %v10258_v56 = vpop.eup %9344  ;;  %8625 = vmatprep.subr.bf16.mxu0 %v8624_v41 }
 0x5e9   :  { %v10260_v37 = vpop.eup %9346  ;;  %8627 = vmatpush3.bf16.msra.mxu0 %v8624_v41  ;;  %v1189_v31 = vsel %vm733_vm4, %v10258_v56, 0.0 }
 0x5ea   :  { %8629 = vmatprep.subr.bf16.mxu0 %v8628_v57  ;;  %v1180_v19 = vsel %vm733_vm4, %v10260_v37, 0.0 }
 0x5eb   :  { %1190 = vadd.xlane.f32.xlu1 %v1189_v31  ;;  %1181 = vadd.xlane.f32.xlu0 %v1180_v19 }
 0x5ed   :  { %v10266_v47 = vpop.eup %9348  ;;  %8631 = vmatpush3.bf16.msra.mxu0 %v8628_v57 }
 0x5ee   :  { %v1186_v45 = vsel %vm733_vm4, %v10266_v47, 0.0 }
 0x5ef   :  { %1187 = vadd.xlane.f32.xlu1 %v1186_v45 }
 0x600   :  { %9118 = vrot.lane.b32.xlu1 %v9937_v59, %s9646_s22 }
 0x601   :  { %9113 = vrot.lane.b32.xlu0 %v9933_v50, %s9646_s22 }
 0x604   :  { %9128 = vrot.lane.b32.xlu1 %v9910_v10, %s9648_s24  ;;  %v10308_v10 = vadd.f32 %v10226_v16, %v9998_v13 }
 0x605   :  { %9123 = vrot.lane.b32.xlu0 %v9900_v2, %s9648_s24  ;;  %v10304_v2 = vadd.f32 %v10218_v6, %v9986_v7 }
 0x608   :  { %9138 = vrot.lane.b32.xlu1 %v9923_v26, %s9648_s24  ;;  %v10314_v26 = vadd.f32 %v10224_v14, %v9992_v54 }
 0x609   :  { %9133 = vrot.lane.b32.xlu0 %v9914_v18, %s9648_s24 }
 0x60c   :  { %2176 = vrot.lane.b32.xlu1 %v9941_v61, %s9648_s24  ;;  %v10318_v61 = vadd.f32 %v10228_v38, %v10012_v21 }
 0x60d   :  { %2174 = vrot.lane.b32.xlu0 %v9888_v60, %s9648_s24  ;;  %v10300_v60 = vadd.f32 %v10220_v11, %v9981_v5  ;;  %v10338_v5 = vadd.f32 %v10236_v24, %v10021_v29 }
 0x60f   :  { %v1796_v18 = vsel %vm733_vm4, %v10300_v60, -inf  ;;  %v1814_v13 = vsel %vm733_vm4, %v10338_v5, -inf }
 0x610   :  { %2180 = vrot.lane.b32.xlu1 %v9953_v1, %s9648_s24  ;;  %v1799_v1 = vsel %vm733_vm4, %v10304_v2, -inf }
 0x611   :  { %2178 = vrot.lane.b32.xlu0 %v9945_v0, %s9648_s24  ;;  %v1802_v0 = vsel %vm733_vm4, %v10308_v10, -inf }
 0x614   :  { %2184 = vrot.lane.b32.xlu1 %v9964_v55, %s9648_s24  ;;  %v10330_v55 = vadd.f32 %v10234_v22, %v10026_v30 }
 0x615   :  { %2182 = vrot.lane.b32.xlu0 %v9956_v3, %s9648_s24  ;;  %v10326_v3 = vadd.f32 %v10230_v12, %v10007_v20 }
 0x616   :  { %v1817_v54 = vsel %vm733_vm4, %v10330_v55, -inf }
 0x617   :  { %v1808_v7 = vsel %vm733_vm4, %v10326_v3, -inf }
 0x618   :  { %2188 = vrot.lane.b32.xlu1 %v9974_v63, %s9648_s24  ;;  %v1811_v63 = vsel %vm733_vm4, %v10318_v61, -inf }
 0x619   :  { %2186 = vrot.lane.b32.xlu0 %v9967_v4, %s9648_s24  ;;  %v1805_v4 = vsel %vm733_vm4, %v10314_v26, -inf }
 0x638   :  { %1797 = vmax.xlane.f32.xlu0 %v1796_v18 }
 0x63c   :  { %1803 = vmax.xlane.f32.xlu0 %v1802_v0  ;;  %1800 = vmax.xlane.f32.xlu1 %v1799_v1 }
 0x640   :  { %1806 = vmax.xlane.f32.xlu0 %v1805_v4  ;;  %1812 = vmax.xlane.f32.xlu1 %v1811_v63 }
 0x644   :  { %1809 = vmax.xlane.f32.xlu0 %v1808_v7  ;;  %1818 = vmax.xlane.f32.xlu1 %v1817_v54 }
 0x648   :  { %1815 = vmax.xlane.f32.xlu0 %v1814_v13 }
 0x655   :  { %9148 = vrot.lane.b32.xlu1 %v9931_v40, %s9647_s23 }
 0x65e   :  { %9143 = vrot.lane.b32.xlu0 %v9925_v32, %s9647_s23 }
 0x66b   :  { %v1173_v20 = vpop.xlane.xlu1 %1172 }
 0x66c   :  { %v1170_v21 = vpop.xlane.xlu0 %1169 }
 0x66d   :  { %9350 = vrcp.f32 %v1170_v21 }
 0x66e   :  { %9352 = vrcp.f32 %v1173_v20 }
 0x670   :  { %v1179_v29 = vpop.xlane.xlu1 %1178 }
 0x674   :  { %v1185_v30 = vpop.xlane.xlu1 %1184  ;;  %v1176_v6 = vpop.xlane.xlu0 %1175 }
 0x675   :  { %9354 = vrcp.f32 %v1176_v6 }
 0x676   :  { %9356 = vrcp.f32 %v1179_v29 }
 0x677   :  { %v9351_v11 = vpop.eup %9350 }
 0x678   :  { %v1191_v14 = vpop.xlane.xlu1 %1190  ;;  %v1182_v16 = vpop.xlane.xlu0 %1181  ;;  %v1200_v38 = vmul.f32 %v9351_v11, %v10240_v33 }
 0x679   :  { %9358 = vrcp.f32 %v1182_v16  ;;  %v9353_v35 = vpop.eup %9352 }
 0x67a   :  { %7836 = vmatprep.mubr.msk.f32.mxu0 %vm733_vm4, %v1200_v38  ;;  %9360 = vrcp.f32 %v1185_v30  ;;  %v1201_v19 = vmul.f32 %v9353_v35, %v10238_v28 }
 0x67c   :  { %v1188_v12 = vpop.xlane.xlu1 %1187  ;;  %v9114_v22 = vpop.permute.xlu0 %9113 }
 0x67d   :  { %v9116_v24 = vunpack.i.h.bf16 %v9114_v22  ;;  %v9115_v42 = vunpack.i.l.bf16 %v9114_v22  ;;  %9362 = vrcp.f32 %v1188_v12 }
 0x67e   :  { %9364 = vrcp.f32 %v1191_v14 }
 0x67f   :  { %v8632_v34 = vpack.c.bf16 %v9116_v24, %v9115_v42  ;;  %v9355_v25 = vpop.eup %9354 }
 0x680   :  { %v9119_v49 = vpop.permute.xlu1 %9118  ;;  %v9124_v51 = vpop.permute.xlu0 %9123  ;;  %v1202_v1 = vmul.f32 %v9355_v25, %v10252_v17 }
 0x681   :  { %v9121_v52 = vunpack.i.h.bf16 %v9119_v49  ;;  %v9120_v48 = vunpack.i.l.bf16 %v9119_v49  ;;  %v9126_v53 = vunpack.i.h.bf16 %v9124_v51  ;;  %v9125_v9 = vunpack.i.l.bf16 %v9124_v51  ;;  %8633 = vmatprep.subr.bf16.mxu0 %v8632_v34  ;;  %v9357_v18 = vpop.eup %9356 }
 0x682   :  { %8635 = vmatpush3.bf16.msra.mxu0 %v8632_v34  ;;  %v1203_v54 = vmul.f32 %v9357_v18, %v10246_v36 }
 0x683   :  { %v8680_v33 = vpack.c.bf16 %v9126_v53, %v9125_v9  ;;  %v8636_v39 = vpack.c.bf16 %v9121_v52, %v9120_v48  ;;  %v9359_v4 = vpop.eup %9358 }
 0x684   :  { %v9129_v15 = vpop.permute.xlu1 %9128  ;;  %v9134_v41 = vpop.permute.xlu0 %9133  ;;  %v1204_v13 = vmul.f32 %v9359_v4, %v10260_v37 }
 0x685   :  { %v9131_v57 = vunpack.i.h.bf16 %v9129_v15  ;;  %v9130_v31 = vunpack.i.l.bf16 %v9129_v15  ;;  %8637 = vmatprep.subr.bf16.mxu0 %v8636_v39  ;;  %8682 = vmatprep.subr.msk.bf16.mxu1 %vm9892_vm3, %v8680_v33  ;;  %v9136_v63 = vunpack.i.h.bf16 %v9134_v41  ;;  %v9135_v7 = vunpack.i.l.bf16 %v9134_v41  ;;  %v9361_v28 = vpop.eup %9360 }
 0x686   :  { %8639 = vmatpush3.bf16.msra.mxu0 %v8636_v39  ;;  %8685 = vmatpush3.bf16.xpose.msk.msra.mxu1 %vm9892_vm3, %v8680_v33  ;;  %v1205_v29 = vmul.f32 %v9361_v28, %v10250_v23 }
 0x687   :  { %v8686_v45 = vpack.c.bf16 %v9131_v57, %v9130_v31  ;;  %v9363_v20 = vpop.eup %9362  ;;  %v8692_v21 = vpack.c.bf16 %v9136_v63, %v9135_v7 }
 0x688   :  { %v2175_v0 = vpop.permute.xlu0 %2174  ;;  %v9139_v17 = vpop.permute.xlu1 %9138  ;;  %v1206_v36 = vmul.f32 %v9363_v20, %v10266_v47 }
 0x689   :  { %7837 = vmatmul.mubr.msk.f32.vlgmr.msra.gmra.mrb[20].mxu0 %vm733_vm4, %v1201_v19  ;;  %8688 = vmatprep.subr.msk.bf16.mxu1 %vm9892_vm3, %v8686_v45  ;;  %v9365_v30 = vpop.eup %9364  ;;  %v9141_v6 = vunpack.i.h.bf16 %v9139_v17  ;;  %v9140_v37 = vunpack.i.l.bf16 %v9139_v17 }
 0x68a   :  { %7962 = vmatprep.mubr.msk.f32.mxu1 %vm579_vm2, %v2175_v0  ;;  %7839 = vmatprep.mubr.msk.f32.mxu0 %vm733_vm4, %v1202_v1  ;;  %v1207_v11 = vmul.f32 %v9365_v30, %v10258_v56 }
 0x68b   :  { %v8698_v14 = vpack.c.bf16 %v9141_v6, %v9140_v37 }
 0x68c   :  { %v2177_v23 = vpop.permute.xlu1 %2176  ;;  %v2179_v47 = vpop.permute.xlu0 %2178 }
 0x68d   :  { %7840 = vmatmul.mubr.msk.f32.gmra.mrb[22].mxu0 %vm733_vm4, %v1203_v54  ;;  %v6735_v54 = vld [vmem:[%s12018_s4 + $0xc0] sm:$0xff] }
 0x68e   :  { %7842 = vmatprep.mubr.msk.f32.mxu0 %vm733_vm4, %v1204_v13  ;;  %8691 = vmatpush3.bf16.xpose.msk.msra.mxu1 %vm9892_vm3, %v8686_v45 }
 0x68f   :  { %8694 = vmatprep.subr.msk.bf16.mxu1 %vm9892_vm3, %v8692_v21 }
 0x690   :  { %v2181_v16 = vpop.permute.xlu1 %2180  ;;  %v2183_v56 = vpop.permute.xlu0 %2182 }
 0x691   :  { %7843 = vmatmul.mubr.msk.f32.gmra.mrb[24].mxu0 %vm733_vm4, %v1205_v29 }
 0x692   :  { %7845 = vmatprep.mubr.msk.f32.mxu0 %vm733_vm4, %v1206_v36 }
 0x694   :  { %v2185_v38 = vpop.permute.xlu1 %2184  ;;  %v2187_v12 = vpop.permute.xlu0 %2186 }
 0x695   :  { %7846 = vmatmul.mubr.msk.f32.gmra.mrb[26].mxu0 %vm733_vm4, %v1207_v11 }
 0x696   :  { %8697 = vmatpush3.bf16.xpose.msk.msra.mxu1 %vm9892_vm3, %v8692_v21 }
 0x697   :  { %8700 = vmatprep.subr.msk.bf16.mxu1 %vm9892_vm3, %v8698_v14 }
 0x698   :  { %v2189_v22 = vpop.permute.xlu1 %2188 }
 0x69e   :  { %8703 = vmatpush3.bf16.xpose.msk.msra.mxu1 %vm9892_vm3, %v8698_v14 }
 0x6a5   :  { %7963 = vmatmul.mubr.msk.f32.vlgmr.msra.gmra.mrb[44].mxu1 %vm579_vm2, %v2177_v23 }
 0x6a6   :  { %7965 = vmatprep.mubr.msk.f32.mxu1 %vm579_vm2, %v2179_v47 }
 0x6a9   :  { %7966 = vmatmul.mubr.msk.f32.gmra.mrb[46].mxu1 %vm579_vm2, %v2181_v16 }
 0x6aa   :  { %7968 = vmatprep.mubr.msk.f32.mxu1 %vm579_vm2, %v2183_v56 }
 0x6ad   :  { %7969 = vmatmul.mubr.msk.f32.gmra.mrb[48].mxu1 %vm579_vm2, %v2185_v38 }
 0x6ae   :  { %7971 = vmatprep.mubr.msk.f32.mxu1 %vm579_vm2, %v2187_v12 }
 0x6b1   :  { %7972 = vmatmul.mubr.msk.f32.gmra.mrb[50].mxu1 %vm579_vm2, %v2189_v22 }
 0x6c5   :  { %v1798_v24 = vpop.xlane.xlu0 %1797 }
 0x6c6   :  { %v1820_v42 = vsub.f32 %v10300_v60, %v1798_v24 }
 0x6c8   :  { %v1828_v34 = vmul.f32 1.442695, %v1820_v42 }
 0x6c9   :  { %v1801_v49 = vpop.xlane.xlu1 %1800  ;;  %v1804_v51 = vpop.xlane.xlu0 %1803 }
 0x6ca   :  { %9366 = vpow2.f32 %v1828_v34  ;;  %v1821_v52 = vsub.f32 %v10304_v2, %v1801_v49  ;;  %v1822_v48 = vsub.f32 %v10308_v10, %v1804_v51 }
 0x6cc   :  { %v1830_v53 = vmul.f32 1.442695, %v1821_v52  ;;  %v1832_v9 = vmul.f32 1.442695, %v1822_v48 }
 0x6cd   :  { %v1813_v33 = vpop.xlane.xlu1 %1812  ;;  %v1807_v39 = vpop.xlane.xlu0 %1806 }
 0x6ce   :  { %9368 = vpow2.f32 %v1830_v53  ;;  %v1825_v35 = vsub.f32 %v10318_v61, %v1813_v33  ;;  %v1823_v15 = vsub.f32 %v10314_v26, %v1807_v39 }
 0x6cf   :  { %9370 = vpow2.f32 %v1832_v9 }
 0x6d0   :  { %v1834_v41 = vmul.f32 1.442695, %v1823_v15  ;;  %v1838_v60 = vmul.f32 1.442695, %v1825_v35 }
 0x6d1   :  { %v1819_v25 = vpop.xlane.xlu1 %1818  ;;  %v1810_v57 = vpop.xlane.xlu0 %1809 }
 0x6d2   :  { %v1827_v31 = vsub.f32 %v10330_v55, %v1819_v25  ;;  %v1824_v2 = vsub.f32 %v10326_v3, %v1810_v57  ;;  %9372 = vpow2.f32 %v1834_v41  ;;  %v12057_v25 = vld [vmem:[#allocation11_spill] sm:$0xff] }
 0x6d3   :  { %9374 = vpow2.f32 %v1838_v60  ;;  %v9622_v57 = vld [vmem:[%s12021_s2 + $0x8] sm:$0xff] }
 0x6d4   :  { %v10397_v10 = vpop.eup %9366  ;;  %v1836_v19 = vmul.f32 1.442695, %v1824_v2  ;;  %v1842_v45 = vmul.f32 1.442695, %v1827_v31 }
 0x6d5   :  { %v1816_v18 = vpop.xlane.xlu0 %1815  ;;  %v1844_v61 = vsel %vm733_vm4, %v10397_v10, 0.0  ;;  %v9149_v38 = vpop.permute.xlu1 %9148 }
 0x6d6   :  { %v1826_v26 = vsub.f32 %v10338_v5, %v1816_v18  ;;  %1845 = vadd.xlane.f32.xlu0 %v1844_v61  ;;  %9376 = vpow2.f32 %v1836_v19  ;;  %v6736_v5 = vld [vmem:[%s12018_s4 + $0xc8] sm:$0xff]  ;;  %v9151_v51 = vunpack.i.h.bf16 %v9149_v38  ;;  %v9150_v52 = vunpack.i.l.bf16 %v9149_v38  ;;  %v9627_v38 = vld [vmem:[%s12021_s2 + $0x20] sm:$0xff] }
 0x6d7   :  { %9378 = vpow2.f32 %v1842_v45  ;;  %7848 = vmatprep.subr.mxu0 %v6736_v5  ;;  %v12058_v45 = vld [vmem:[#allocation10_spill] sm:$0xff] }
 0x6d8   :  { %v10402_v0 = vpop.eup %9368  ;;  %v1840_v3 = vmul.f32 1.442695, %v1826_v26  ;;  %7849 = vmatpush3.msra.mxu0 %v6736_v5  ;;  %v8668_v9 = vpack.c.bf16 %v9151_v51, %v9150_v52 }
 0x6d9   :  { %v10404_v1 = vpop.eup %9370  ;;  %v1847_v55 = vsel %vm733_vm4, %v10402_v0, 0.0  ;;  %7862 = vmatprep.subr.mxu0 %v6735_v54  ;;  %v9144_v6 = vpop.permute.xlu0 %9143 }
 0x6da   :  { %1848 = vadd.xlane.f32.xlu1 %v1847_v55  ;;  %v1850_v4 = vsel %vm733_vm4, %v10404_v1, 0.0  ;;  %9380 = vpow2.f32 %v1840_v3  ;;  %v9146_v37 = vunpack.i.h.bf16 %v9144_v6  ;;  %v9145_v11 = vunpack.i.l.bf16 %v9144_v6 }
 0x6db   :  { %1851 = vadd.xlane.f32.xlu0 %v1850_v4 }
 0x6dc   :  { %v10413_v63 = vpop.eup %9372  ;;  %v8664_v47 = vpack.c.bf16 %v9146_v37, %v9145_v11  ;;  %v9626_v11 = vld [vmem:[%s12021_s2 + $0x28] sm:$0xff] }
 0x6dd   :  { %v1853_v7 = vsel %vm733_vm4, %v10413_v63, 0.0  ;;  %v10420_v28 = vpop.eup %9374 }
 0x6de   :  { %1854 = vadd.xlane.f32.xlu1 %v1853_v7  ;;  %v1859_v20 = vsel %vm733_vm4, %v10420_v28, 0.0 }
 0x6e0   :  { %v10422_v13 = vpop.eup %9376 }
 0x6e1   :  { %v1856_v21 = vsel %vm733_vm4, %v10422_v13, 0.0  ;;  %v10428_v17 = vpop.eup %9378 }
 0x6e2   :  { %1860 = vadd.xlane.f32.xlu1 %v1859_v20  ;;  %1857 = vadd.xlane.f32.xlu0 %v1856_v21  ;;  %v1865_v29 = vsel %vm733_vm4, %v10428_v17, 0.0  ;;  %v9625_v21 = vld [vmem:[%s12021_s2 + $0x18] sm:$0xff] }
 0x6e4   :  { %v10432_v30 = vpop.eup %9380 }
 0x6e5   :  { %v1862_v36 = vsel %vm733_vm4, %v10432_v30, 0.0 }
 0x6e6   :  { %1866 = vadd.xlane.f32.xlu1 %v1865_v29 }
 0x6ea   :  { %1863 = vadd.xlane.f32.xlu1 %v1862_v36 }
 0x6f8   :  { %9153 = vrot.lane.b32.xlu0 %v9933_v50, %s9647_s23 }
 0x6fb   :  { %9158 = vrot.lane.b32.xlu1 %v9937_v59, %s9647_s23 }
 0x75c   :  { %v7838_v14 = vpop.f32.mrb[20].mxu0 }
 0x75d   :  { %v1330_v23 = vpop.f32.mrb[21].mxu0 }
 0x75e   :  { %7850 = vmatprep.mubr.msk.f32.mxu0 %vm579_vm2, %v1330_v23 }
 0x75f   :  { %7851 = vmatmul.mubr.msk.f32.vlgmr.msra.gmra.mrb[28].mxu0 %vm579_vm2, %v7838_v14 }
 0x760   :  { %7863 = vmatpush3.msra.mxu0 %v6735_v54  ;;  %v7841_v16 = vpop.f32.mrb[22].mxu0 }
 0x761   :  { %8665 = vmatprep.subr.bf16.mxu0 %v8664_v47  ;;  %v1340_v56 = vpop.f32.mrb[23].mxu0 }
 0x762   :  { %7853 = vmatprep.mubr.msk.f32.mxu0 %vm579_vm2, %v1340_v56 }
 0x763   :  { %7854 = vmatmul.mubr.msk.f32.gmra.mrb[30].mxu0 %vm579_vm2, %v7841_v16  ;;  %v1846_v24 = vpop.xlane.xlu0 %1845 }
 0x764   :  { %v7844_v12 = vpop.f32.mrb[24].mxu0  ;;  %9382 = vrcp.f32 %v1846_v24 }
 0x765   :  { %v1350_v22 = vpop.f32.mrb[25].mxu0 }
 0x766   :  { %7856 = vmatprep.mubr.msk.f32.mxu0 %vm579_vm2, %v1350_v22 }
 0x767   :  { %v1849_v42 = vpop.xlane.xlu1 %1848  ;;  %7857 = vmatmul.mubr.msk.f32.gmra.mrb[32].mxu0 %vm579_vm2, %v7844_v12 }
 0x768   :  { %v7847_v34 = vpop.f32.mrb[26].mxu0  ;;  %v1852_v48 = vpop.xlane.xlu0 %1851  ;;  %9384 = vrcp.f32 %v1849_v42 }
 0x769   :  { %v1360_v49 = vpop.f32.mrb[27].mxu0  ;;  %9386 = vrcp.f32 %v1852_v48 }
 0x76a   :  { %7859 = vmatprep.mubr.msk.f32.mxu0 %vm579_vm2, %v1360_v49 }
 0x76b   :  { %7860 = vmatmul.mubr.msk.f32.gmra.mrb[34].mxu0 %vm579_vm2, %v7847_v34  ;;  %v1855_v53 = vpop.xlane.xlu1 %1854 }
 0x76c   :  { %7864 = vmatprep.mubr.msk.f32.mxu0 %vm579_vm2, %v10188_v43  ;;  %9388 = vrcp.f32 %v1855_v53 }
 0x76f   :  { %7865 = vmatmul.mubr.msk.f32.vlgmr.msra.gmra.mrb[28].mxu0 %vm579_vm2, %v10186_v58  ;;  %v1861_v33 = vpop.xlane.xlu1 %1860  ;;  %v1858_v39 = vpop.xlane.xlu0 %1857 }
 0x770   :  { %8667 = vmatpush3.bf16.msra.mxu0 %v8664_v47  ;;  %7867 = vmatprep.mubr.msk.f32.mxu0 %vm579_vm2, %v10192_v44  ;;  %v9383_v58 = vpop.eup %9382  ;;  %9390 = vrcp.f32 %v1858_v39 }
 0x771   :  { %8669 = vmatprep.subr.bf16.mxu0 %v8668_v9  ;;  %v1876_v19 = vmul.f32 %v9383_v58, %v10397_v10  ;;  %9392 = vrcp.f32 %v1861_v33  ;;  %v9624_v10 = vld [vmem:[%s12021_s2 + $0x10] sm:$0xff] }
 0x772   :  { %v9385_v20 = vpop.eup %9384 }
 0x773   :  { %7868 = vmatmul.mubr.msk.f32.gmra.mrb[30].mxu0 %vm579_vm2, %v10190_v8  ;;  %v1867_v35 = vpop.xlane.xlu1 %1866  ;;  %v9154_v15 = vpop.permute.xlu0 %9153  ;;  %v1877_v47 = vmul.f32 %v9385_v20, %v10402_v0  ;;  %v9628_v0 = vld [vmem:[%s12021_s2 + $0x38] sm:$0xff] }
 0x774   :  { %8671 = vmatpush3.bf16.msra.mxu0 %v8668_v9  ;;  %7870 = vmatprep.mubr.msk.f32.mxu0 %vm579_vm2, %v10196_v27  ;;  %v9156_v43 = vunpack.i.h.bf16 %v9154_v15  ;;  %v9155_v41 = vunpack.i.l.bf16 %v9154_v15  ;;  %v9387_v37 = vpop.eup %9386 }
 0x775   :  { %v1878_v42 = vmul.f32 %v9387_v37, %v10404_v1  ;;  %v9629_v1 = vld [vmem:[%s12021_s2 + $0x30] sm:$0xff] }
 0x776   :  { %v8672_v60 = vpack.c.bf16 %v9156_v43, %v9155_v41  ;;  %v9389_v56 = vpop.eup %9388 }
 0x777   :  { %7871 = vmatmul.mubr.msk.f32.gmra.mrb[32].mxu0 %vm579_vm2, %v10194_v46  ;;  %v1864_v44 = vpop.xlane.xlu1 %1863  ;;  %v9623_v46 = vld [vmem:[%s12021_s2] sm:$0xff]  ;;  %v1879_v48 = vmul.f32 %v9389_v56, %v10413_v63 }
 0x778   :  { %7873 = vmatprep.mubr.msk.f32.mxu0 %vm579_vm2, %v12057_v25  ;;  %v7964_v8 = vpop.f32.mrb[44].mxu1  ;;  %8673 = vmatprep.subr.bf16.mxu0 %v8672_v60  ;;  %9394 = vrcp.f32 %v1864_v44 }
 0x779   :  { %v10465_v27 = vadd.f32 %v9622_v57, %v7964_v8  ;;  %v2304_v31 = vpop.f32.mrb[45].mxu1  ;;  %8675 = vmatpush3.bf16.msra.mxu0 %v8672_v60  ;;  %9396 = vrcp.f32 %v1867_v35 }
 0x77a   :  { %v10470_v2 = vadd.f32 %v9623_v46, %v2304_v31  ;;  %v9391_v34 = vpop.eup %9390 }
 0x77b   :  { %7874 = vmatmul.mubr.msk.f32.gmra.mrb[34].mxu0 %vm579_vm2, %v12058_v45  ;;  %v2346_v18 = vsel %vm733_vm4, %v10465_v27, -inf  ;;  %v9159_v61 = vpop.permute.xlu1 %9158  ;;  %v9393_v53 = vpop.eup %9392  ;;  %v1880_v39 = vmul.f32 %v9391_v34, %v10422_v13 }
 0x77c   :  { %2347 = vmax.xlane.f32.xlu1 %v2346_v18  ;;  %7920 = vmatprep.mubr.msk.f32.mxu0 %vm733_vm4, %v1876_v19  ;;  %v7967_v26 = vpop.f32.mrb[46].mxu1  ;;  %v2343_v3 = vsel %vm733_vm4, %v10470_v2, -inf  ;;  %v9161_v55 = vunpack.i.h.bf16 %v9159_v61  ;;  %v9160_v4 = vunpack.i.l.bf16 %v9159_v61  ;;  %v1881_v63 = vmul.f32 %v9393_v53, %v10420_v28  ;;  %v6737_v28 = vld [vmem:[%s12018_s4 + $0xd0] sm:$0xff] }
 0x77d   :  { %v2314_v5 = vpop.f32.mrb[47].mxu1  ;;  %2344 = vmax.xlane.f32.xlu0 %v2343_v3  ;;  %v10488_v29 = vadd.f32 %v9625_v21, %v7967_v26 }
 0x77e   :  { %v10483_v7 = vadd.f32 %v9624_v10, %v2314_v5  ;;  %v8676_v54 = vpack.c.bf16 %v9161_v55, %v9160_v4 }
 0x77f   :  { %v2352_v24 = vsel %vm733_vm4, %v10488_v29, -inf }
 0x780   :  { %v7970_v36 = vpop.f32.mrb[48].mxu1  ;;  %v2349_v6 = vsel %vm733_vm4, %v10483_v7, -inf  ;;  %8677 = vmatprep.subr.bf16.mxu0 %v8676_v54 }
 0x781   :  { %v10495_v14 = vadd.f32 %v9626_v11, %v7970_v36  ;;  %v2324_v23 = vpop.f32.mrb[49].mxu1  ;;  %2350 = vmax.xlane.f32.xlu0 %v2349_v6  ;;  %8679 = vmatpush3.bf16.msra.mxu0 %v8676_v54 }
 0x782   :  { %v10503_v12 = vadd.f32 %v9627_v38, %v2324_v23  ;;  %v9395_v35 = vpop.eup %9394  ;;  %7932 = vmatprep.subr.mxu0 %v6737_v28 }
 0x783   :  { %v2358_v16 = vsel %vm733_vm4, %v10495_v14, -inf  ;;  %v9397_v15 = vpop.eup %9396  ;;  %v1882_v41 = vmul.f32 %v9395_v35, %v10432_v30 }
 0x784   :  { %2359 = vmax.xlane.f32.xlu1 %v2358_v16  ;;  %v7973_v22 = vpop.f32.mrb[50].mxu1  ;;  %7921 = vmatmul.mubr.msk.f32.vlgmr.msra.gmra.mrb[36].mxu0 %vm733_vm4, %v1877_v47  ;;  %v2355_v33 = vsel %vm733_vm4, %v10503_v12, -inf  ;;  %v1883_v13 = vmul.f32 %v9397_v15, %v10428_v17 }
 0x785   :  { %v2340_v49 = vadd.f32 %v9628_v0, %v7973_v22  ;;  %v2334_v51 = vpop.f32.mrb[51].mxu1  ;;  %2353 = vmax.xlane.f32.xlu0 %v2352_v24  ;;  %7923 = vmatprep.mubr.msk.f32.mxu0 %vm733_vm4, %v1878_v42 }
 0x786   :  { %v2335_v9 = vadd.f32 %v9629_v1, %v2334_v51  ;;  %7933 = vmatpush3.msra.mxu0 %v6737_v28 }
 0x787   :  { %v2364_v52 = vsel %vm733_vm4, %v2340_v49, -inf }
 0x788   :  { %2365 = vmax.xlane.f32.xlu1 %v2364_v52  ;;  %7924 = vmatmul.mubr.msk.f32.gmra.mrb[38].mxu0 %vm733_vm4, %v1879_v48  ;;  %v2361_v43 = vsel %vm733_vm4, %v2335_v9, -inf }
 0x789   :  { %2356 = vmax.xlane.f32.xlu0 %v2355_v33  ;;  %7926 = vmatprep.mubr.msk.f32.mxu0 %vm733_vm4, %v1880_v39 }
 0x78c   :  { %7927 = vmatmul.mubr.msk.f32.gmra.mrb[40].mxu0 %vm733_vm4, %v1881_v63 }
 0x78d   :  { %2362 = vmax.xlane.f32.xlu0 %v2361_v43  ;;  %7929 = vmatprep.mubr.msk.f32.mxu0 %vm733_vm4, %v1882_v41 }
 0x790   :  { %7930 = vmatmul.mubr.msk.f32.gmra.mrb[42].mxu0 %vm733_vm4, %v1883_v13 }
 0x799   :  { %9168 = vrot.lane.b32.xlu1 %v9931_v40, %s9648_s24 }
 0x7a3   :  { %9163 = vrot.lane.b32.xlu0 %v9925_v32, %s9648_s24 }
 0x809   :  { %v2348_v30 = vpop.xlane.xlu1 %2347 }
 0x80a   :  { %v2368_v58 = vsub.f32 %v10465_v27, %v2348_v30  ;;  %v2345_v60 = vpop.xlane.xlu0 %2344 }
 0x80b   :  { %v2367_v17 = vsub.f32 %v10470_v2, %v2345_v60 }
 0x80c   :  { %v2377_v44 = vmul.f32 1.442695, %v2368_v58 }
 0x80d   :  { %v2375_v25 = vmul.f32 1.442695, %v2367_v17 }
 0x80e   :  { %9398 = vpow2.f32 %v2377_v44  ;;  %v2351_v8 = vpop.xlane.xlu0 %2350 }
 0x80f   :  { %9400 = vpow2.f32 %v2375_v25  ;;  %v2369_v40 = vsub.f32 %v10483_v7, %v2351_v8 }
 0x811   :  { %v2379_v57 = vmul.f32 1.442695, %v2369_v40  ;;  %v2360_v31 = vpop.xlane.xlu1 %2359 }
 0x812   :  { %v2372_v46 = vsub.f32 %v10495_v14, %v2360_v31  ;;  %v2354_v19 = vpop.xlane.xlu0 %2353 }
 0x813   :  { %9402 = vpow2.f32 %v2379_v57  ;;  %v2370_v32 = vsub.f32 %v10488_v29, %v2354_v19 }
 0x814   :  { %v2385_v45 = vmul.f32 1.442695, %v2372_v46 }
 0x815   :  { %v2381_v27 = vmul.f32 1.442695, %v2370_v32  ;;  %v2366_v18 = vpop.xlane.xlu1 %2365  ;;  %v6738_v32 = vld [vmem:[%s12018_s4 + $0xd8] sm:$0xff] }
 0x816   :  { %v2374_v61 = vsub.f32 %v2340_v49, %v2366_v18  ;;  %v2357_v2 = vpop.xlane.xlu0 %2356 }
 0x817   :  { %9404 = vpow2.f32 %v2381_v27  ;;  %v2371_v26 = vsub.f32 %v10503_v12, %v2357_v2 }
 0x818   :  { %v10543_v3 = vpop.eup %9398  ;;  %9406 = vpow2.f32 %v2385_v45  ;;  %v2389_v4 = vmul.f32 1.442695, %v2374_v61 }
 0x819   :  { %v10545_v55 = vpop.eup %9400  ;;  %v2383_v5 = vmul.f32 1.442695, %v2371_v26  ;;  %v2394_v10 = vsel %vm733_vm4, %v10543_v3, 0.0  ;;  %v9169_v0 = vpop.permute.xlu1 %9168 }
 0x81a   :  { %2395 = vadd.xlane.f32.xlu1 %v2394_v10  ;;  %v2363_v7 = vpop.xlane.xlu0 %2362  ;;  %v2391_v54 = vsel %vm733_vm4, %v10545_v55, 0.0  ;;  %v9171_v49 = vunpack.i.h.bf16 %v9169_v0  ;;  %v9170_v51 = vunpack.i.l.bf16 %v9169_v0 }
 0x81b   :  { %9408 = vpow2.f32 %v2383_v5  ;;  %v2373_v20 = vsub.f32 %v2335_v9, %v2363_v7  ;;  %2392 = vadd.xlane.f32.xlu0 %v2391_v54 }
 0x81c   :  { %9410 = vpow2.f32 %v2389_v4  ;;  %v8708_v53 = vpack.c.bf16 %v9171_v49, %v9170_v51 }
 0x81d   :  { %v10551_v21 = vpop.eup %9402  ;;  %v2387_v29 = vmul.f32 1.442695, %v2373_v20 }
 0x81e   :  { %v9164_v36 = vpop.permute.xlu0 %9163  ;;  %v2397_v6 = vsel %vm733_vm4, %v10551_v21, 0.0 }
 0x81f   :  { %v9166_v37 = vunpack.i.h.bf16 %v9164_v36  ;;  %v9165_v11 = vunpack.i.l.bf16 %v9164_v36  ;;  %2398 = vadd.xlane.f32.xlu0 %v2397_v6  ;;  %9412 = vpow2.f32 %v2387_v29 }
 0x821   :  { %v10555_v14 = vpop.eup %9404  ;;  %v8704_v23 = vpack.c.bf16 %v9166_v37, %v9165_v11 }
 0x822   :  { %v2400_v47 = vsel %vm733_vm4, %v10555_v14, 0.0  ;;  %v10559_v16 = vpop.eup %9406 }
 0x823   :  { %2401 = vadd.xlane.f32.xlu1 %v2400_v47  ;;  %8705 = vmatprep.subr.bf16.mxu0 %v8704_v23  ;;  %v2406_v38 = vsel %vm733_vm4, %v10559_v16, 0.0 }
 0x825   :  { %v10561_v56 = vpop.eup %9408 }
 0x826   :  { %v2403_v12 = vsel %vm733_vm4, %v10561_v56, 0.0  ;;  %v10567_v22 = vpop.eup %9410 }
 0x827   :  { %2407 = vadd.xlane.f32.xlu1 %v2406_v38  ;;  %2404 = vadd.xlane.f32.xlu0 %v2403_v12  ;;  %v2412_v24 = vsel %vm733_vm4, %v10567_v22, 0.0  ;;  %v12059_v12 = vld [vmem:[#allocation3_spill] sm:$0xff] }
 0x829   :  { %v10571_v42 = vpop.eup %9412 }
 0x82a   :  { %v2409_v34 = vsel %vm733_vm4, %v10571_v42, 0.0 }
 0x82b   :  { %2413 = vadd.xlane.f32.xlu1 %v2412_v24  ;;  %v12060_v24 = vld [vmem:[#allocation2_spill] sm:$0xff] }
 0x82f   :  { %2410 = vadd.xlane.f32.xlu1 %v2409_v34 }
 0x83d   :  { %9173 = vrot.lane.b32.xlu0 %v9933_v50, %s9648_s24 }
 0x840   :  { %9178 = vrot.lane.b32.xlu1 %v9937_v59, %s9648_s24 }
 0x857   :  { %v7922_v52 = vpop.f32.mrb[36].mxu0 }
 0x858   :  { %v1998_v48 = vpop.f32.mrb[37].mxu0 }
 0x859   :  { %7934 = vmatprep.mubr.msk.f32.mxu0 %vm579_vm2, %v1998_v48 }
 0x85a   :  { %7935 = vmatmul.mubr.msk.f32.vlgmr.msra.gmra.mrb[28].mxu0 %vm579_vm2, %v7922_v52 }
 0x85b   :  { %8707 = vmatpush3.bf16.msra.mxu0 %v8704_v23  ;;  %v7925_v1 = vpop.f32.mrb[38].mxu0  ;;  %v6897_v23 = vld [vmem:[%s12020_s5 + $0x6] ss:$0 sm:$0xff] }
 0x85c   :  { %8709 = vmatprep.subr.bf16.mxu0 %v8708_v53  ;;  %v2008_v9 = vpop.f32.mrb[39].mxu0 }
 0x85d   :  { %7937 = vmatprep.mubr.msk.f32.mxu0 %vm579_vm2, %v2008_v9 }
 0x85e   :  { %7938 = vmatmul.mubr.msk.f32.gmra.mrb[30].mxu0 %vm579_vm2, %v7925_v1 }
 0x85f   :  { %8711 = vmatpush3.bf16.msra.mxu0 %v8708_v53  ;;  %v7928_v50 = vpop.f32.mrb[40].mxu0  ;;  %v12061_v53 = vld [vmem:[#allocation4_spill] sm:$0xff] }
 0x860   :  { %v2018_v59 = vpop.f32.mrb[41].mxu0 }
 0x861   :  { %7940 = vmatprep.mubr.msk.f32.mxu0 %vm579_vm2, %v2018_v59 }
 0x862   :  { %7941 = vmatmul.mubr.msk.f32.gmra.mrb[32].mxu0 %vm579_vm2, %v7928_v50 }
 0x863   :  { %v7931_v33 = vpop.f32.mrb[42].mxu0 }
 0x864   :  { %v2028_v39 = vpop.f32.mrb[43].mxu0 }
 0x865   :  { %7943 = vmatprep.mubr.msk.f32.mxu0 %vm579_vm2, %v2028_v39  ;;  %v12062_v39 = vld [vmem:[#allocation5_spill] sm:$0xff] }
 0x866   :  { %7944 = vmatmul.mubr.msk.f32.gmra.mrb[34].mxu0 %vm579_vm2, %v7931_v33 }
 0x8a7   :  { %v2396_v63 = vpop.xlane.xlu1 %2395 }
 0x8a8   :  { %v2393_v35 = vpop.xlane.xlu0 %2392 }
 0x8a9   :  { %9414 = vrcp.f32 %v2393_v35 }
 0x8aa   :  { %9416 = vrcp.f32 %v2396_v63 }
 0x8ac   :  { %v2399_v15 = vpop.xlane.xlu0 %2398 }
 0x8ad   :  { %9418 = vrcp.f32 %v2399_v15  ;;  %v12063_v15 = vld [vmem:[#allocation7_spill] sm:$0xff] }
 0x8b0   :  { %v2402_v43 = vpop.xlane.xlu1 %2401 }
 0x8b1   :  { %9420 = vrcp.f32 %v2402_v43 }
 0x8b3   :  { %v9415_v41 = vpop.eup %9414 }
 0x8b4   :  { %v2408_v13 = vpop.xlane.xlu1 %2407  ;;  %v2405_v28 = vpop.xlane.xlu0 %2404  ;;  %v2423_v30 = vmul.f32 %v9415_v41, %v10545_v55 }
 0x8b5   :  { %9422 = vrcp.f32 %v2405_v28  ;;  %v9417_v19 = vpop.eup %9416 }
 0x8b6   :  { %7990 = vmatprep.mubr.msk.f32.mxu0 %vm733_vm4, %v2423_v30  ;;  %9424 = vrcp.f32 %v2408_v13  ;;  %v2424_v27 = vmul.f32 %v9417_v19, %v10543_v3 }
 0x8b7   :  { %v9419_v45 = vpop.eup %9418 }
 0x8b8   :  { %v2414_v58 = vpop.xlane.xlu1 %2413  ;;  %v9174_v60 = vpop.permute.xlu0 %9173  ;;  %v2425_v61 = vmul.f32 %v9419_v45, %v10551_v21 }
 0x8b9   :  { %v9176_v17 = vunpack.i.h.bf16 %v9174_v60  ;;  %v9175_v44 = vunpack.i.l.bf16 %v9174_v60 }
 0x8bb   :  { %v8712_v25 = vpack.c.bf16 %v9176_v17, %v9175_v44  ;;  %v9421_v18 = vpop.eup %9420 }
 0x8bc   :  { %v2411_v8 = vpop.xlane.xlu1 %2410  ;;  %v2426_v26 = vmul.f32 %v9421_v18, %v10555_v14 }
 0x8bd   :  { %8713 = vmatprep.subr.bf16.mxu0 %v8712_v25  ;;  %9426 = vrcp.f32 %v2411_v8 }
 0x8be   :  { %8715 = vmatpush3.bf16.msra.mxu0 %v8712_v25  ;;  %9428 = vrcp.f32 %v2414_v58  ;;  %v12064_v58 = vld [vmem:[#allocation6_spill] sm:$0xff]  ;;  %v12065_v25 = vld [vmem:[#allocation9_spill] sm:$0xff] }
 0x8bf   :  { %v9423_v2 = vpop.eup %9422 }
 0x8c0   :  { %v9179_v40 = vpop.permute.xlu1 %9178  ;;  %v9425_v55 = vpop.eup %9424  ;;  %v2427_v4 = vmul.f32 %v9423_v2, %v10561_v56 }
 0x8c1   :  { %v9181_v57 = vunpack.i.h.bf16 %v9179_v40  ;;  %v9180_v31 = vunpack.i.l.bf16 %v9179_v40  ;;  %v2428_v3 = vmul.f32 %v9425_v55, %v10559_v16 }
 0x8c3   :  { %v8716_v46 = vpack.c.bf16 %v9181_v57, %v9180_v31  ;;  %v12066_v57 = vld [vmem:[#allocation8_spill] sm:$0xff] }
 0x8c5   :  { %8717 = vmatprep.subr.bf16.mxu0 %v8716_v46 }
 0x8c6   :  { %8719 = vmatpush3.bf16.msra.mxu0 %v8716_v46 }
 0x8c7   :  { %8002 = vmatprep.subr.mxu0 %v6738_v32  ;;  %v9427_v5 = vpop.eup %9426 }
 0x8c8   :  { %v9429_v10 = vpop.eup %9428  ;;  %v2429_v7 = vmul.f32 %v9427_v5, %v10571_v42 }
 0x8c9   :  { %7991 = vmatmul.mubr.msk.f32.vlgmr.msra.gmra.mrb[44].mxu0 %vm733_vm4, %v2424_v27  ;;  %v2430_v54 = vmul.f32 %v9429_v10, %v10567_v22 }
 0x8ca   :  { %7993 = vmatprep.mubr.msk.f32.mxu0 %vm733_vm4, %v2425_v61  ;;  %8003 = vmatpush3.msra.mxu0 %v6738_v32 }
 0x8cd   :  { %7994 = vmatmul.mubr.msk.f32.gmra.mrb[46].mxu0 %vm733_vm4, %v2426_v26 }
 0x8ce   :  { %7996 = vmatprep.mubr.msk.f32.mxu0 %vm733_vm4, %v2427_v4 }
 0x8d1   :  { %7997 = vmatmul.mubr.msk.f32.gmra.mrb[48].mxu0 %vm733_vm4, %v2428_v3 }
 0x8d2   :  { %7999 = vmatprep.mubr.msk.f32.mxu0 %vm733_vm4, %v2429_v7 }
 0x8d5   :  { %8000 = vmatmul.mubr.msk.f32.gmra.mrb[50].mxu0 %vm733_vm4, %v2430_v54 }
 0x99c   :  { %v7992_v20 = vpop.f32.mrb[44].mxu0 }
 0x99d   :  { %v2545_v21 = vpop.f32.mrb[45].mxu0 }
 0x99e   :  { %8004 = vmatprep.mubr.msk.f32.mxu0 %vm579_vm2, %v2545_v21 }
 0x99f   :  { %8005 = vmatmul.mubr.msk.f32.vlgmr.msra.gmra.mrb[28].mxu0 %vm579_vm2, %v7992_v20 }
 0x9a0   :  { %v7995_v29 = vpop.f32.mrb[46].mxu0 }
 0x9a1   :  { %v2555_v36 = vpop.f32.mrb[47].mxu0 }
 0x9a2   :  { %8007 = vmatprep.mubr.msk.f32.mxu0 %vm579_vm2, %v2555_v36 }
 0x9a3   :  { %8008 = vmatmul.mubr.msk.f32.gmra.mrb[30].mxu0 %vm579_vm2, %v7995_v29 }
 0x9a4   :  { %v7998_v6 = vpop.f32.mrb[48].mxu0 }
 0x9a5   :  { %v2565_v37 = vpop.f32.mrb[49].mxu0 }
 0x9a6   :  { %8010 = vmatprep.mubr.msk.f32.mxu0 %vm579_vm2, %v2565_v37 }
 0x9a7   :  { %8011 = vmatmul.mubr.msk.f32.gmra.mrb[32].mxu0 %vm579_vm2, %v7998_v6 }
 0x9a8   :  { %v8001_v11 = vpop.f32.mrb[50].mxu0 }
 0x9a9   :  { %v2575_v14 = vpop.f32.mrb[51].mxu0 }
 0x9aa   :  { %8013 = vmatprep.mubr.msk.f32.mxu0 %vm579_vm2, %v2575_v14 }
 0x9ab   :  { %8014 = vmatmul.mubr.msk.f32.gmra.mrb[34].mxu0 %vm579_vm2, %v8001_v11 }
 0xa72   :  { %v8006_v47 = vpop.f32.mrb[28].mxu0 }
 0xa73   :  { %v2730_v16 = vadd.f32 %v8006_v47, %v6897_v23  ;;  %v2674_v56 = vpop.f32.mrb[29].mxu0 }
 0xa74   :  { %v2729_v38 = vadd.f32 %v6897_v23, %v2674_v56 }
 0xa75   :  { %v2738_v22 = vadd.f32 %v2730_v16, %v12059_v12 }
 0xa76   :  { %v2737_v42 = vadd.f32 %v2729_v38, %v12060_v24  ;;  %v8009_v34 = vpop.f32.mrb[30].mxu0 }
 0xa77   :  { %v2732_v0 = vadd.f32 %v8009_v34, %v6897_v23  ;;  %v2684_v49 = vpop.f32.mrb[31].mxu0  ;;  %v2752_v51 = vsel %vm223_vm1, %v2738_v22, 0.0 }
 0xa78   :  { %v2731_v52 = vadd.f32 %v6897_v23, %v2684_v49  ;;  %2753 = vadd.xlane.f32.xlu1 %v2752_v51  ;;  %v2749_v48 = vsel %vm223_vm1, %v2737_v42, 0.0 }
 0xa79   :  { %v2740_v1 = vadd.f32 %v2732_v0, %v12061_v53  ;;  %2750 = vadd.xlane.f32.xlu0 %v2749_v48 }
 0xa7a   :  { %v8012_v9 = vpop.f32.mrb[32].mxu0  ;;  %v2739_v35 = vadd.f32 %v2731_v52, %v12062_v39  ;;  %v2884_v39 = vld [vmem:[%s12022_s6 + $0x10] sm:$0xff] }
 0xa7b   :  { %v2734_v50 = vadd.f32 %v8012_v9, %v6897_v23  ;;  %v2694_v59 = vpop.f32.mrb[33].mxu0  ;;  %v2758_v33 = vsel %vm223_vm1, %v2740_v1, 0.0 }
 0xa7c   :  { %v2733_v63 = vadd.f32 %v6897_v23, %v2694_v59  ;;  %v2755_v44 = vsel %vm223_vm1, %v2739_v35, 0.0  ;;  %v2883_v59 = vld [vmem:[%s12022_s6 + $0x8] sm:$0xff] }
 0xa7d   :  { %v2742_v43 = vadd.f32 %v2734_v50, %v12063_v15  ;;  %2759 = vadd.xlane.f32.xlu0 %v2758_v33  ;;  %v2882_v50 = vld [vmem:[%s12022_s6] sm:$0xff] }
 0xa7e   :  { %v8015_v41 = vpop.f32.mrb[34].mxu0  ;;  %v2741_v60 = vadd.f32 %v2733_v63, %v12064_v58  ;;  %v8720_v33 = vpack.c.bf16 %v2883_v59, %v2882_v50  ;;  %v3030_v15 = vld [vmem:[%s12023_s8] sm:$0xff]  ;;  %v3036_v50 = vld [vmem:[%s12023_s8 + $0x30] sm:$0xff]  ;;  %v3037_v59 = vld [vmem:[%s12023_s8 + $0x38] sm:$0xff] }
 0xa7f   :  { %v2736_v13 = vadd.f32 %v8015_v41, %v6897_v23  ;;  %v2704_v28 = vpop.f32.mrb[35].mxu0  ;;  %v2764_v30 = vsel %vm223_vm1, %v2742_v43, 0.0 }
 0xa80   :  { %v2735_v17 = vadd.f32 %v6897_v23, %v2704_v28  ;;  %2765 = vadd.xlane.f32.xlu1 %v2764_v30  ;;  %v2761_v46 = vsel %vm223_vm1, %v2741_v60, 0.0  ;;  %8721 = vmatprep.subr.bf16.mxu1 %v8720_v33 }
 0xa81   :  { %v2744_v8 = vadd.f32 %v2736_v13, %v12065_v25  ;;  %2756 = vadd.xlane.f32.xlu0 %v2755_v44  ;;  %8723 = vmatpush3.bf16.msra.mxu1 %v8720_v33 }
 0xa82   :  { %v2743_v31 = vadd.f32 %v2735_v17, %v12066_v57 }
 0xa83   :  { %v2770_v40 = vsel %vm223_vm1, %v2744_v8, 0.0 }
 0xa84   :  { %2771 = vadd.xlane.f32.xlu1 %v2770_v40  ;;  %v2767_v19 = vsel %vm223_vm1, %v2743_v31, 0.0 }
 0xa85   :  { %2762 = vadd.xlane.f32.xlu0 %v2761_v46 }
 0xa89   :  { %2768 = vadd.xlane.f32.xlu0 %v2767_v19 }
 0xb05   :  { %v2754_v32 = vpop.xlane.xlu1 %2753 }
 0xb06   :  { %v2775_v45 = vmul.f32 0.03125, %v2754_v32  ;;  %v2751_v27 = vpop.xlane.xlu0 %2750 }
 0xb07   :  { %v2774_v18 = vmul.f32 0.03125, %v2751_v27 }
 0xb08   :  { %v10633_v61 = vsub.f32 %v2738_v22, %v2775_v45 }
 0xb09   :  { %v10635_v2 = vsub.f32 %v2737_v42, %v2774_v18 }
 0xb0a   :  { %v2760_v26 = vpop.xlane.xlu0 %2759  ;;  %v2791_v55 = vmul.f32 %v10633_v61, %v10633_v61 }
 0xb0b   :  { %v2777_v4 = vmul.f32 0.03125, %v2760_v26  ;;  %v2790_v5 = vmul.f32 %v10635_v2, %v10635_v2 }
 0xb0c   :  { %v2801_v3 = vsel %vm223_vm1, %v2791_v55, 0.0 }
 0xb0d   :  { %v10642_v10 = vsub.f32 %v2740_v1, %v2777_v4  ;;  %v2766_v7 = vpop.xlane.xlu1 %2765  ;;  %2802 = vadd.xlane.f32.xlu1 %v2801_v3  ;;  %v2798_v54 = vsel %vm223_vm1, %v2790_v5, 0.0  ;;  %v6900_v4 = vld [vmem:[%s12020_s5 + $0x8] ss:$0 sm:$0xff] }
 0xb0e   :  { %v2779_v20 = vmul.f32 0.03125, %v2766_v7  ;;  %v2757_v21 = vpop.xlane.xlu0 %2756  ;;  %2799 = vadd.xlane.f32.xlu0 %v2798_v54 }
 0xb0f   :  { %v2776_v29 = vmul.f32 0.03125, %v2757_v21  ;;  %v2793_v36 = vmul.f32 %v10642_v10, %v10642_v10 }
 0xb10   :  { %v10647_v6 = vsub.f32 %v2742_v43, %v2779_v20  ;;  %v3031_v43 = vld [vmem:[%s12023_s8 + $0x8] sm:$0xff] }
 0xb11   :  { %v10649_v37 = vsub.f32 %v2739_v35, %v2776_v29  ;;  %v2772_v11 = vpop.xlane.xlu1 %2771  ;;  %v2807_v14 = vsel %vm223_vm1, %v2793_v36, 0.0  ;;  %v2885_v35 = vld [vmem:[%s12022_s6 + $0x18] sm:$0xff]  ;;  %v8728_v41 = vpack.c.bf16 %v3031_v43, %v3030_v15  ;;  %v8740_v15 = vpack.c.bf16 %v3037_v59, %v3036_v50 }
 0xb12   :  { %v2781_v23 = vmul.f32 0.03125, %v2772_v11  ;;  %v2763_v47 = vpop.xlane.xlu0 %2762  ;;  %2808 = vadd.xlane.f32.xlu1 %v2807_v14  ;;  %v2795_v16 = vmul.f32 %v10647_v6, %v10647_v6  ;;  %v8724_v63 = vpack.c.bf16 %v2885_v35, %v2884_v39  ;;  %v6901_v11 = vld [vmem:[%s12020_s5 + $0xa] ss:$0 sm:$0xff] }
 0xb13   :  { %v2778_v56 = vmul.f32 0.03125, %v2763_v47  ;;  %v2792_v38 = vmul.f32 %v10649_v37, %v10649_v37 }
 0xb14   :  { %v10656_v12 = vsub.f32 %v2744_v8, %v2781_v23  ;;  %v2813_v22 = vsel %vm223_vm1, %v2795_v16, 0.0  ;;  %8725 = vmatprep.subr.bf16.mxu1 %v8724_v63  ;;  %v3032_v23 = vld [vmem:[%s12023_s8 + $0x10] sm:$0xff] }
 0xb15   :  { %v10659_v24 = vsub.f32 %v2741_v60, %v2778_v56  ;;  %v2804_v42 = vsel %vm223_vm1, %v2792_v38, 0.0  ;;  %8727 = vmatpush3.bf16.msra.mxu1 %v8724_v63 }
 0xb16   :  { %2814 = vadd.xlane.f32.xlu1 %v2813_v22  ;;  %2805 = vadd.xlane.f32.xlu0 %v2804_v42  ;;  %v2769_v34 = vpop.xlane.xlu0 %2768  ;;  %v2797_v0 = vmul.f32 %v10656_v12, %v10656_v12  ;;  %v3034_v42 = vld [vmem:[%s12023_s8 + $0x20] sm:$0xff] }
 0xb17   :  { %v2780_v49 = vmul.f32 0.03125, %v2769_v34  ;;  %v2794_v51 = vmul.f32 %v10659_v24, %v10659_v24  ;;  %8729 = vmatprep.subr.bf16.mxu1 %v8728_v41  ;;  %v3035_v34 = vld [vmem:[%s12023_s8 + $0x28] sm:$0xff] }
 0xb18   :  { %v2819_v52 = vsel %vm223_vm1, %v2797_v0, 0.0 }
 0xb19   :  { %v10667_v48 = vsub.f32 %v2743_v31, %v2780_v49  ;;  %v2810_v53 = vsel %vm223_vm1, %v2794_v51, 0.0 }
 0xb1a   :  { %2820 = vadd.xlane.f32.xlu1 %v2819_v52  ;;  %2811 = vadd.xlane.f32.xlu0 %v2810_v53  ;;  %v8736_v52 = vpack.c.bf16 %v3035_v34, %v3034_v42 }
 0xb1b   :  { %v2796_v1 = vmul.f32 %v10667_v48, %v10667_v48 }
 0xb1d   :  { %v2816_v9 = vsel %vm223_vm1, %v2796_v1, 0.0 }
 0xb1e   :  { %2817 = vadd.xlane.f32.xlu0 %v2816_v9 }
 0xb9a   :  { %v2803_v13 = vpop.xlane.xlu1 %2802 }
 0xb9b   :  { %v2823_v28 = vmul.f32 0.03125, %v2803_v13  ;;  %v2800_v30 = vpop.xlane.xlu0 %2799  ;;  %v3038_v13 = vld [vmem:[%s12023_s8 + $0x40] sm:$0xff] }
 0xb9c   :  { %v2822_v58 = vmul.f32 0.03125, %v2800_v30 }
 0xb9d   :  { %v2831_v60 = vadd.f32 1e-05, %v2823_v28 }
 0xb9e   :  { %v2830_v17 = vadd.f32 1e-05, %v2822_v58 }
 0xb9f   :  { %9430 = vrsqrt.f32 %v2831_v60  ;;  %v2809_v44 = vpop.xlane.xlu1 %2808 }
 0xba0   :  { %9432 = vrsqrt.f32 %v2830_v17  ;;  %v2825_v25 = vmul.f32 0.03125, %v2809_v44  ;;  %v3040_v44 = vld [vmem:[%s12023_s8 + $0x50] sm:$0xff] }
 0xba2   :  { %v2833_v8 = vadd.f32 1e-05, %v2825_v25 }
 0xba3   :  { %v2815_v40 = vpop.xlane.xlu1 %2814  ;;  %v2806_v57 = vpop.xlane.xlu0 %2805 }
 0xba4   :  { %9434 = vrsqrt.f32 %v2833_v8  ;;  %v2827_v31 = vmul.f32 0.03125, %v2815_v40  ;;  %v2824_v46 = vmul.f32 0.03125, %v2806_v57  ;;  %v3042_v57 = vld [vmem:[%s12023_s8 + $0x60] sm:$0xff] }
 0xba6   :  { %v2835_v19 = vadd.f32 1e-05, %v2827_v31  ;;  %v2832_v32 = vadd.f32 1e-05, %v2824_v46  ;;  %v3043_v31 = vld [vmem:[%s12023_s8 + $0x68] sm:$0xff] }
 0xba7   :  { %v2821_v45 = vpop.xlane.xlu1 %2820  ;;  %v2812_v27 = vpop.xlane.xlu0 %2811  ;;  %v8752_v46 = vpack.c.bf16 %v3043_v31, %v3042_v57 }
 0xba8   :  { %9436 = vrsqrt.f32 %v2835_v19  ;;  %v2829_v18 = vmul.f32 0.03125, %v2821_v45  ;;  %v2826_v26 = vmul.f32 0.03125, %v2812_v27  ;;  %v3044_v19 = vld [vmem:[%s12023_s8 + $0x70] sm:$0xff]  ;;  %v6902_v27 = vld [vmem:[%s12024_s7] ss:$0 sm:$0xff] }
 0xba9   :  { %v9431_v55 = vpop.eup %9430  ;;  %9438 = vrsqrt.f32 %v2832_v32  ;;  %v3045_v32 = vld [vmem:[%s12023_s8 + $0x78] sm:$0xff] }
 0xbaa   :  { %v9433_v5 = vpop.eup %9432  ;;  %v2847_v3 = vmul.f32 %v9431_v55, %v10633_v61  ;;  %v2837_v7 = vadd.f32 1e-05, %v2829_v18  ;;  %v2834_v54 = vadd.f32 1e-05, %v2826_v26  ;;  %v3033_v61 = vld [vmem:[%s12023_s8 + $0x18] sm:$0xff]  ;;  %v8756_v45 = vpack.c.bf16 %v3045_v32, %v3044_v19 }
 0xbab   :  { %v2818_v20 = vpop.xlane.xlu0 %2817  ;;  %v2846_v21 = vmul.f32 %v9433_v5, %v10635_v2  ;;  %v8732_v38 = vpack.c.bf16 %v3033_v61, %v3032_v23 }
 0xbac   :  { %v2861_v29 = vmul.f32 %v6900_v4, %v2847_v3  ;;  %9440 = vrsqrt.f32 %v2837_v7  ;;  %v2828_v36 = vmul.f32 0.03125, %v2818_v20 }
 0xbad   :  { %9442 = vrsqrt.f32 %v2834_v54  ;;  %v2860_v14 = vmul.f32 %v6900_v4, %v2846_v21 }
 0xbae   :  { %v9435_v47 = vpop.eup %9434  ;;  %v2836_v16 = vadd.f32 1e-05, %v2828_v36  ;;  %v10707_v56 = vadd.f32 %v6901_v11, %v2861_v29 }
 0xbaf   :  { %v10705_v2 = vadd.f32 %v6901_v11, %v2860_v14  ;;  %v2849_v22 = vmul.f32 %v9435_v47, %v10642_v10 }
 0xbb0   :  { %9444 = vrsqrt.f32 %v2836_v16 }
 0xbb1   :  { %8024 = vmatprep.mubr.msk.f32.mxu1 %vm223_vm1, %v10705_v2  ;;  %v2863_v53 = vmul.f32 %v6900_v4, %v2849_v22 }
 0xbb2   :  { %v9437_v0 = vpop.eup %9436  ;;  %8025 = vmatmul.mubr.msk.f32.vlgmr.msra.gmra.mrb[52].mxu1 %vm223_vm1, %v10707_v56 }
 0xbb3   :  { %v9439_v49 = vpop.eup %9438  ;;  %8731 = vmatpush3.bf16.msra.mxu1 %v8728_v41  ;;  %v2851_v10 = vmul.f32 %v9437_v0, %v10647_v6  ;;  %v10731_v35 = vadd.f32 %v6901_v11, %v2863_v53 }
 0xbb4   :  { %v2848_v51 = vmul.f32 %v9439_v49, %v10649_v37  ;;  %8733 = vmatprep.subr.bf16.mxu1 %v8732_v38 }
 0xbb5   :  { %v2865_v6 = vmul.f32 %v6900_v4, %v2851_v10 }
 0xbb6   :  { %v9441_v1 = vpop.eup %9440  ;;  %v2862_v9 = vmul.f32 %v6900_v4, %v2848_v51  ;;  %v6912_v51 = vld [vmem:[%s12020_s5 + $0xc] ss:$0 sm:$0xff] }
 0xbb7   :  { %v9443_v33 = vpop.eup %9442  ;;  %8735 = vmatpush3.bf16.msra.mxu1 %v8732_v38  ;;  %v2853_v63 = vmul.f32 %v9441_v1, %v10656_v12  ;;  %v10747_v30 = vadd.f32 %v6901_v11, %v2865_v6 }
 0xbb8   :  { %v10728_v39 = vadd.f32 %v6901_v11, %v2862_v9  ;;  %v2850_v37 = vmul.f32 %v9443_v33, %v10659_v24  ;;  %8737 = vmatprep.subr.bf16.mxu1 %v8736_v52  ;;  %v3039_v24 = vld [vmem:[%s12023_s8 + $0x48] sm:$0xff] }
 0xbb9   :  { %v2867_v60 = vmul.f32 %v6900_v4, %v2853_v63  ;;  %v8744_v17 = vpack.c.bf16 %v3039_v24, %v3038_v13 }
 0xbba   :  { %v9445_v43 = vpop.eup %9444  ;;  %8027 = vmatprep.mubr.msk.f32.mxu1 %vm223_vm1, %v10728_v39  ;;  %v2864_v41 = vmul.f32 %v6900_v4, %v2850_v37 }
 0xbbb   :  { %8028 = vmatmul.mubr.msk.f32.gmra.mrb[54].mxu1 %vm223_vm1, %v10731_v35  ;;  %v2852_v28 = vmul.f32 %v9445_v43, %v10667_v48  ;;  %v3041_v48 = vld [vmem:[%s12023_s8 + $0x58] sm:$0xff]  ;;  %v10763_v8 = vadd.f32 %v6901_v11, %v2867_v60 }
 0xbbc   :  { %v10745_v12 = vadd.f32 %v6901_v11, %v2864_v41  ;;  %8739 = vmatpush3.bf16.msra.mxu1 %v8736_v52  ;;  %v8748_v40 = vpack.c.bf16 %v3041_v48, %v3040_v44 }
 0xbbd   :  { %v2866_v58 = vmul.f32 %v6900_v4, %v2852_v28  ;;  %8741 = vmatprep.subr.bf16.mxu1 %v8740_v15 }
 0xbbe   :  { %8030 = vmatprep.mubr.msk.f32.mxu1 %vm223_vm1, %v10745_v12 }
 0xbbf   :  { %8031 = vmatmul.mubr.msk.f32.gmra.mrb[56].mxu1 %vm223_vm1, %v10747_v30  ;;  %v10759_v25 = vadd.f32 %v6901_v11, %v2866_v58 }
 0xbc0   :  { %8743 = vmatpush3.bf16.msra.mxu1 %v8740_v15 }
 0xbc1   :  { %8033 = vmatprep.mubr.msk.f32.mxu1 %vm223_vm1, %v10759_v25  ;;  %8745 = vmatprep.subr.bf16.mxu1 %v8744_v17 }
 0xbc3   :  { %8034 = vmatmul.mubr.msk.f32.gmra.mrb[58].mxu1 %vm223_vm1, %v10763_v8 }
 0xbc4   :  { %8747 = vmatpush3.bf16.msra.mxu1 %v8744_v17 }
 0xbc5   :  { %8749 = vmatprep.subr.bf16.mxu1 %v8748_v40 }
 0xbc8   :  { %8751 = vmatpush3.bf16.msra.mxu1 %v8748_v40 }
 0xbc9   :  { %8753 = vmatprep.subr.bf16.mxu1 %v8752_v46 }
 0xbcc   :  { %8755 = vmatpush3.bf16.msra.mxu1 %v8752_v46 }
 0xbcd   :  { %8757 = vmatprep.subr.bf16.mxu1 %v8756_v45 }
 0xbd0   :  { %8759 = vmatpush3.bf16.msra.mxu1 %v8756_v45 }
 0xc85   :  { %v8026_v18 = vpop.f32.mrb[52].mxu1 }
 0xc86   :  { %v2989_v26 = vadd.f32 %v8026_v18, %v6902_v27  ;;  %v2983_v55 = vpop.f32.mrb[53].mxu1 }
 0xc87   :  { %v2984_v4 = vadd.f32 %v6902_v27, %v2983_v55 }
 0xc88   :  { %v3023_v3 = vmax.f32 %v2989_v26, 0.0 }
 0xc89   :  { %v3022_v5 = vmax.f32 %v2984_v4, 0.0 }
 0xc8b   :  { %8068 = vmatprep.mubr.f32.mxu1 %v3022_v5 }
 0xc8c   :  { %8069 = vmatmul.mubr.f32.vlgmr.msra.gmra.mrb[60].mxu1 %v3023_v3 }
 0xc8e   :  { %v8029_v7 = vpop.f32.mrb[54].mxu1 }
 0xc8f   :  { %v2999_v54 = vadd.f32 %v8029_v7, %v6902_v27  ;;  %v2993_v20 = vpop.f32.mrb[55].mxu1 }
 0xc90   :  { %v2994_v21 = vadd.f32 %v6902_v27, %v2993_v20 }
 0xc91   :  { %v3025_v11 = vmax.f32 %v2999_v54, 0.0 }
 0xc92   :  { %v3024_v29 = vmax.f32 %v2994_v21, 0.0  ;;  %v8032_v36 = vpop.f32.mrb[56].mxu1 }
 0xc93   :  { %v3009_v14 = vadd.f32 %v8032_v36, %v6902_v27  ;;  %v3003_v23 = vpop.f32.mrb[57].mxu1 }
 0xc94   :  { %v3004_v61 = vadd.f32 %v6902_v27, %v3003_v23  ;;  %8071 = vmatprep.mubr.f32.mxu1 %v3024_v29 }
 0xc95   :  { %8072 = vmatmul.mubr.f32.gmra.mrb[62].mxu1 %v3025_v11  ;;  %v3027_v38 = vmax.f32 %v3009_v14, 0.0 }
 0xc96   :  { %v3026_v47 = vmax.f32 %v3004_v61, 0.0  ;;  %v8035_v16 = vpop.f32.mrb[58].mxu1 }
 0xc97   :  { %v3019_v22 = vadd.f32 %v8035_v16, %v6902_v27  ;;  %v3013_v42 = vpop.f32.mrb[59].mxu1 }
 0xc98   :  { %v3014_v34 = vadd.f32 %v6902_v27, %v3013_v42  ;;  %8074 = vmatprep.mubr.f32.mxu1 %v3026_v47 }
 0xc99   :  { %8075 = vmatmul.mubr.f32.gmra.mrb[64].mxu1 %v3027_v38  ;;  %v3029_v49 = vmax.f32 %v3019_v22, 0.0 }
 0xc9a   :  { %v3028_v0 = vmax.f32 %v3014_v34, 0.0 }
 0xc9c   :  { %8077 = vmatprep.mubr.f32.mxu1 %v3028_v0 }
 0xc9d   :  { %8078 = vmatmul.mubr.f32.gmra.mrb[66].mxu1 %v3029_v49 }
 0xd5f   :  { %v8070_v52 = vpop.f32.mrb[60].mxu1 }
 0xd60   :  { %v3126_v53 = vadd.f32 %v8070_v52, %v6912_v51  ;;  %v3120_v10 = vpop.f32.mrb[61].mxu1 }
 0xd61   :  { %v3121_v1 = vadd.f32 %v6912_v51, %v3120_v10 }
 0xd62   :  { %v3160_v9 = vadd.f32 %v3126_v53, %v10707_v56 }
 0xd63   :  { %v3159_v50 = vadd.f32 %v3121_v1, %v10705_v2 }
 0xd64   :  { %v3174_v59 = vsel %vm223_vm1, %v3160_v9, 0.0 }
 0xd65   :  { %3175 = vadd.xlane.f32.xlu1 %v3174_v59  ;;  %v3171_v33 = vsel %vm223_vm1, %v3159_v50, 0.0 }
 0xd66   :  { %3172 = vadd.xlane.f32.xlu0 %v3171_v33 }
 0xd68   :  { %v8073_v37 = vpop.f32.mrb[62].mxu1 }
 0xd69   :  { %v3136_v6 = vadd.f32 %v8073_v37, %v6912_v51  ;;  %v3130_v63 = vpop.f32.mrb[63].mxu1 }
 0xd6a   :  { %v3131_v15 = vadd.f32 %v6912_v51, %v3130_v63  ;;  %v6918_v63 = vld [vmem:[%s12018_s4 + $0x28] sm:$0xff] }
 0xd6b   :  { %v3162_v43 = vadd.f32 %v3136_v6, %v10731_v35  ;;  %v6917_v6 = vld [vmem:[%s12018_s4 + $0x20] sm:$0xff] }
 0xd6c   :  { %v3161_v41 = vadd.f32 %v3131_v15, %v10728_v39  ;;  %v8076_v13 = vpop.f32.mrb[64].mxu1  ;;  %v6925_v15 = vld [vmem:[%s12018_s4 + $0xa0] sm:$0xff] }
 0xd6d   :  { %v3146_v24 = vadd.f32 %v8076_v13, %v6912_v51  ;;  %v3140_v28 = vpop.f32.mrb[65].mxu1  ;;  %v3180_v56 = vsel %vm223_vm1, %v3162_v43, 0.0 }
 0xd6e   :  { %v3141_v2 = vadd.f32 %v6912_v51, %v3140_v28  ;;  %3181 = vadd.xlane.f32.xlu1 %v3180_v56  ;;  %v3177_v58 = vsel %vm223_vm1, %v3161_v41, 0.0  ;;  %v6920_v28 = vld [vmem:[%s12018_s4 + $0x38] sm:$0xff]  ;;  %v6927_v56 = vld [vmem:[%s12018_s4 + $0xb0] sm:$0xff] }
 0xd6f   :  { %v3164_v60 = vadd.f32 %v3146_v24, %v10747_v30  ;;  %3178 = vadd.xlane.f32.xlu0 %v3177_v58  ;;  %v6919_v24 = vld [vmem:[%s12018_s4 + $0x30] sm:$0xff]  ;;  %v6928_v58 = vld [vmem:[%s12018_s4 + $0xb8] sm:$0xff] }
 0xd70   :  { %v3163_v17 = vadd.f32 %v3141_v2, %v10745_v12  ;;  %v8079_v44 = vpop.f32.mrb[66].mxu1  ;;  %v8764_v2 = vpack.c.bf16 %v6920_v28, %v6919_v24 }
 0xd71   :  { %v3156_v48 = vadd.f32 %v8079_v44, %v6912_v51  ;;  %v3150_v40 = vpop.f32.mrb[67].mxu1  ;;  %v3186_v35 = vsel %vm223_vm1, %v3164_v60, 0.0  ;;  %v6922_v44 = vld [vmem:[%s12018_s4 + $0x68] sm:$0xff] }
 0xd72   :  { %v3151_v39 = vadd.f32 %v6912_v51, %v3150_v40  ;;  %3187 = vadd.xlane.f32.xlu1 %v3186_v35  ;;  %v3183_v57 = vsel %vm223_vm1, %v3163_v17, 0.0 }
 0xd73   :  { %v3166_v31 = vadd.f32 %v3156_v48, %v10763_v8  ;;  %3184 = vadd.xlane.f32.xlu0 %v3183_v57 }
 0xd74   :  { %v3165_v46 = vadd.f32 %v3151_v39, %v10759_v25 }
 0xd75   :  { %v3192_v19 = vsel %vm223_vm1, %v3166_v31, 0.0 }
 0xd76   :  { %3193 = vadd.xlane.f32.xlu1 %v3192_v19  ;;  %v3189_v30 = vsel %vm223_vm1, %v3165_v46, 0.0 }
 0xd77   :  { %3190 = vadd.xlane.f32.xlu0 %v3189_v30 }
 0xdf2   :  { %v3176_v12 = vpop.xlane.xlu1 %3175 }
 0xdf3   :  { %v3196_v32 = vmul.f32 0.03125, %v3176_v12  ;;  %v3173_v45 = vpop.xlane.xlu0 %3172 }
 0xdf4   :  { %v3195_v27 = vmul.f32 0.03125, %v3173_v45 }
 0xdf5   :  { %v10801_v18 = vsub.f32 %v3160_v9, %v3196_v32 }
 0xdf6   :  { %v10803_v26 = vsub.f32 %v3159_v50, %v3195_v27 }
 0xdf7   :  { %v3212_v8 = vmul.f32 %v10801_v18, %v10801_v18 }
 0xdf8   :  { %v3211_v25 = vmul.f32 %v10803_v26, %v10803_v26 }
 0xdf9   :  { %v3222_v55 = vsel %vm223_vm1, %v3212_v8, 0.0 }
 0xdfa   :  { %3223 = vadd.xlane.f32.xlu1 %v3222_v55  ;;  %v3219_v4 = vsel %vm223_vm1, %v3211_v25, 0.0 }
 0xdfb   :  { %v3182_v5 = vpop.xlane.xlu1 %3181  ;;  %3220 = vadd.xlane.f32.xlu0 %v3219_v4 }
 0xdfc   :  { %v3198_v3 = vmul.f32 0.03125, %v3182_v5  ;;  %v3179_v7 = vpop.xlane.xlu0 %3178  ;;  %v6915_v5 = vld [vmem:[%s12020_s5 + $0xe] ss:$0 sm:$0xff] }
 0xdfd   :  { %v3197_v54 = vmul.f32 0.03125, %v3179_v7 }
 0xdfe   :  { %v10811_v20 = vsub.f32 %v3162_v43, %v3198_v3  ;;  %v8760_v43 = vpack.c.bf16 %v6918_v63, %v6917_v6 }
 0xdff   :  { %v10813_v21 = vsub.f32 %v3161_v41, %v3197_v54  ;;  %v3188_v29 = vpop.xlane.xlu1 %3187  ;;  %v6926_v41 = vld [vmem:[%s12018_s4 + $0xa8] sm:$0xff] }
 0xe00   :  { %v3200_v36 = vmul.f32 0.03125, %v3188_v29  ;;  %v3185_v11 = vpop.xlane.xlu0 %3184  ;;  %v3214_v14 = vmul.f32 %v10811_v20, %v10811_v20  ;;  %v8776_v13 = vpack.c.bf16 %v6926_v41, %v6925_v15  ;;  %8761 = vmatprep.subr.bf16.mxu0 %v8760_v43 }
 0xe01   :  { %v3199_v23 = vmul.f32 0.03125, %v3185_v11  ;;  %v3213_v61 = vmul.f32 %v10813_v21, %v10813_v21  ;;  %8763 = vmatpush3.bf16.msra.mxu0 %v8760_v43 }
 0xe02   :  { %v10819_v47 = vsub.f32 %v3164_v60, %v3200_v36  ;;  %v3228_v16 = vsel %vm223_vm1, %v3214_v14, 0.0  ;;  %8777 = vmatprep.subr.bf16.mxu1 %v8776_v13  ;;  %v8780_v60 = vpack.c.bf16 %v6928_v58, %v6927_v56  ;;  %8765 = vmatprep.subr.bf16.mxu0 %v8764_v2 }
 0xe03   :  { %v10822_v38 = vsub.f32 %v3163_v17, %v3199_v23  ;;  %3229 = vadd.xlane.f32.xlu1 %v3228_v16  ;;  %v3194_v22 = vpop.xlane.xlu1 %3193  ;;  %v3225_v42 = vsel %vm223_vm1, %v3213_v61, 0.0  ;;  %8779 = vmatpush3.bf16.msra.mxu1 %v8776_v13  ;;  %v6921_v17 = vld [vmem:[%s12018_s4 + $0x60] sm:$0xff] }
 0xe04   :  { %v3202_v34 = vmul.f32 0.03125, %v3194_v22  ;;  %3226 = vadd.xlane.f32.xlu0 %v3225_v42  ;;  %v3191_v0 = vpop.xlane.xlu0 %3190  ;;  %v3216_v49 = vmul.f32 %v10819_v47, %v10819_v47  ;;  %8781 = vmatprep.subr.bf16.mxu1 %v8780_v60  ;;  %v8768_v48 = vpack.c.bf16 %v6922_v44, %v6921_v17  ;;  %v6916_v22 = vld [vmem:[%s12020_s5 + $0x10] ss:$0 sm:$0xff] }
 0xe05   :  { %v3201_v51 = vmul.f32 0.03125, %v3191_v0  ;;  %v3215_v52 = vmul.f32 %v10822_v38, %v10822_v38  ;;  %8767 = vmatpush3.bf16.msra.mxu0 %v8764_v2  ;;  %v6924_v0 = vld [vmem:[%s12018_s4 + $0x78] sm:$0xff] }
 0xe06   :  { %v10829_v53 = vsub.f32 %v3166_v31, %v3202_v34  ;;  %v3234_v10 = vsel %vm223_vm1, %v3216_v49, 0.0  ;;  %8769 = vmatprep.subr.bf16.mxu0 %v8768_v48 }
 0xe07   :  { %v10832_v1 = vsub.f32 %v3165_v46, %v3201_v51  ;;  %3235 = vadd.xlane.f32.xlu1 %v3234_v10  ;;  %v3231_v9 = vsel %vm223_vm1, %v3215_v52, 0.0  ;;  %8783 = vmatpush3.bf16.msra.mxu1 %v8780_v60 }
 0xe08   :  { %3232 = vadd.xlane.f32.xlu0 %v3231_v9  ;;  %v3218_v50 = vmul.f32 %v10829_v53, %v10829_v53 }
 0xe09   :  { %v3217_v59 = vmul.f32 %v10832_v1, %v10832_v1 }
 0xe0a   :  { %v3240_v33 = vsel %vm223_vm1, %v3218_v50, 0.0 }
 0xe0b   :  { %3241 = vadd.xlane.f32.xlu1 %v3240_v33  ;;  %v3237_v37 = vsel %vm223_vm1, %v3217_v59, 0.0 }
 0xe0c   :  { %3238 = vadd.xlane.f32.xlu0 %v3237_v37 }
 0xe87   :  { %v3224_v40 = vpop.xlane.xlu1 %3223 }
 0xe88   :  { %v3244_v35 = vmul.f32 0.03125, %v3224_v40  ;;  %v3221_v39 = vpop.xlane.xlu0 %3220 }
 0xe89   :  { %v3243_v57 = vmul.f32 0.03125, %v3221_v39 }
 0xe8a   :  { %v3252_v31 = vadd.f32 1e-05, %v3244_v35 }
 0xe8b   :  { %v3251_v46 = vadd.f32 1e-05, %v3243_v57 }
 0xe8c   :  { %9446 = vrsqrt.f32 %v3252_v31 }
 0xe8d   :  { %9448 = vrsqrt.f32 %v3251_v46 }
 0xe90   :  { %v3230_v19 = vpop.xlane.xlu1 %3229 }
 0xe91   :  { %v3246_v30 = vmul.f32 0.03125, %v3230_v19  ;;  %v3227_v12 = vpop.xlane.xlu0 %3226 }
 0xe92   :  { %v3245_v32 = vmul.f32 0.03125, %v3227_v12 }
 0xe93   :  { %v3254_v45 = vadd.f32 1e-05, %v3246_v30 }
 0xe94   :  { %v3253_v27 = vadd.f32 1e-05, %v3245_v32  ;;  %v3236_v8 = vpop.xlane.xlu1 %3235 }
 0xe95   :  { %9450 = vrsqrt.f32 %v3254_v45  ;;  %v3248_v25 = vmul.f32 0.03125, %v3236_v8  ;;  %v3233_v55 = vpop.xlane.xlu0 %3232 }
 0xe96   :  { %v9447_v4 = vpop.eup %9446  ;;  %9452 = vrsqrt.f32 %v3253_v27  ;;  %v3247_v3 = vmul.f32 0.03125, %v3233_v55 }
 0xe97   :  { %v9449_v7 = vpop.eup %9448  ;;  %v3268_v54 = vmul.f32 %v9447_v4, %v10801_v18  ;;  %v3256_v29 = vadd.f32 1e-05, %v3248_v25  ;;  %v6923_v18 = vld [vmem:[%s12018_s4 + $0x70] sm:$0xff] }
 0xe98   :  { %v3255_v36 = vadd.f32 1e-05, %v3247_v3  ;;  %v3242_v11 = vpop.xlane.xlu1 %3241  ;;  %v3267_v14 = vmul.f32 %v9449_v7, %v10803_v26  ;;  %v8772_v10 = vpack.c.bf16 %v6924_v0, %v6923_v18 }
 0xe99   :  { %v3282_v23 = vmul.f32 %v6915_v5, %v3268_v54  ;;  %9454 = vrsqrt.f32 %v3256_v29  ;;  %v3250_v61 = vmul.f32 0.03125, %v3242_v11  ;;  %v3239_v16 = vpop.xlane.xlu0 %3238 }
 0xe9a   :  { %9456 = vrsqrt.f32 %v3255_v36  ;;  %v3249_v42 = vmul.f32 0.03125, %v3239_v16  ;;  %v3281_v34 = vmul.f32 %v6915_v5, %v3267_v14 }
 0xe9b   :  { %v3258_v26 = vadd.f32 1e-05, %v3250_v61  ;;  %v10887_v52 = vadd.f32 %v6916_v22, %v3282_v23 }
 0xe9c   :  { %v3257_v49 = vadd.f32 1e-05, %v3249_v42  ;;  %v10885_v51 = vadd.f32 %v6916_v22, %v3281_v34 }
 0xe9d   :  { %9458 = vrsqrt.f32 %v3258_v26  ;;  %12068 = vst [vmem:[#allocation10_spill] sm:$0xff] %v10887_v52 }
 0xe9e   :  { %12067 = vst [vmem:[#allocation11_spill] sm:$0xff] %v10885_v51  ;;  %9460 = vrsqrt.f32 %v3257_v49  ;;  %8088 = vmatprep.mubr.msk.f32.mxu0 %vm223_vm1, %v10885_v51  ;;  %8128 = vmatprep.mubr.msk.f32.mxu1 %vm223_vm1, %v10885_v51  ;;  %v6944_v49 = vld [vmem:[%s12020_s5 + $0x3] ss:$0 sm:$0xff] }
 0xe9f   :  { %v9451_v9 = vpop.eup %9450  ;;  %8089 = vmatmul.mubr.msk.f32.vlgmr.msra.gmra.mrb[52].mxu0 %vm223_vm1, %v10887_v52  ;;  %8129 = vmatmul.mubr.msk.f32.vlgmr.msra.gmra.mrb[68].mxu1 %vm223_vm1, %v10887_v52 }
 0xea0   :  { %v9453_v50 = vpop.eup %9452  ;;  %8771 = vmatpush3.bf16.msra.mxu0 %v8768_v48  ;;  %v3270_v59 = vmul.f32 %v9451_v9, %v10811_v20  ;;  %v10961_v48 = vld [vmem:[%s12020_s5 + $0x1] ss:$0 sm:$0xff] }
 0xea1   :  { %v3269_v33 = vmul.f32 %v9453_v50, %v10813_v21  ;;  %8773 = vmatprep.subr.bf16.mxu0 %v8772_v10 }
 0xea2   :  { %v3284_v37 = vmul.f32 %v6915_v5, %v3270_v59 }
 0xea3   :  { %v9455_v6 = vpop.eup %9454  ;;  %v3283_v63 = vmul.f32 %v6915_v5, %v3269_v33 }
 0xea4   :  { %v9457_v15 = vpop.eup %9456  ;;  %v3272_v43 = vmul.f32 %v9455_v6, %v10819_v47  ;;  %8775 = vmatpush3.bf16.msra.mxu0 %v8772_v10  ;;  %v10903_v24 = vadd.f32 %v6916_v22, %v3284_v37 }
 0xea5   :  { %v10900_v41 = vadd.f32 %v6916_v22, %v3283_v63  ;;  %v3271_v13 = vmul.f32 %v9457_v15, %v10822_v38 }
 0xea6   :  { %12070 = vst [vmem:[#allocation2_spill] sm:$0xff] %v10903_v24  ;;  %v3286_v28 = vmul.f32 %v6915_v5, %v3272_v43 }
 0xea7   :  { %12069 = vst [vmem:[#allocation3_spill] sm:$0xff] %v10900_v41  ;;  %v9459_v56 = vpop.eup %9458  ;;  %8091 = vmatprep.mubr.msk.f32.mxu0 %vm223_vm1, %v10900_v41  ;;  %8131 = vmatprep.mubr.msk.f32.mxu1 %vm223_vm1, %v10900_v41  ;;  %v3285_v20 = vmul.f32 %v6915_v5, %v3271_v13 }
 0xea8   :  { %v9461_v21 = vpop.eup %9460  ;;  %8092 = vmatmul.mubr.msk.f32.gmra.mrb[54].mxu0 %vm223_vm1, %v10903_v24  ;;  %8132 = vmatmul.mubr.msk.f32.gmra.mrb[70].mxu1 %vm223_vm1, %v10903_v24  ;;  %v3274_v47 = vmul.f32 %v9459_v56, %v10829_v53  ;;  %v10917_v58 = vadd.f32 %v6916_v22, %v3286_v28 }
 0xea9   :  { %v10914_v38 = vadd.f32 %v6916_v22, %v3285_v20  ;;  %v3273_v2 = vmul.f32 %v9461_v21, %v10832_v1  ;;  %v6954_v1 = vld [vmem:[%s12020_s5 + $0x5] ss:$0 sm:$0xff] }
 0xeaa   :  { %12072 = vst [vmem:[#allocation5_spill] sm:$0xff] %v10917_v58  ;;  %v3288_v60 = vmul.f32 %v6915_v5, %v3274_v47 }
 0xeab   :  { %12071 = vst [vmem:[#allocation4_spill] sm:$0xff] %v10914_v38  ;;  %8094 = vmatprep.mubr.msk.f32.mxu0 %vm223_vm1, %v10914_v38  ;;  %8134 = vmatprep.mubr.msk.f32.mxu1 %vm223_vm1, %v10914_v38  ;;  %v3287_v17 = vmul.f32 %v6915_v5, %v3273_v2 }
 0xeac   :  { %8095 = vmatmul.mubr.msk.f32.gmra.mrb[56].mxu0 %vm223_vm1, %v10917_v58  ;;  %8135 = vmatmul.mubr.msk.f32.gmra.mrb[72].mxu1 %vm223_vm1, %v10917_v58  ;;  %v10929_v44 = vadd.f32 %v6916_v22, %v3288_v60 }
 0xead   :  { %v10927_v53 = vadd.f32 %v6916_v22, %v3287_v17 }
 0xeae   :  { %12074 = vst [vmem:[#allocation6_spill] sm:$0xff] %v10929_v44 }
 0xeaf   :  { %12073 = vst [vmem:[#allocation7_spill] sm:$0xff] %v10927_v53  ;;  %8097 = vmatprep.mubr.msk.f32.mxu0 %vm223_vm1, %v10927_v53  ;;  %8137 = vmatprep.mubr.msk.f32.mxu1 %vm223_vm1, %v10927_v53 }
 0xeb0   :  { %8098 = vmatmul.mubr.msk.f32.gmra.mrb[58].mxu0 %vm223_vm1, %v10929_v44  ;;  %8138 = vmatmul.mubr.msk.f32.gmra.mrb[74].mxu1 %vm223_vm1, %v10929_v44 }
 0xeb1   :  { %8108 = vmatprep.mubr.msk.f32.mxu0 %vm223_vm1, %v10885_v51 }
 0xeb4   :  { %8109 = vmatmul.mubr.msk.f32.vlgmr.msra.gmra.mrb[60].mxu0 %vm223_vm1, %v10887_v52 }
 0xeb5   :  { %8111 = vmatprep.mubr.msk.f32.mxu0 %vm223_vm1, %v10900_v41 }
 0xeb8   :  { %8112 = vmatmul.mubr.msk.f32.gmra.mrb[62].mxu0 %vm223_vm1, %v10903_v24 }
 0xeb9   :  { %8114 = vmatprep.mubr.msk.f32.mxu0 %vm223_vm1, %v10914_v38 }
 0xebc   :  { %8115 = vmatmul.mubr.msk.f32.gmra.mrb[64].mxu0 %vm223_vm1, %v10917_v58 }
 0xebd   :  { %8117 = vmatprep.mubr.msk.f32.mxu0 %vm223_vm1, %v10927_v53 }
 0xec0   :  { %8118 = vmatmul.mubr.msk.f32.gmra.mrb[66].mxu0 %vm223_vm1, %v10929_v44 }
 0xf72   :  { %v10963_v40 = vpop.f32.mrb[52].mxu0  ;;  %v8130_v35 = vpop.f32.mrb[68].mxu1 }
 0xf73   :  { %v3653_v39 = vadd.f32 %v8130_v35, %v6954_v1  ;;  %v3421_v57 = vpop.f32.mrb[53].mxu0  ;;  %v3647_v31 = vpop.f32.mrb[69].mxu1 }
 0xf74   :  { %v10966_v46 = vadd.f32 %v10961_v48, %v3421_v57  ;;  %v3648_v19 = vadd.f32 %v6954_v1, %v3647_v31 }
 0xf76   :  { %8156 = vmatprep.mubr.msk.f32.mxu0 %vm579_vm2, %v10966_v46  ;;  %v8808_v30 = vpack.c.bf16 %v3653_v39, %v3648_v19  ;;  %v10970_v12 = vpack.i.bf16 %v3653_v39, %v3648_v19 }
 0xf78   :  { %8809 = vmatprep.subr.bf16.mxu1 %v8808_v30 }
 0xf79   :  { %8811 = vmatpush3.bf16.msra.mxu1 %v8808_v30 }
 0xf7b   :  { %v10972_v32 = vpop.f32.mrb[54].mxu0  ;;  %v8133_v45 = vpop.f32.mrb[70].mxu1 }
 0xf7c   :  { %v3663_v27 = vadd.f32 %v8133_v45, %v6954_v1  ;;  %v10974_v8 = vpop.f32.mrb[55].mxu0  ;;  %v3657_v25 = vpop.f32.mrb[71].mxu1  ;;  %v11019_v45 = vadd.f32 %v10963_v40, %v10961_v48 }
 0xf7d   :  { %v3658_v55 = vadd.f32 %v6954_v1, %v3657_v25  ;;  %v11031_v25 = vadd.f32 %v10972_v32, %v10961_v48 }
 0xf7f   :  { %v10976_v4 = vpop.f32.mrb[56].mxu0  ;;  %v8136_v5 = vpop.f32.mrb[72].mxu1  ;;  %v8812_v3 = vpack.c.bf16 %v3663_v27, %v3658_v55  ;;  %v10978_v7 = vpack.i.bf16 %v3663_v27, %v3658_v55  ;;  %v11023_v27 = vadd.f32 %v10961_v48, %v10974_v8  ;;  %v11053_v8 = vld [vmem:[%s12021_s2 + $0x8] sm:$0xff] }
 0xf80   :  { %v3673_v54 = vadd.f32 %v8136_v5, %v6954_v1  ;;  %v3441_v29 = vpop.f32.mrb[57].mxu0  ;;  %v3667_v36 = vpop.f32.mrb[73].mxu1  ;;  %v11042_v40 = vadd.f32 %v10976_v4, %v10961_v48 }
 0xf81   :  { %v3668_v11 = vadd.f32 %v6954_v1, %v3667_v36  ;;  %8813 = vmatprep.subr.bf16.mxu1 %v8812_v3  ;;  %v11034_v55 = vadd.f32 %v10961_v48, %v3441_v29 }
 0xf82   :  { %8815 = vmatpush3.bf16.msra.mxu1 %v8812_v3 }
 0xf83   :  { %v8099_v14 = vpop.f32.mrb[58].mxu0  ;;  %v8139_v23 = vpop.f32.mrb[74].mxu1  ;;  %v8816_v61 = vpack.c.bf16 %v3673_v54, %v3668_v11  ;;  %v10980_v16 = vpack.i.bf16 %v3673_v54, %v3668_v11  ;;  %v11067_v11 = vld [vmem:[%s12021_s2 + $0x18] sm:$0xff] }
 0xf84   :  { %v10983_v22 = vadd.f32 %v8099_v14, %v10961_v48  ;;  %v3683_v42 = vadd.f32 %v8139_v23, %v6954_v1  ;;  %v3451_v34 = vpop.f32.mrb[59].mxu0  ;;  %v3677_v18 = vpop.f32.mrb[75].mxu1 }
 0xf85   :  { %v10986_v0 = vadd.f32 %v10961_v48, %v3451_v34  ;;  %v3678_v26 = vadd.f32 %v6954_v1, %v3677_v18  ;;  %8817 = vmatprep.subr.bf16.mxu1 %v8816_v61  ;;  %v11059_v48 = vld [vmem:[%s12021_s2] sm:$0xff] }
 0xf86   :  { %8819 = vmatpush3.bf16.msra.mxu1 %v8816_v61  ;;  %v11073_v61 = vld [vmem:[%s12021_s2 + $0x10] sm:$0xff] }
 0xf87   :  { %v8110_v10 = vpop.f32.mrb[60].mxu0  ;;  %v8820_v9 = vpack.c.bf16 %v3683_v42, %v3678_v26  ;;  %v10991_v50 = vpack.i.bf16 %v3683_v42, %v3678_v26 }
 0xf88   :  { %v3540_v59 = vadd.f32 %v8110_v10, %v6944_v49  ;;  %v3534_v33 = vpop.f32.mrb[61].mxu0 }
 0xf89   :  { %v3535_v37 = vadd.f32 %v6944_v49, %v3534_v33  ;;  %8821 = vmatprep.subr.bf16.mxu1 %v8820_v9 }
 0xf8a   :  { %8823 = vmatpush3.bf16.msra.mxu1 %v8820_v9 }
 0xf8b   :  { %v8113_v6 = vpop.f32.mrb[62].mxu0  ;;  %v8784_v63 = vpack.c.bf16 %v3540_v59, %v3535_v37  ;;  %v10993_v15 = vpack.i.bf16 %v3540_v59, %v3535_v37  ;;  %v11087_v59 = vld [vmem:[%s12021_s2 + $0x20] sm:$0xff] }
 0xf8c   :  { %v3550_v43 = vadd.f32 %v8113_v6, %v6944_v49  ;;  %v3544_v13 = vpop.f32.mrb[63].mxu0 }
 0xf8d   :  { %v3545_v28 = vadd.f32 %v6944_v49, %v3544_v13  ;;  %8786 = vmatprep.subr.msk.bf16.mxu0 %vm9892_vm3, %v8784_v63 }
 0xf8e   :  { %8789 = vmatpush3.bf16.xpose.msk.msra.mxu0 %vm9892_vm3, %v8784_v63 }
 0xf8f   :  { %v8116_v56 = vpop.f32.mrb[64].mxu0  ;;  %v8790_v20 = vpack.c.bf16 %v3550_v43, %v3545_v28  ;;  %v10999_v21 = vpack.i.bf16 %v3550_v43, %v3545_v28  ;;  %v11095_v43 = vld [vmem:[%s12021_s2 + $0x38] sm:$0xff] }
 0xf90   :  { %v3560_v47 = vadd.f32 %v8116_v56, %v6944_v49  ;;  %v3554_v2 = vpop.f32.mrb[65].mxu0  ;;  %v11101_v56 = vld [vmem:[%s12021_s2 + $0x30] sm:$0xff] }
 0xf91   :  { %v3555_v60 = vadd.f32 %v6944_v49, %v3554_v2  ;;  %8792 = vmatprep.subr.msk.bf16.mxu0 %vm9892_vm3, %v8790_v20 }
 0xf93   :  { %v8119_v17 = vpop.f32.mrb[66].mxu0  ;;  %v8796_v1 = vpack.c.bf16 %v3560_v47, %v3555_v60  ;;  %v11003_v35 = vpack.i.bf16 %v3560_v47, %v3555_v60 }
 0xf94   :  { %v3570_v39 = vadd.f32 %v8119_v17, %v6944_v49  ;;  %v3564_v57 = vpop.f32.mrb[67].mxu0 }
 0xf95   :  { %v3565_v31 = vadd.f32 %v6944_v49, %v3564_v57  ;;  %v11081_v49 = vld [vmem:[%s12021_s2 + $0x28] sm:$0xff] }
 0xf96   :  { %8795 = vmatpush3.bf16.xpose.msk.msra.mxu0 %vm9892_vm3, %v8790_v20 }
 0xf97   :  { %8798 = vmatprep.subr.msk.bf16.mxu0 %vm9892_vm3, %v8796_v1  ;;  %v8802_v19 = vpack.c.bf16 %v3570_v39, %v3565_v31  ;;  %v11009_v30 = vpack.i.bf16 %v3570_v39, %v3565_v31 }
 0xf9e   :  { %8801 = vmatpush3.bf16.xpose.msk.msra.mxu0 %vm9892_vm3, %v8796_v1 }
 0xf9f   :  { %8804 = vmatprep.subr.msk.bf16.mxu0 %vm9892_vm3, %v8802_v19 }
 0xfa6   :  { %8807 = vmatpush3.bf16.xpose.msk.msra.mxu0 %vm9892_vm3, %v8802_v19 }
 0xfad   :  { %8157 = vmatmul.mubr.msk.f32.vlgmr.msra.gmra.mrb[68].mxu0 %vm579_vm2, %v11019_v45 }
 0xfae   :  { %8159 = vmatprep.mubr.msk.f32.mxu0 %vm579_vm2, %v11023_v27 }
 0xfb1   :  { %8160 = vmatmul.mubr.msk.f32.gmra.mrb[70].mxu0 %vm579_vm2, %v11031_v25 }
 0xfb2   :  { %8162 = vmatprep.mubr.msk.f32.mxu0 %vm579_vm2, %v11034_v55 }
 0xfb5   :  { %8163 = vmatmul.mubr.msk.f32.gmra.mrb[72].mxu0 %vm579_vm2, %v11042_v40 }
 0xfb6   :  { %8165 = vmatprep.mubr.msk.f32.mxu0 %vm579_vm2, %v10986_v0 }
 0xfb9   :  { %8166 = vmatmul.mubr.msk.f32.gmra.mrb[74].mxu0 %vm579_vm2, %v10983_v22 }
0x1080   :  { %v8158_v32 = vpop.f32.mrb[68].mxu0 }
0x1081   :  { %v3806_v5 = vadd.f32 %v11053_v8, %v8158_v32  ;;  %v3800_v3 = vpop.f32.mrb[69].mxu0 }
0x1082   :  { %v3801_v4 = vadd.f32 %v11059_v48, %v3800_v3 }
0x1083   :  { %v3842_v54 = vsel %vm733_vm4, %v3806_v5, -inf }
0x1084   :  { %3843 = vmax.xlane.f32.xlu1 %v3842_v54  ;;  %v8161_v29 = vpop.f32.mrb[70].mxu0  ;;  %v3839_v36 = vsel %vm733_vm4, %v3801_v4, -inf }
0x1085   :  { %v3816_v14 = vadd.f32 %v11067_v11, %v8161_v29  ;;  %v3810_v23 = vpop.f32.mrb[71].mxu0  ;;  %3840 = vmax.xlane.f32.xlu0 %v3839_v36 }
0x1086   :  { %v3811_v42 = vadd.f32 %v11073_v61, %v3810_v23 }
0x1087   :  { %v3848_v34 = vsel %vm733_vm4, %v3816_v14, -inf }
0x1088   :  { %3849 = vmax.xlane.f32.xlu1 %v3848_v34  ;;  %v8164_v18 = vpop.f32.mrb[72].mxu0  ;;  %v3845_v26 = vsel %vm733_vm4, %v3811_v42, -inf }
0x1089   :  { %v3826_v10 = vadd.f32 %v11081_v49, %v8164_v18  ;;  %v3820_v9 = vpop.f32.mrb[73].mxu0  ;;  %3846 = vmax.xlane.f32.xlu0 %v3845_v26 }
0x108a   :  { %v3821_v33 = vadd.f32 %v11087_v59, %v3820_v9 }
0x108b   :  { %v3854_v37 = vsel %vm733_vm4, %v3826_v10, -inf }
0x108c   :  { %3855 = vmax.xlane.f32.xlu1 %v3854_v37  ;;  %v8167_v6 = vpop.f32.mrb[74].mxu0  ;;  %v3851_v63 = vsel %vm733_vm4, %v3821_v33, -inf }
0x108d   :  { %v3836_v13 = vadd.f32 %v11095_v43, %v8167_v6  ;;  %3852 = vmax.xlane.f32.xlu0 %v3851_v63  ;;  %v3830_v28 = vpop.f32.mrb[75].mxu0 }
0x108e   :  { %v3831_v20 = vadd.f32 %v11101_v56, %v3830_v28 }
0x108f   :  { %v3860_v47 = vsel %vm733_vm4, %v3836_v13, -inf }
0x1090   :  { %3861 = vmax.xlane.f32.xlu1 %v3860_v47  ;;  %v3857_v2 = vsel %vm733_vm4, %v3831_v20, -inf }
0x1091   :  { %3858 = vmax.xlane.f32.xlu0 %v3857_v2 }
0x1111   :  { %v3844_v60 = vpop.xlane.xlu1 %3843 }
0x1112   :  { %v3864_v17 = vsub.f32 %v3806_v5, %v3844_v60  ;;  %v3841_v1 = vpop.xlane.xlu0 %3840 }
0x1113   :  { %v3863_v39 = vsub.f32 %v3801_v4, %v3841_v1 }
0x1114   :  { %v3873_v57 = vmul.f32 1.442695, %v3864_v17 }
0x1115   :  { %v3871_v31 = vmul.f32 1.442695, %v3863_v39  ;;  %v3850_v5 = vpop.xlane.xlu1 %3849 }
0x1116   :  { %9462 = vpow2.f32 %v3873_v57  ;;  %v3847_v4 = vpop.xlane.xlu0 %3846  ;;  %v3866_v29 = vsub.f32 %v3816_v14, %v3850_v5 }
0x1117   :  { %9464 = vpow2.f32 %v3871_v31  ;;  %v3865_v36 = vsub.f32 %v3811_v42, %v3847_v4 }
0x1118   :  { %v3877_v18 = vmul.f32 1.442695, %v3866_v29 }
0x1119   :  { %v3856_v23 = vpop.xlane.xlu1 %3855  ;;  %v3875_v9 = vmul.f32 1.442695, %v3865_v36 }
0x111a   :  { %v3853_v34 = vpop.xlane.xlu0 %3852  ;;  %v3868_v26 = vsub.f32 %v3826_v10, %v3856_v23  ;;  %9466 = vpow2.f32 %v3877_v18 }
0x111b   :  { %v3867_v37 = vsub.f32 %v3821_v33, %v3853_v34  ;;  %9468 = vpow2.f32 %v3875_v9 }
0x111c   :  { %v3881_v6 = vmul.f32 1.442695, %v3868_v26 }
0x111d   :  { %v3879_v63 = vmul.f32 1.442695, %v3867_v37  ;;  %v3862_v17 = vpop.xlane.xlu1 %3861 }
0x111e   :  { %9470 = vpow2.f32 %v3881_v6  ;;  %v3870_v1 = vsub.f32 %v3836_v13, %v3862_v17  ;;  %v3859_v39 = vpop.xlane.xlu0 %3858 }
0x111f   :  { %9472 = vpow2.f32 %v3879_v63  ;;  %v3869_v31 = vsub.f32 %v3831_v20, %v3859_v39 }
0x1120   :  { %v11106_v19 = vpop.eup %9462  ;;  %v3885_v57 = vmul.f32 1.442695, %v3870_v1 }
0x1121   :  { %v11108_v32 = vpop.eup %9464  ;;  %v3890_v3 = vsel %vm733_vm4, %v11106_v19, 0.0 }
0x1122   :  { %3891 = vadd.xlane.f32.xlu1 %v3890_v3  ;;  %v3887_v54 = vsel %vm733_vm4, %v11108_v32, 0.0  ;;  %9474 = vpow2.f32 %v3885_v57  ;;  %v3883_v3 = vmul.f32 1.442695, %v3869_v31 }
0x1123   :  { %3888 = vadd.xlane.f32.xlu0 %v3887_v54 }
0x1124   :  { %v11118_v28 = vpop.eup %9466  ;;  %9476 = vpow2.f32 %v3883_v3 }
0x1125   :  { %v11120_v47 = vpop.eup %9468  ;;  %v3896_v14 = vsel %vm733_vm4, %v11118_v28, 0.0 }
0x1126   :  { %v3893_v10 = vsel %vm733_vm4, %v11120_v47, 0.0 }
0x1128   :  { %v11124_v42 = vpop.eup %9470 }
0x1129   :  { %v11128_v33 = vpop.eup %9472  ;;  %v3902_v2 = vsel %vm733_vm4, %v11124_v42, 0.0 }
0x112a   :  { %v3899_v60 = vsel %vm733_vm4, %v11128_v33, 0.0 }
0x112c   :  { %v11154_v13 = vpop.eup %9474 }
0x112d   :  { %v3908_v20 = vsel %vm733_vm4, %v11154_v13, 0.0 }
0x112e   :  { %v11160_v54 = vpop.eup %9476 }
0x112f   :  { %v3905_v5 = vsel %vm733_vm4, %v11160_v54, 0.0 }
0x1133   :  { %9188 = vrot.lane.b32.xlu1 %v10999_v21, %s9646_s22 }
0x1139   :  { %9183 = vrot.lane.b32.xlu0 %v10993_v15, %s9646_s22 }
0x1157   :  { %3897 = vadd.xlane.f32.xlu1 %v3896_v14 }
0x1158   :  { %3894 = vadd.xlane.f32.xlu0 %v3893_v10 }
0x115b   :  { %3903 = vadd.xlane.f32.xlu1 %v3902_v2 }
0x115c   :  { %3900 = vadd.xlane.f32.xlu0 %v3899_v60 }
0x116c   :  { %9198 = vrot.lane.b32.xlu1 %v11009_v30, %s9646_s22 }
0x1170   :  { %4058 = vrot.lane.b32.xlu1 %v11019_v45, %s9646_s22 }
0x1172   :  { %9193 = vrot.lane.b32.xlu0 %v11003_v35, %s9646_s22 }
0x1176   :  { %4056 = vrot.lane.b32.xlu0 %v10966_v46, %s9646_s22 }
0x117a   :  { %4060 = vrot.lane.b32.xlu0 %v11023_v27, %s9646_s22 }
0x117e   :  { %4064 = vrot.lane.b32.xlu0 %v11034_v55, %s9646_s22 }
0x1182   :  { %4068 = vrot.lane.b32.xlu0 %v10986_v0, %s9646_s22 }
0x1186   :  { %9203 = vrot.lane.b32.xlu0 %v10993_v15, %s9647_s23 }
0x118a   :  { %9213 = vrot.lane.b32.xlu0 %v11003_v35, %s9647_s23 }
0x118e   :  { %4732 = vrot.lane.b32.xlu0 %v10966_v46, %s9647_s23 }
0x1192   :  { %4736 = vrot.lane.b32.xlu0 %v11023_v27, %s9647_s23 }
0x1194   :  { %3909 = vadd.xlane.f32.xlu1 %v3908_v20 }
0x1196   :  { %4740 = vrot.lane.b32.xlu0 %v11034_v55, %s9647_s23 }
0x1198   :  { %3906 = vadd.xlane.f32.xlu1 %v3905_v5 }
0x119a   :  { %4744 = vrot.lane.b32.xlu0 %v10986_v0, %s9647_s23 }
0x11a9   :  { %4062 = vrot.lane.b32.xlu1 %v11031_v25, %s9646_s22 }
0x11ad   :  { %4066 = vrot.lane.b32.xlu1 %v11042_v40, %s9646_s22 }
0x11af   :  { %v3892_v4 = vpop.xlane.xlu1 %3891 }
0x11b0   :  { %9478 = vrcp.f32 %v3892_v4  ;;  %v3889_v29 = vpop.xlane.xlu0 %3888 }
0x11b1   :  { %9480 = vrcp.f32 %v3889_v29  ;;  %4070 = vrot.lane.b32.xlu1 %v10983_v22, %s9646_s22 }
0x11b3   :  { %v9189_v26 = vpop.permute.xlu1 %9188 }
0x11b4   :  { %v9184_v36 = vpop.permute.xlu0 %9183  ;;  %v9191_v6 = vunpack.i.h.bf16 %v9189_v26  ;;  %v9190_v63 = vunpack.i.l.bf16 %v9189_v26 }
0x11b5   :  { %v9186_v23 = vunpack.i.h.bf16 %v9184_v36  ;;  %v9185_v34 = vunpack.i.l.bf16 %v9184_v36  ;;  %9208 = vrot.lane.b32.xlu1 %v10999_v21, %s9647_s23 }
0x11b6   :  { %v8830_v2 = vpack.c.bf16 %v9191_v6, %v9190_v63 }
0x11b7   :  { %v8824_v18 = vpack.c.bf16 %v9186_v23, %v9185_v34 }
0x11b9   :  { %9218 = vrot.lane.b32.xlu1 %v11009_v30, %s9647_s23  ;;  %8826 = vmatprep.subr.msk.bf16.mxu1 %vm9892_vm3, %v8824_v18 }
0x11ba   :  { %v9479_v9 = vpop.eup %9478 }
0x11bb   :  { %v9481_v37 = vpop.eup %9480  ;;  %v3920_v10 = vmul.f32 %v9479_v9, %v11106_v19 }
0x11bc   :  { %v3919_v14 = vmul.f32 %v9481_v37, %v11108_v32 }
0x11bd   :  { %4734 = vrot.lane.b32.xlu1 %v11019_v45, %s9647_s23 }
0x11be   :  { %8184 = vmatprep.mubr.msk.f32.mxu1 %vm733_vm4, %v3919_v14 }
0x11bf   :  { %8185 = vmatmul.mubr.msk.f32.vlgmr.msra.gmra.mrb[76].mxu1 %vm733_vm4, %v3920_v10 }
0x11c0   :  { %8829 = vmatpush3.bf16.xpose.msk.msra.mxu1 %vm9892_vm3, %v8824_v18 }
0x11c1   :  { %8832 = vmatprep.subr.msk.bf16.mxu1 %vm9892_vm3, %v8830_v2  ;;  %4738 = vrot.lane.b32.xlu1 %v11031_v25, %s9647_s23 }
0x11c5   :  { %4742 = vrot.lane.b32.xlu1 %v11042_v40, %s9647_s23 }
0x11c8   :  { %8835 = vmatpush3.bf16.xpose.msk.msra.mxu1 %vm9892_vm3, %v8830_v2 }
0x11c9   :  { %4746 = vrot.lane.b32.xlu1 %v10983_v22, %s9647_s23 }
0x11e4   :  { %v3898_v19 = vpop.xlane.xlu1 %3897 }
0x11e5   :  { %9482 = vrcp.f32 %v3898_v19  ;;  %v3895_v32 = vpop.xlane.xlu0 %3894 }
0x11e6   :  { %9484 = vrcp.f32 %v3895_v32 }
0x11e8   :  { %v3904_v60 = vpop.xlane.xlu1 %3903 }
0x11e9   :  { %9486 = vrcp.f32 %v3904_v60  ;;  %v3901_v17 = vpop.xlane.xlu0 %3900 }
0x11ea   :  { %9488 = vrcp.f32 %v3901_v17 }
0x11ec   :  { %v9199_v1 = vpop.permute.xlu1 %9198 }
0x11ed   :  { %v9194_v39 = vpop.permute.xlu0 %9193  ;;  %v9201_v57 = vunpack.i.h.bf16 %v9199_v1  ;;  %v9200_v31 = vunpack.i.l.bf16 %v9199_v1 }
0x11ee   :  { %v9196_v3 = vunpack.i.h.bf16 %v9194_v39  ;;  %v9195_v20 = vunpack.i.l.bf16 %v9194_v39 }
0x11ef   :  { %v9483_v5 = vpop.eup %9482  ;;  %v8842_v34 = vpack.c.bf16 %v9201_v57, %v9200_v31 }
0x11f0   :  { %v9485_v4 = vpop.eup %9484  ;;  %v8836_v29 = vpack.c.bf16 %v9196_v3, %v9195_v20  ;;  %v3922_v18 = vmul.f32 %v9483_v5, %v11118_v28  ;;  %v4059_v32 = vpop.permute.xlu1 %4058 }
0x11f1   :  { %v4057_v36 = vpop.permute.xlu0 %4056  ;;  %v3921_v23 = vmul.f32 %v9485_v4, %v11120_v47 }
0x11f2   :  { %8838 = vmatprep.subr.msk.bf16.mxu1 %vm9892_vm3, %v8836_v29 }
0x11f3   :  { %v9487_v26 = vpop.eup %9486  ;;  %8187 = vmatprep.mubr.msk.f32.mxu1 %vm733_vm4, %v3921_v23  ;;  %8841 = vmatpush3.bf16.xpose.msk.msra.mxu1 %vm9892_vm3, %v8836_v29 }
0x11f4   :  { %v9489_v9 = vpop.eup %9488  ;;  %8188 = vmatmul.mubr.msk.f32.gmra.mrb[78].mxu1 %vm733_vm4, %v3922_v18  ;;  %8844 = vmatprep.subr.msk.bf16.mxu1 %vm9892_vm3, %v8842_v34  ;;  %v3924_v6 = vmul.f32 %v9487_v26, %v11124_v42 }
0x11f5   :  { %v4061_v37 = vpop.permute.xlu0 %4060  ;;  %v3923_v47 = vmul.f32 %v9489_v9, %v11128_v33 }
0x11f7   :  { %8190 = vmatprep.mubr.msk.f32.mxu1 %vm733_vm4, %v3923_v47 }
0x11f8   :  { %8191 = vmatmul.mubr.msk.f32.gmra.mrb[80].mxu1 %vm733_vm4, %v3924_v6 }
0x11f9   :  { %v4065_v28 = vpop.permute.xlu0 %4064 }
0x11fb   :  { %8847 = vmatpush3.bf16.xpose.msk.msra.mxu1 %vm9892_vm3, %v8842_v34 }
0x11fd   :  { %v4069_v63 = vpop.permute.xlu0 %4068 }
0x1201   :  { %v9204_v14 = vpop.permute.xlu0 %9203 }
0x1202   :  { %v9206_v10 = vunpack.i.h.bf16 %v9204_v14  ;;  %v9205_v2 = vunpack.i.l.bf16 %v9204_v14 }
0x1204   :  { %v8864_v19 = vpack.c.bf16 %v9206_v10, %v9205_v2 }
0x1205   :  { %v9214_v23 = vpop.permute.xlu0 %9213 }
0x1206   :  { %8866 = vmatprep.subr.msk.bf16.mxu1 %vm9892_vm3, %v8864_v19 }
0x1209   :  { %v4733_v18 = vpop.permute.xlu0 %4732 }
0x120d   :  { %v4737_v6 = vpop.permute.xlu0 %4736 }
0x1221   :  { %v3910_v33 = vpop.xlane.xlu1 %3909 }
0x1222   :  { %9490 = vrcp.f32 %v3910_v33 }
0x1225   :  { %v3907_v42 = vpop.xlane.xlu1 %3906 }
0x1226   :  { %9492 = vrcp.f32 %v3907_v42 }
0x1229   :  { %v4063_v60 = vpop.permute.xlu1 %4062 }
0x122c   :  { %v9491_v1 = vpop.eup %9490 }
0x122d   :  { %v4067_v17 = vpop.permute.xlu1 %4066  ;;  %v3926_v3 = vmul.f32 %v9491_v1, %v11154_v13  ;;  %v9216_v13 = vunpack.i.h.bf16 %v9214_v23 }
0x1230   :  { %v9493_v39 = vpop.eup %9492 }
0x1231   :  { %v4071_v57 = vpop.permute.xlu1 %4070  ;;  %v3925_v31 = vmul.f32 %v9493_v39, %v11160_v54  ;;  %v9215_v54 = vunpack.i.l.bf16 %v9214_v23 }
0x1233   :  { %8193 = vmatprep.mubr.msk.f32.mxu1 %vm733_vm4, %v3925_v31 }
0x1234   :  { %8194 = vmatmul.mubr.msk.f32.gmra.mrb[82].mxu1 %vm733_vm4, %v3926_v3 }
0x1235   :  { %v9209_v20 = vpop.permute.xlu1 %9208  ;;  %8212 = vmatprep.mubr.msk.f32.mxu1 %vm579_vm2, %v4057_v36  ;;  %v8876_v36 = vpack.c.bf16 %v9216_v13, %v9215_v54 }
0x1236   :  { %v9211_v5 = vunpack.i.h.bf16 %v9209_v20  ;;  %v9210_v4 = vunpack.i.l.bf16 %v9209_v20 }
0x1238   :  { %v8870_v29 = vpack.c.bf16 %v9211_v5, %v9210_v4  ;;  %8213 = vmatmul.mubr.msk.f32.vlgmr.msra.gmra.mrb[84].mxu1 %vm579_vm2, %v4059_v32 }
0x1239   :  { %8869 = vmatpush3.bf16.xpose.msk.msra.mxu1 %vm9892_vm3, %v8864_v19  ;;  %8215 = vmatprep.mubr.msk.f32.mxu1 %vm579_vm2, %v4061_v37  ;;  %v9219_v34 = vpop.permute.xlu1 %9218 }
0x123a   :  { %8872 = vmatprep.subr.msk.bf16.mxu1 %vm9892_vm3, %v8870_v29  ;;  %v9221_v26 = vunpack.i.h.bf16 %v9219_v34  ;;  %v9220_v9 = vunpack.i.l.bf16 %v9219_v34 }
0x123c   :  { %8216 = vmatmul.mubr.msk.f32.gmra.mrb[86].mxu1 %vm579_vm2, %v4063_v60  ;;  %v8882_v37 = vpack.c.bf16 %v9221_v26, %v9220_v9 }
0x123d   :  { %8218 = vmatprep.mubr.msk.f32.mxu1 %vm579_vm2, %v4065_v28  ;;  %v4735_v47 = vpop.permute.xlu1 %4734 }
0x1240   :  { %8219 = vmatmul.mubr.msk.f32.gmra.mrb[88].mxu1 %vm579_vm2, %v4067_v17 }
0x1241   :  { %8875 = vmatpush3.bf16.xpose.msk.msra.mxu1 %vm9892_vm3, %v8870_v29  ;;  %8221 = vmatprep.mubr.msk.f32.mxu1 %vm579_vm2, %v4069_v63  ;;  %v4739_v28 = vpop.permute.xlu1 %4738  ;;  %v4741_v63 = vpop.permute.xlu0 %4740 }
0x1242   :  { %8878 = vmatprep.subr.msk.bf16.mxu1 %vm9892_vm3, %v8876_v36 }
0x1244   :  { %8222 = vmatmul.mubr.msk.f32.gmra.mrb[90].mxu1 %vm579_vm2, %v4071_v57 }
0x1245   :  { %8296 = vmatprep.mubr.msk.f32.mxu1 %vm579_vm2, %v4733_v18  ;;  %v4743_v14 = vpop.permute.xlu1 %4742  ;;  %v4745_v10 = vpop.permute.xlu0 %4744 }
0x1249   :  { %8881 = vmatpush3.bf16.xpose.msk.msra.mxu1 %vm9892_vm3, %v8876_v36  ;;  %v4747_v2 = vpop.permute.xlu1 %4746 }
0x124a   :  { %8884 = vmatprep.subr.msk.bf16.mxu1 %vm9892_vm3, %v8882_v37 }
0x1251   :  { %8887 = vmatpush3.bf16.xpose.msk.msra.mxu1 %vm9892_vm3, %v8882_v37 }
0x1258   :  { %8297 = vmatmul.mubr.msk.f32.vlgmr.msra.gmra.mrb[92].mxu1 %vm579_vm2, %v4735_v47 }
0x1259   :  { %8299 = vmatprep.mubr.msk.f32.mxu1 %vm579_vm2, %v4737_v6 }
0x125c   :  { %8300 = vmatmul.mubr.msk.f32.gmra.mrb[94].mxu1 %vm579_vm2, %v4739_v28 }
0x125d   :  { %8302 = vmatprep.mubr.msk.f32.mxu1 %vm579_vm2, %v4741_v63 }
0x1260   :  { %8303 = vmatmul.mubr.msk.f32.gmra.mrb[96].mxu1 %vm579_vm2, %v4743_v14 }
0x1261   :  { %8305 = vmatprep.mubr.msk.f32.mxu1 %vm579_vm2, %v4745_v10 }
0x1264   :  { %8306 = vmatmul.mubr.msk.f32.gmra.mrb[98].mxu1 %vm579_vm2, %v4747_v2 }
0x1292   :  { %v11250_v19 = vpop.f32.mrb[76].mxu1 }
0x1293   :  { %v11252_v32 = vpop.f32.mrb[77].mxu1 }
0x12c7   :  { %v11254_v33 = vpop.f32.mrb[78].mxu1 }
0x12c8   :  { %v11256_v42 = vpop.f32.mrb[79].mxu1 }
0x12cb   :  { %v11258_v60 = vpop.f32.mrb[80].mxu1 }
0x12cc   :  { %v11260_v17 = vpop.f32.mrb[81].mxu1 }
0x1307   :  { %v11262_v1 = vpop.f32.mrb[82].mxu1 }
0x1308   :  { %12075 = vst [vmem:[#allocation9_spill] sm:$0xff] %v11262_v1  ;;  %v11264_v39 = vpop.f32.mrb[83].mxu1 }
0x1309   :  { %12076 = vst [vmem:[#allocation8_spill] sm:$0xff] %v11264_v39 }
0x130b   :  { %v8214_v57 = vpop.f32.mrb[84].mxu1 }
0x130c   :  { %v4192_v31 = vadd.f32 %v11053_v8, %v8214_v57  ;;  %v4186_v3 = vpop.f32.mrb[85].mxu1 }
0x130d   :  { %v4187_v20 = vadd.f32 %v11059_v48, %v4186_v3 }
0x130e   :  { %v4228_v5 = vsel %vm733_vm4, %v4192_v31, -inf }
0x130f   :  { %4229 = vmax.xlane.f32.xlu1 %v4228_v5  ;;  %v8217_v4 = vpop.f32.mrb[86].mxu1  ;;  %v4225_v29 = vsel %vm733_vm4, %v4187_v20, -inf }
0x1310   :  { %v4202_v23 = vadd.f32 %v11067_v11, %v8217_v4  ;;  %v4196_v13 = vpop.f32.mrb[87].mxu1  ;;  %4226 = vmax.xlane.f32.xlu0 %v4225_v29 }
0x1311   :  { %v4197_v36 = vadd.f32 %v11073_v61, %v4196_v13 }
0x1312   :  { %v4234_v54 = vsel %vm733_vm4, %v4202_v23, -inf }
0x1313   :  { %v8220_v34 = vpop.f32.mrb[88].mxu1  ;;  %v4231_v6 = vsel %vm733_vm4, %v4197_v36, -inf }
0x1314   :  { %v4212_v18 = vadd.f32 %v11081_v49, %v8220_v34  ;;  %v4206_v26 = vpop.f32.mrb[89].mxu1  ;;  %4235 = vmax.xlane.f32.xlu0 %v4234_v54 }
0x1315   :  { %v4207_v37 = vadd.f32 %v11087_v59, %v4206_v26 }
0x1316   :  { %v4240_v9 = vsel %vm733_vm4, %v4212_v18, -inf }
0x1317   :  { %4241 = vmax.xlane.f32.xlu1 %v4240_v9  ;;  %v8223_v47 = vpop.f32.mrb[90].mxu1  ;;  %v4237_v2 = vsel %vm733_vm4, %v4207_v37, -inf }
0x1318   :  { %v4222_v28 = vadd.f32 %v11095_v43, %v8223_v47  ;;  %v4216_v63 = vpop.f32.mrb[91].mxu1  ;;  %4232 = vmax.xlane.f32.xlu0 %v4231_v6 }
0x1319   :  { %v4217_v10 = vadd.f32 %v11101_v56, %v4216_v63 }
0x131a   :  { %v4246_v14 = vsel %vm733_vm4, %v4222_v28, -inf }
0x131b   :  { %4247 = vmax.xlane.f32.xlu1 %v4246_v14  ;;  %v4243_v57 = vsel %vm733_vm4, %v4217_v10, -inf }
0x131c   :  { %4238 = vmax.xlane.f32.xlu0 %v4237_v2 }
0x1320   :  { %4244 = vmax.xlane.f32.xlu0 %v4243_v57 }
0x132b   :  { %v11282_v3 = vpop.f32.mrb[92].mxu1 }
0x132c   :  { %v11284_v5 = vpop.f32.mrb[93].mxu1  ;;  %9228 = vrot.lane.b32.xlu1 %v10978_v7, %s9646_s22 }
0x132f   :  { %v11288_v4 = vpop.f32.mrb[94].mxu1 }
0x1330   :  { %v11290_v29 = vpop.f32.mrb[95].mxu1 }
0x1333   :  { %v11292_v13 = vpop.f32.mrb[96].mxu1 }
0x1334   :  { %v11294_v54 = vpop.f32.mrb[97].mxu1 }
0x1336   :  { %9223 = vrot.lane.b32.xlu0 %v10970_v12, %s9646_s22 }
0x1337   :  { %v11298_v34 = vpop.f32.mrb[98].mxu1 }
0x1338   :  { %v11300_v26 = vpop.f32.mrb[99].mxu1 }
0x139c   :  { %v4230_v9 = vpop.xlane.xlu1 %4229 }
0x139d   :  { %v4250_v47 = vsub.f32 %v4192_v31, %v4230_v9  ;;  %v4227_v6 = vpop.xlane.xlu0 %4226 }
0x139e   :  { %v4249_v63 = vsub.f32 %v4187_v20, %v4227_v6 }
0x139f   :  { %v4259_v14 = vmul.f32 1.442695, %v4250_v47 }
0x13a0   :  { %v4257_v2 = vmul.f32 1.442695, %v4249_v63 }
0x13a1   :  { %9494 = vpow2.f32 %v4259_v14  ;;  %v4236_v57 = vpop.xlane.xlu0 %4235 }
0x13a2   :  { %9496 = vpow2.f32 %v4257_v2  ;;  %v4252_v53 = vsub.f32 %v4202_v23, %v4236_v57 }
0x13a4   :  { %v4263_v44 = vmul.f32 1.442695, %v4252_v53  ;;  %v4242_v38 = vpop.xlane.xlu1 %4241 }
0x13a5   :  { %v4254_v58 = vsub.f32 %v4212_v18, %v4242_v38  ;;  %v4233_v41 = vpop.xlane.xlu0 %4232 }
0x13a6   :  { %9498 = vpow2.f32 %v4263_v44  ;;  %v4251_v24 = vsub.f32 %v4197_v36, %v4233_v41 }
0x13a7   :  { %v4267_v51 = vmul.f32 1.442695, %v4254_v58 }
0x13a8   :  { %v4261_v52 = vmul.f32 1.442695, %v4251_v24  ;;  %v4248_v1 = vpop.xlane.xlu1 %4247 }
0x13a9   :  { %9500 = vpow2.f32 %v4267_v51  ;;  %v4256_v39 = vsub.f32 %v4222_v28, %v4248_v1  ;;  %v4239_v31 = vpop.xlane.xlu0 %4238 }
0x13aa   :  { %9502 = vpow2.f32 %v4261_v52  ;;  %v4253_v20 = vsub.f32 %v4207_v37, %v4239_v31 }
0x13ab   :  { %v11302_v9 = vpop.eup %9494  ;;  %v4271_v47 = vmul.f32 1.442695, %v4256_v39 }
0x13ac   :  { %v11304_v6 = vpop.eup %9496  ;;  %v4265_v23 = vmul.f32 1.442695, %v4253_v20  ;;  %v4276_v38 = vsel %vm733_vm4, %v11302_v9, 0.0  ;;  %v9229_v58 = vpop.permute.xlu1 %9228 }
0x13ad   :  { %9504 = vpow2.f32 %v4271_v47  ;;  %4277 = vadd.xlane.f32.xlu1 %v4276_v38  ;;  %v4245_v41 = vpop.xlane.xlu0 %4244  ;;  %v4273_v24 = vsel %vm733_vm4, %v11304_v6, 0.0  ;;  %v9231_v37 = vunpack.i.h.bf16 %v9229_v58  ;;  %v9230_v28 = vunpack.i.l.bf16 %v9229_v58 }
0x13ae   :  { %9506 = vpow2.f32 %v4265_v23  ;;  %v4255_v51 = vsub.f32 %v4217_v10, %v4245_v41  ;;  %4274 = vadd.xlane.f32.xlu0 %v4273_v24 }
0x13af   :  { %v8852_v31 = vpack.c.bf16 %v9231_v37, %v9230_v28 }
0x13b0   :  { %v11310_v52 = vpop.eup %9498  ;;  %v4269_v53 = vmul.f32 1.442695, %v4255_v51 }
0x13b1   :  { %v9224_v44 = vpop.permute.xlu0 %9223  ;;  %v4282_v1 = vsel %vm733_vm4, %v11310_v52, 0.0 }
0x13b2   :  { %9508 = vpow2.f32 %v4269_v53  ;;  %v9226_v39 = vunpack.i.h.bf16 %v9224_v44  ;;  %v9225_v36 = vunpack.i.l.bf16 %v9224_v44  ;;  %4283 = vadd.xlane.f32.xlu1 %v4282_v1 }
0x13b3   :  { %v11314_v18 = vpop.eup %9500 }
0x13b4   :  { %v11316_v63 = vpop.eup %9502  ;;  %v8848_v10 = vpack.c.bf16 %v9226_v39, %v9225_v36  ;;  %v4288_v14 = vsel %vm733_vm4, %v11314_v18, 0.0 }
0x13b5   :  { %v4279_v2 = vsel %vm733_vm4, %v11316_v63, 0.0 }
0x13b6   :  { %4289 = vadd.xlane.f32.xlu1 %v4288_v14  ;;  %4280 = vadd.xlane.f32.xlu0 %v4279_v2 }
0x13b7   :  { %v11322_v57 = vpop.eup %9504  ;;  %8849 = vmatprep.subr.bf16.mxu0 %v8848_v10 }
0x13b8   :  { %v11324_v20 = vpop.eup %9506  ;;  %8851 = vmatpush3.bf16.msra.mxu0 %v8848_v10  ;;  %v4294_v47 = vsel %vm733_vm4, %v11322_v57, 0.0 }
0x13b9   :  { %8853 = vmatprep.subr.bf16.mxu0 %v8852_v31  ;;  %v4285_v23 = vsel %vm733_vm4, %v11324_v20, 0.0 }
0x13ba   :  { %4295 = vadd.xlane.f32.xlu1 %v4294_v47  ;;  %4286 = vadd.xlane.f32.xlu0 %v4285_v23 }
0x13bc   :  { %v11330_v38 = vpop.eup %9508  ;;  %8855 = vmatpush3.bf16.msra.mxu0 %v8852_v31 }
0x13bd   :  { %v4291_v41 = vsel %vm733_vm4, %v11330_v38, 0.0 }
0x13be   :  { %4292 = vadd.xlane.f32.xlu1 %v4291_v41 }
0x13cf   :  { %9238 = vrot.lane.b32.xlu1 %v10991_v50, %s9646_s22 }
0x13d0   :  { %9233 = vrot.lane.b32.xlu0 %v10980_v16, %s9646_s22 }
0x13d3   :  { %9248 = vrot.lane.b32.xlu1 %v10999_v21, %s9648_s24  ;;  %v11372_v21 = vadd.f32 %v11073_v61, %v11290_v29 }
0x13d4   :  { %9243 = vrot.lane.b32.xlu0 %v10993_v15, %s9648_s24  ;;  %v11368_v15 = vadd.f32 %v11053_v8, %v11282_v3  ;;  %v11402_v8 = vadd.f32 %v11101_v56, %v11300_v26 }
0x13d6   :  { %v4919_v61 = vsel %vm733_vm4, %v11402_v8, -inf }
0x13d7   :  { %9258 = vrot.lane.b32.xlu1 %v11009_v30, %s9648_s24  ;;  %v4907_v30 = vsel %vm733_vm4, %v11372_v21, -inf }
0x13d8   :  { %9253 = vrot.lane.b32.xlu0 %v11003_v35, %s9648_s24 }
0x13db   :  { %5281 = vrot.lane.b32.xlu1 %v11019_v45, %s9648_s24  ;;  %v4904_v45 = vsel %vm733_vm4, %v11368_v15, -inf }
0x13dc   :  { %5279 = vrot.lane.b32.xlu0 %v10966_v46, %s9648_s24  ;;  %v11364_v46 = vadd.f32 %v11059_v48, %v11284_v5 }
0x13de   :  { %v4901_v35 = vsel %vm733_vm4, %v11364_v46, -inf }
0x13df   :  { %5285 = vrot.lane.b32.xlu1 %v11031_v25, %s9648_s24  ;;  %v11394_v25 = vadd.f32 %v11095_v43, %v11298_v34 }
0x13e0   :  { %5283 = vrot.lane.b32.xlu0 %v11023_v27, %s9648_s24  ;;  %v11390_v27 = vadd.f32 %v11087_v59, %v11294_v54 }
0x13e2   :  { %v4913_v48 = vsel %vm733_vm4, %v11390_v27, -inf }
0x13e3   :  { %5289 = vrot.lane.b32.xlu1 %v11042_v40, %s9648_s24 }
0x13e4   :  { %5287 = vrot.lane.b32.xlu0 %v11034_v55, %s9648_s24 }
0x13e7   :  { %5293 = vrot.lane.b32.xlu1 %v10983_v22, %s9648_s24  ;;  %v11378_v22 = vadd.f32 %v11067_v11, %v11288_v4  ;;  %v4922_v11 = vsel %vm733_vm4, %v11394_v25, -inf }
0x13e8   :  { %5291 = vrot.lane.b32.xlu0 %v10986_v0, %s9648_s24  ;;  %v11382_v0 = vadd.f32 %v11081_v49, %v11292_v13 }
0x13e9   :  { %v4910_v55 = vsel %vm733_vm4, %v11378_v22, -inf }
0x13ea   :  { %v4916_v40 = vsel %vm733_vm4, %v11382_v0, -inf }
0x1407   :  { %4902 = vmax.xlane.f32.xlu0 %v4901_v35 }
0x140b   :  { %4908 = vmax.xlane.f32.xlu0 %v4907_v30  ;;  %4905 = vmax.xlane.f32.xlu1 %v4904_v45 }
0x140f   :  { %4911 = vmax.xlane.f32.xlu0 %v4910_v55  ;;  %4917 = vmax.xlane.f32.xlu1 %v4916_v40 }
0x1413   :  { %4914 = vmax.xlane.f32.xlu0 %v4913_v48  ;;  %4923 = vmax.xlane.f32.xlu1 %v4922_v11 }
0x1417   :  { %4920 = vmax.xlane.f32.xlu0 %v4919_v61 }
0x1424   :  { %9268 = vrot.lane.b32.xlu1 %v10978_v7, %s9647_s23 }
0x142d   :  { %9263 = vrot.lane.b32.xlu0 %v10970_v12, %s9647_s23 }
0x143a   :  { %v4278_v49 = vpop.xlane.xlu1 %4277 }
0x143b   :  { %v4275_v59 = vpop.xlane.xlu0 %4274 }
0x143c   :  { %9510 = vrcp.f32 %v4275_v59 }
0x143d   :  { %9512 = vrcp.f32 %v4278_v49 }
0x143f   :  { %v4284_v43 = vpop.xlane.xlu1 %4283 }
0x1443   :  { %v4290_v56 = vpop.xlane.xlu1 %4289  ;;  %v4281_v3 = vpop.xlane.xlu0 %4280 }
0x1444   :  { %9514 = vrcp.f32 %v4281_v3 }
0x1445   :  { %9516 = vrcp.f32 %v4284_v43 }
0x1446   :  { %v9511_v5 = vpop.eup %9510 }
0x1447   :  { %v4296_v4 = vpop.xlane.xlu1 %4295  ;;  %v4287_v29 = vpop.xlane.xlu0 %4286  ;;  %v4305_v13 = vmul.f32 %v9511_v5, %v11304_v6 }
0x1448   :  { %9518 = vrcp.f32 %v4287_v29  ;;  %v9513_v28 = vpop.eup %9512 }
0x1449   :  { %8240 = vmatprep.mubr.msk.f32.mxu0 %vm733_vm4, %v4305_v13  ;;  %9520 = vrcp.f32 %v4290_v56  ;;  %v4306_v23 = vmul.f32 %v9513_v28, %v11302_v9 }
0x144b   :  { %v4293_v54 = vpop.xlane.xlu1 %4292  ;;  %v9234_v34 = vpop.permute.xlu0 %9233 }
0x144c   :  { %v9236_v26 = vunpack.i.h.bf16 %v9234_v34  ;;  %v9235_v24 = vunpack.i.l.bf16 %v9234_v34  ;;  %9522 = vrcp.f32 %v4293_v54 }
0x144d   :  { %9524 = vrcp.f32 %v4296_v4 }
0x144e   :  { %v8856_v51 = vpack.c.bf16 %v9236_v26, %v9235_v24  ;;  %v9515_v2 = vpop.eup %9514 }
0x144f   :  { %v9239_v58 = vpop.permute.xlu1 %9238  ;;  %v9244_v53 = vpop.permute.xlu0 %9243  ;;  %v4307_v45 = vmul.f32 %v9515_v2, %v11316_v63 }
0x1450   :  { %v9241_v44 = vunpack.i.h.bf16 %v9239_v58  ;;  %v9240_v1 = vunpack.i.l.bf16 %v9239_v58  ;;  %v9246_v39 = vunpack.i.h.bf16 %v9244_v53  ;;  %v9245_v36 = vunpack.i.l.bf16 %v9244_v53  ;;  %8857 = vmatprep.subr.bf16.mxu0 %v8856_v51  ;;  %v9517_v35 = vpop.eup %9516 }
0x1451   :  { %8859 = vmatpush3.bf16.msra.mxu0 %v8856_v51  ;;  %v4308_v11 = vmul.f32 %v9517_v35, %v11310_v52 }
0x1452   :  { %v8860_v6 = vpack.c.bf16 %v9241_v44, %v9240_v1  ;;  %v8904_v37 = vpack.c.bf16 %v9246_v39, %v9245_v36  ;;  %v9519_v55 = vpop.eup %9518 }
0x1453   :  { %v9249_v10 = vpop.permute.xlu1 %9248  ;;  %v9254_v14 = vpop.permute.xlu0 %9253  ;;  %v4309_v61 = vmul.f32 %v9519_v55, %v11324_v20 }
0x1454   :  { %v9251_v31 = vunpack.i.h.bf16 %v9249_v10  ;;  %v9250_v47 = vunpack.i.l.bf16 %v9249_v10  ;;  %8861 = vmatprep.subr.bf16.mxu0 %v8860_v6  ;;  %8906 = vmatprep.subr.msk.bf16.mxu1 %vm9892_vm3, %v8904_v37  ;;  %v9256_v40 = vunpack.i.h.bf16 %v9254_v14  ;;  %v9255_v48 = vunpack.i.l.bf16 %v9254_v14  ;;  %v9521_v9 = vpop.eup %9520 }
0x1455   :  { %8863 = vmatpush3.bf16.msra.mxu0 %v8860_v6  ;;  %8909 = vmatpush3.bf16.xpose.msk.msra.mxu1 %vm9892_vm3, %v8904_v37  ;;  %v4310_v43 = vmul.f32 %v9521_v9, %v11314_v18 }
0x1456   :  { %v8910_v41 = vpack.c.bf16 %v9251_v31, %v9250_v47  ;;  %v9523_v49 = vpop.eup %9522  ;;  %v8916_v59 = vpack.c.bf16 %v9256_v40, %v9255_v48  ;;  %v6929_v48 = vld [vmem:[%s12018_s4 + $0xe0] sm:$0xff] }
0x1457   :  { %v5280_v30 = vpop.permute.xlu0 %5279  ;;  %v9259_v63 = vpop.permute.xlu1 %9258  ;;  %v4311_v52 = vmul.f32 %v9523_v49, %v11330_v38 }
0x1458   :  { %8241 = vmatmul.mubr.msk.f32.vlgmr.msra.gmra.mrb[76].mxu0 %vm733_vm4, %v4306_v23  ;;  %8912 = vmatprep.subr.msk.bf16.mxu1 %vm9892_vm3, %v8910_v41  ;;  %v9525_v56 = vpop.eup %9524  ;;  %v9261_v3 = vunpack.i.h.bf16 %v9259_v63  ;;  %v9260_v20 = vunpack.i.l.bf16 %v9259_v63 }
0x1459   :  { %8366 = vmatprep.mubr.msk.f32.mxu1 %vm579_vm2, %v5280_v30  ;;  %8243 = vmatprep.mubr.msk.f32.mxu0 %vm733_vm4, %v4307_v45  ;;  %v4312_v5 = vmul.f32 %v9525_v56, %v11322_v57 }
0x145a   :  { %v8922_v4 = vpack.c.bf16 %v9261_v3, %v9260_v20 }
0x145b   :  { %v5282_v18 = vpop.permute.xlu1 %5281  ;;  %v5284_v38 = vpop.permute.xlu0 %5283 }
0x145c   :  { %8244 = vmatmul.mubr.msk.f32.gmra.mrb[78].mxu0 %vm733_vm4, %v4308_v11 }
0x145d   :  { %8246 = vmatprep.mubr.msk.f32.mxu0 %vm733_vm4, %v4309_v61  ;;  %8915 = vmatpush3.bf16.xpose.msk.msra.mxu1 %vm9892_vm3, %v8910_v41 }
0x145e   :  { %8918 = vmatprep.subr.msk.bf16.mxu1 %vm9892_vm3, %v8916_v59 }
0x145f   :  { %v5286_v29 = vpop.permute.xlu1 %5285  ;;  %v5288_v57 = vpop.permute.xlu0 %5287 }
0x1460   :  { %8247 = vmatmul.mubr.msk.f32.gmra.mrb[80].mxu0 %vm733_vm4, %v4310_v43 }
0x1461   :  { %8249 = vmatprep.mubr.msk.f32.mxu0 %vm733_vm4, %v4311_v52 }
0x1463   :  { %v5290_v13 = vpop.permute.xlu1 %5289  ;;  %v5292_v54 = vpop.permute.xlu0 %5291 }
0x1464   :  { %8250 = vmatmul.mubr.msk.f32.gmra.mrb[82].mxu0 %vm733_vm4, %v4312_v5 }
0x1465   :  { %8921 = vmatpush3.bf16.xpose.msk.msra.mxu1 %vm9892_vm3, %v8916_v59 }
0x1466   :  { %8924 = vmatprep.subr.msk.bf16.mxu1 %vm9892_vm3, %v8922_v4 }
0x1467   :  { %v5294_v34 = vpop.permute.xlu1 %5293 }
0x146d   :  { %8927 = vmatpush3.bf16.xpose.msk.msra.mxu1 %vm9892_vm3, %v8922_v4 }
0x1474   :  { %8367 = vmatmul.mubr.msk.f32.vlgmr.msra.gmra.mrb[100].mxu1 %vm579_vm2, %v5282_v18 }
0x1475   :  { %8369 = vmatprep.mubr.msk.f32.mxu1 %vm579_vm2, %v5284_v38 }
0x1478   :  { %8370 = vmatmul.mubr.msk.f32.gmra.mrb[102].mxu1 %vm579_vm2, %v5286_v29 }
0x1479   :  { %8372 = vmatprep.mubr.msk.f32.mxu1 %vm579_vm2, %v5288_v57 }
0x147c   :  { %8373 = vmatmul.mubr.msk.f32.gmra.mrb[104].mxu1 %vm579_vm2, %v5290_v13 }
0x147d   :  { %8375 = vmatprep.mubr.msk.f32.mxu1 %vm579_vm2, %v5292_v54 }
0x1480   :  { %8376 = vmatmul.mubr.msk.f32.gmra.mrb[106].mxu1 %vm579_vm2, %v5294_v34 }
0x1494   :  { %v4903_v62 = vpop.xlane.xlu0 %4902 }
0x1495   :  { %v4925_v26 = vsub.f32 %v11364_v46, %v4903_v62 }
0x1497   :  { %v4933_v24 = vmul.f32 1.442695, %v4925_v26 }
0x1498   :  { %v4906_v51 = vpop.xlane.xlu1 %4905  ;;  %v4909_v58 = vpop.xlane.xlu0 %4908 }
0x1499   :  { %9526 = vpow2.f32 %v4933_v24  ;;  %v4926_v53 = vsub.f32 %v11368_v15, %v4906_v51  ;;  %v4927_v44 = vsub.f32 %v11372_v21, %v4909_v58 }
0x149b   :  { %v4935_v1 = vmul.f32 1.442695, %v4926_v53  ;;  %v4937_v39 = vmul.f32 1.442695, %v4927_v44 }
0x149c   :  { %v4918_v36 = vpop.xlane.xlu1 %4917  ;;  %v4912_v6 = vpop.xlane.xlu0 %4911 }
0x149d   :  { %9528 = vpow2.f32 %v4935_v1  ;;  %v4930_v37 = vsub.f32 %v11382_v0, %v4918_v36  ;;  %v4928_v28 = vsub.f32 %v11378_v22, %v4912_v6 }
0x149e   :  { %9530 = vpow2.f32 %v4937_v39 }
0x149f   :  { %v4939_v10 = vmul.f32 1.442695, %v4928_v28  ;;  %v4943_v46 = vmul.f32 1.442695, %v4930_v37 }
0x14a0   :  { %v4924_v14 = vpop.xlane.xlu1 %4923  ;;  %v4915_v2 = vpop.xlane.xlu0 %4914 }
0x14a1   :  { %v4932_v31 = vsub.f32 %v11394_v25, %v4924_v14  ;;  %v4929_v15 = vsub.f32 %v11390_v27, %v4915_v2  ;;  %9532 = vpow2.f32 %v4939_v10  ;;  %v9638_v14 = vld [vmem:[%s12021_s2 + $0x8] sm:$0xff] }
0x14a2   :  { %9534 = vpow2.f32 %v4943_v46  ;;  %v12077_v46 = vld [vmem:[#allocation8_spill] sm:$0xff] }
0x14a3   :  { %v11461_v21 = vpop.eup %9526  ;;  %v4941_v47 = vmul.f32 1.442695, %v4929_v15  ;;  %v4947_v23 = vmul.f32 1.442695, %v4932_v31  ;;  %v9639_v31 = vld [vmem:[%s12021_s2] sm:$0xff] }
0x14a4   :  { %v4921_v41 = vpop.xlane.xlu0 %4920  ;;  %v4949_v0 = vsel %vm733_vm4, %v11461_v21, 0.0  ;;  %v9269_v57 = vpop.permute.xlu1 %9268 }
0x14a5   :  { %v4931_v22 = vsub.f32 %v11402_v8, %v4921_v41  ;;  %4950 = vadd.xlane.f32.xlu0 %v4949_v0  ;;  %9536 = vpow2.f32 %v4941_v47  ;;  %v6930_v8 = vld [vmem:[%s12018_s4 + $0xe8] sm:$0xff]  ;;  %v9271_v51 = vunpack.i.h.bf16 %v9269_v57  ;;  %v9270_v58 = vunpack.i.l.bf16 %v9269_v57  ;;  %v12078_v47 = vld [vmem:[#allocation9_spill] sm:$0xff] }
0x14a6   :  { %9538 = vpow2.f32 %v4947_v23  ;;  %8252 = vmatprep.subr.mxu0 %v6930_v8 }
0x14a7   :  { %v11466_v35 = vpop.eup %9528  ;;  %v4945_v27 = vmul.f32 1.442695, %v4931_v22  ;;  %8253 = vmatpush3.msra.mxu0 %v6930_v8  ;;  %v8892_v1 = vpack.c.bf16 %v9271_v51, %v9270_v58 }
0x14a8   :  { %v11468_v30 = vpop.eup %9530  ;;  %v4952_v25 = vsel %vm733_vm4, %v11466_v35, 0.0  ;;  %8266 = vmatprep.subr.mxu0 %v6929_v48  ;;  %v9264_v52 = vpop.permute.xlu0 %9263 }
0x14a9   :  { %4953 = vadd.xlane.f32.xlu1 %v4952_v25  ;;  %v4955_v45 = vsel %vm733_vm4, %v11468_v30, 0.0  ;;  %9540 = vpow2.f32 %v4945_v27  ;;  %v9266_v3 = vunpack.i.h.bf16 %v9264_v52  ;;  %v9265_v20 = vunpack.i.l.bf16 %v9264_v52 }
0x14aa   :  { %4956 = vadd.xlane.f32.xlu0 %v4955_v45 }
0x14ab   :  { %v11477_v55 = vpop.eup %9532  ;;  %v8888_v18 = vpack.c.bf16 %v9266_v3, %v9265_v20  ;;  %v9642_v3 = vld [vmem:[%s12021_s2 + $0x28] sm:$0xff] }
0x14ac   :  { %v4958_v40 = vsel %vm733_vm4, %v11477_v55, 0.0  ;;  %v11484_v11 = vpop.eup %9534 }
0x14ad   :  { %4959 = vadd.xlane.f32.xlu1 %v4958_v40  ;;  %v4964_v61 = vsel %vm733_vm4, %v11484_v11, 0.0 }
0x14af   :  { %v11486_v9 = vpop.eup %9536 }
0x14b0   :  { %v4961_v49 = vsel %vm733_vm4, %v11486_v9, 0.0  ;;  %v11492_v59 = vpop.eup %9538 }
0x14b1   :  { %4965 = vadd.xlane.f32.xlu1 %v4964_v61  ;;  %4962 = vadd.xlane.f32.xlu0 %v4961_v49  ;;  %v4970_v63 = vsel %vm733_vm4, %v11492_v59, 0.0  ;;  %v9641_v61 = vld [vmem:[%s12021_s2 + $0x18] sm:$0xff] }
0x14b3   :  { %v11496_v43 = vpop.eup %9540 }
0x14b4   :  { %v4967_v56 = vsel %vm733_vm4, %v11496_v43, 0.0 }
0x14b5   :  { %4971 = vadd.xlane.f32.xlu1 %v4970_v63 }
0x14b9   :  { %4968 = vadd.xlane.f32.xlu1 %v4967_v56 }
0x14c7   :  { %9273 = vrot.lane.b32.xlu0 %v10980_v16, %s9647_s23 }
0x14ca   :  { %9278 = vrot.lane.b32.xlu1 %v10991_v50, %s9647_s23 }
0x152b   :  { %v8242_v5 = vpop.f32.mrb[76].mxu0 }
0x152c   :  { %v4435_v4 = vpop.f32.mrb[77].mxu0 }
0x152d   :  { %8254 = vmatprep.mubr.msk.f32.mxu0 %vm579_vm2, %v4435_v4 }
0x152e   :  { %8255 = vmatmul.mubr.msk.f32.vlgmr.msra.gmra.mrb[84].mxu0 %vm579_vm2, %v8242_v5 }
0x152f   :  { %8267 = vmatpush3.msra.mxu0 %v6929_v48  ;;  %v8245_v38 = vpop.f32.mrb[78].mxu0 }
0x1530   :  { %8889 = vmatprep.subr.bf16.mxu0 %v8888_v18  ;;  %v4445_v29 = vpop.f32.mrb[79].mxu0 }
0x1531   :  { %8257 = vmatprep.mubr.msk.f32.mxu0 %vm579_vm2, %v4445_v29  ;;  %v9643_v29 = vld [vmem:[%s12021_s2 + $0x20] sm:$0xff] }
0x1532   :  { %8258 = vmatmul.mubr.msk.f32.gmra.mrb[86].mxu0 %vm579_vm2, %v8245_v38  ;;  %v4951_v34 = vpop.xlane.xlu0 %4950 }
0x1533   :  { %v8248_v13 = vpop.f32.mrb[80].mxu0  ;;  %9542 = vrcp.f32 %v4951_v34 }
0x1534   :  { %v4455_v54 = vpop.f32.mrb[81].mxu0 }
0x1535   :  { %8260 = vmatprep.mubr.msk.f32.mxu0 %vm579_vm2, %v4455_v54 }
0x1536   :  { %v4954_v62 = vpop.xlane.xlu1 %4953  ;;  %8261 = vmatmul.mubr.msk.f32.gmra.mrb[88].mxu0 %vm579_vm2, %v8248_v13 }
0x1537   :  { %v8251_v26 = vpop.f32.mrb[82].mxu0  ;;  %v4957_v53 = vpop.xlane.xlu0 %4956  ;;  %9544 = vrcp.f32 %v4954_v62 }
0x1538   :  { %v4465_v24 = vpop.f32.mrb[83].mxu0  ;;  %9546 = vrcp.f32 %v4957_v53 }
0x1539   :  { %8263 = vmatprep.mubr.msk.f32.mxu0 %vm579_vm2, %v4465_v24 }
0x153a   :  { %8264 = vmatmul.mubr.msk.f32.gmra.mrb[90].mxu0 %vm579_vm2, %v8251_v26  ;;  %v4960_v44 = vpop.xlane.xlu1 %4959 }
0x153b   :  { %8268 = vmatprep.mubr.msk.f32.mxu0 %vm579_vm2, %v11252_v32  ;;  %9548 = vrcp.f32 %v4960_v44 }
0x153e   :  { %8269 = vmatmul.mubr.msk.f32.vlgmr.msra.gmra.mrb[84].mxu0 %vm579_vm2, %v11250_v19  ;;  %v4966_v39 = vpop.xlane.xlu1 %4965  ;;  %v4963_v36 = vpop.xlane.xlu0 %4962 }
0x153f   :  { %8891 = vmatpush3.bf16.msra.mxu0 %v8888_v18  ;;  %8271 = vmatprep.mubr.msk.f32.mxu0 %vm579_vm2, %v11256_v42  ;;  %v9543_v19 = vpop.eup %9542  ;;  %9550 = vrcp.f32 %v4963_v36 }
0x1540   :  { %8893 = vmatprep.subr.bf16.mxu0 %v8892_v1  ;;  %v4981_v15 = vmul.f32 %v9543_v19, %v11461_v21  ;;  %9552 = vrcp.f32 %v4966_v39  ;;  %v9640_v21 = vld [vmem:[%s12021_s2 + $0x10] sm:$0xff] }
0x1541   :  { %v9545_v48 = vpop.eup %9544 }
0x1542   :  { %8272 = vmatmul.mubr.msk.f32.gmra.mrb[86].mxu0 %vm579_vm2, %v11254_v33  ;;  %v4972_v6 = vpop.xlane.xlu1 %4971  ;;  %v9274_v37 = vpop.permute.xlu0 %9273  ;;  %v4982_v4 = vmul.f32 %v9545_v48, %v11466_v35  ;;  %v9644_v35 = vld [vmem:[%s12021_s2 + $0x38] sm:$0xff] }
0x1543   :  { %8895 = vmatpush3.bf16.msra.mxu0 %v8892_v1  ;;  %8274 = vmatprep.mubr.msk.f32.mxu0 %vm579_vm2, %v11260_v17  ;;  %v9276_v32 = vunpack.i.h.bf16 %v9274_v37  ;;  %v9275_v28 = vunpack.i.l.bf16 %v9274_v37  ;;  %v9547_v52 = vpop.eup %9546 }
0x1544   :  { %v4983_v34 = vmul.f32 %v9547_v52, %v11468_v30  ;;  %v9645_v30 = vld [vmem:[%s12021_s2 + $0x30] sm:$0xff] }
0x1545   :  { %v8896_v10 = vpack.c.bf16 %v9276_v32, %v9275_v28  ;;  %v9549_v38 = vpop.eup %9548 }
0x1546   :  { %8275 = vmatmul.mubr.msk.f32.gmra.mrb[88].mxu0 %vm579_vm2, %v11258_v60  ;;  %v4969_v42 = vpop.xlane.xlu1 %4968  ;;  %v4984_v58 = vmul.f32 %v9549_v38, %v11477_v55 }
0x1547   :  { %8277 = vmatprep.mubr.msk.f32.mxu0 %vm579_vm2, %v12077_v46  ;;  %v8368_v33 = vpop.f32.mrb[100].mxu1  ;;  %8897 = vmatprep.subr.bf16.mxu0 %v8896_v10  ;;  %9554 = vrcp.f32 %v4969_v42 }
0x1548   :  { %v11529_v17 = vadd.f32 %v9638_v14, %v8368_v33  ;;  %v5409_v2 = vpop.f32.mrb[101].mxu1  ;;  %8899 = vmatpush3.bf16.msra.mxu0 %v8896_v10  ;;  %9556 = vrcp.f32 %v4972_v6 }
0x1549   :  { %v11534_v60 = vadd.f32 %v9639_v31, %v5409_v2  ;;  %v9551_v62 = vpop.eup %9550 }
0x154a   :  { %8278 = vmatmul.mubr.msk.f32.gmra.mrb[90].mxu0 %vm579_vm2, %v12078_v47  ;;  %v5451_v23 = vsel %vm733_vm4, %v11529_v17, -inf  ;;  %v9279_v41 = vpop.permute.xlu1 %9278  ;;  %v9553_v53 = vpop.eup %9552  ;;  %v4985_v39 = vmul.f32 %v9551_v62, %v11486_v9 }
0x154b   :  { %5452 = vmax.xlane.f32.xlu1 %v5451_v23  ;;  %8324 = vmatprep.mubr.msk.f32.mxu0 %vm733_vm4, %v4981_v15  ;;  %v8371_v0 = vpop.f32.mrb[102].mxu1  ;;  %v5448_v22 = vsel %vm733_vm4, %v11534_v60, -inf  ;;  %v9281_v27 = vunpack.i.h.bf16 %v9279_v41  ;;  %v9280_v25 = vunpack.i.l.bf16 %v9279_v41  ;;  %v4986_v55 = vmul.f32 %v9553_v53, %v11484_v11  ;;  %v6931_v11 = vld [vmem:[%s12018_s4 + $0xf0] sm:$0xff] }
0x154c   :  { %v5419_v45 = vpop.f32.mrb[103].mxu1  ;;  %5449 = vmax.xlane.f32.xlu0 %v5448_v22  ;;  %v11552_v49 = vadd.f32 %v9641_v61, %v8371_v0 }
0x154d   :  { %v11547_v8 = vadd.f32 %v9640_v21, %v5419_v45  ;;  %v8900_v40 = vpack.c.bf16 %v9281_v27, %v9280_v25 }
0x154e   :  { %v5457_v54 = vsel %vm733_vm4, %v11552_v49, -inf }
0x154f   :  { %v8374_v63 = vpop.f32.mrb[104].mxu1  ;;  %v5454_v56 = vsel %vm733_vm4, %v11547_v8, -inf  ;;  %8901 = vmatprep.subr.bf16.mxu0 %v8900_v40 }
0x1550   :  { %v11559_v20 = vadd.f32 %v9642_v3, %v8374_v63  ;;  %v5429_v5 = vpop.f32.mrb[105].mxu1  ;;  %5455 = vmax.xlane.f32.xlu0 %v5454_v56  ;;  %8903 = vmatpush3.bf16.msra.mxu0 %v8900_v40 }
0x1551   :  { %v11567_v57 = vadd.f32 %v9643_v29, %v5429_v5  ;;  %v9555_v36 = vpop.eup %9554  ;;  %8336 = vmatprep.subr.mxu0 %v6931_v11 }
0x1552   :  { %v5463_v18 = vsel %vm733_vm4, %v11559_v20, -inf  ;;  %v9557_v6 = vpop.eup %9556  ;;  %v4987_v32 = vmul.f32 %v9555_v36, %v11496_v43 }
0x1553   :  { %5464 = vmax.xlane.f32.xlu1 %v5463_v18  ;;  %v8377_v13 = vpop.f32.mrb[106].mxu1  ;;  %8325 = vmatmul.mubr.msk.f32.vlgmr.msra.gmra.mrb[92].mxu0 %vm733_vm4, %v4982_v4  ;;  %v5460_v1 = vsel %vm733_vm4, %v11567_v57, -inf  ;;  %v4988_v9 = vmul.f32 %v9557_v6, %v11492_v59 }
0x1554   :  { %v5445_v26 = vadd.f32 %v9644_v35, %v8377_v13  ;;  %v5439_v24 = vpop.f32.mrb[107].mxu1  ;;  %5458 = vmax.xlane.f32.xlu0 %v5457_v54  ;;  %8327 = vmatprep.mubr.msk.f32.mxu0 %vm733_vm4, %v4983_v34 }
0x1555   :  { %v5440_v44 = vadd.f32 %v9645_v30, %v5439_v24  ;;  %8337 = vmatpush3.msra.mxu0 %v6931_v11 }
0x1556   :  { %v5469_v51 = vsel %vm733_vm4, %v5445_v26, -inf }
0x1557   :  { %5470 = vmax.xlane.f32.xlu1 %v5469_v51  ;;  %8328 = vmatmul.mubr.msk.f32.gmra.mrb[94].mxu0 %vm733_vm4, %v4984_v58  ;;  %v5466_v37 = vsel %vm733_vm4, %v5440_v44, -inf }
0x1558   :  { %5461 = vmax.xlane.f32.xlu0 %v5460_v1  ;;  %8330 = vmatprep.mubr.msk.f32.mxu0 %vm733_vm4, %v4985_v39 }
0x155b   :  { %8331 = vmatmul.mubr.msk.f32.gmra.mrb[96].mxu0 %vm733_vm4, %v4986_v55 }
0x155c   :  { %5467 = vmax.xlane.f32.xlu0 %v5466_v37  ;;  %8333 = vmatprep.mubr.msk.f32.mxu0 %vm733_vm4, %v4987_v32 }
0x155f   :  { %8334 = vmatmul.mubr.msk.f32.gmra.mrb[98].mxu0 %vm733_vm4, %v4988_v9 }
0x1568   :  { %9288 = vrot.lane.b32.xlu1 %v10978_v7, %s9648_s24 }
0x1572   :  { %9283 = vrot.lane.b32.xlu0 %v10970_v12, %s9648_s24 }
0x15d8   :  { %v5453_v43 = vpop.xlane.xlu1 %5452 }
0x15d9   :  { %v5473_v28 = vsub.f32 %v11529_v17, %v5453_v43  ;;  %v5450_v19 = vpop.xlane.xlu0 %5449 }
0x15da   :  { %v5472_v59 = vsub.f32 %v11534_v60, %v5450_v19 }
0x15db   :  { %v5482_v10 = vmul.f32 1.442695, %v5473_v28 }
0x15dc   :  { %v5480_v42 = vmul.f32 1.442695, %v5472_v59 }
0x15dd   :  { %9558 = vpow2.f32 %v5482_v10  ;;  %v5456_v46 = vpop.xlane.xlu0 %5455 }
0x15de   :  { %9560 = vpow2.f32 %v5480_v42  ;;  %v5474_v7 = vsub.f32 %v11547_v8, %v5456_v46 }
0x15e0   :  { %v5484_v33 = vmul.f32 1.442695, %v5474_v7  ;;  %v5465_v14 = vpop.xlane.xlu1 %5464 }
0x15e1   :  { %v5477_v2 = vsub.f32 %v11559_v20, %v5465_v14  ;;  %v5459_v31 = vpop.xlane.xlu0 %5458 }
0x15e2   :  { %9562 = vpow2.f32 %v5484_v33  ;;  %v5475_v12 = vsub.f32 %v11552_v49, %v5459_v31  ;;  %v6932_v31 = vld [vmem:[%s12018_s4 + $0xf8] sm:$0xff] }
0x15e3   :  { %v5490_v15 = vmul.f32 1.442695, %v5477_v2 }
0x15e4   :  { %v5486_v17 = vmul.f32 1.442695, %v5475_v12  ;;  %v5471_v47 = vpop.xlane.xlu1 %5470 }
0x15e5   :  { %v5479_v23 = vsub.f32 %v5445_v26, %v5471_v47  ;;  %v5462_v60 = vpop.xlane.xlu0 %5461 }
0x15e6   :  { %9564 = vpow2.f32 %v5486_v17  ;;  %v5476_v41 = vsub.f32 %v11567_v57, %v5462_v60 }
0x15e7   :  { %v11607_v0 = vpop.eup %9558  ;;  %9566 = vpow2.f32 %v5490_v15  ;;  %v5494_v27 = vmul.f32 1.442695, %v5479_v23 }
0x15e8   :  { %v11609_v22 = vpop.eup %9560  ;;  %v5488_v25 = vmul.f32 1.442695, %v5476_v41  ;;  %v5499_v45 = vsel %vm733_vm4, %v11607_v0, 0.0  ;;  %v9289_v62 = vpop.permute.xlu1 %9288 }
0x15e9   :  { %5500 = vadd.xlane.f32.xlu1 %v5499_v45  ;;  %v5468_v21 = vpop.xlane.xlu0 %5467  ;;  %v5496_v8 = vsel %vm733_vm4, %v11609_v22, 0.0  ;;  %v9291_v35 = vunpack.i.h.bf16 %v9289_v62  ;;  %v9290_v26 = vunpack.i.l.bf16 %v9289_v62 }
0x15ea   :  { %9568 = vpow2.f32 %v5488_v25  ;;  %v5478_v40 = vsub.f32 %v5440_v44, %v5468_v21  ;;  %5497 = vadd.xlane.f32.xlu0 %v5496_v8 }
0x15eb   :  { %9570 = vpow2.f32 %v5494_v27  ;;  %v8932_v58 = vpack.c.bf16 %v9291_v35, %v9290_v26 }
0x15ec   :  { %v11615_v48 = vpop.eup %9562  ;;  %v5492_v61 = vmul.f32 1.442695, %v5478_v40 }
0x15ed   :  { %v9284_v49 = vpop.permute.xlu0 %9283  ;;  %v5502_v63 = vsel %vm733_vm4, %v11615_v48, 0.0 }
0x15ee   :  { %v9286_v56 = vunpack.i.h.bf16 %v9284_v49  ;;  %v9285_v52 = vunpack.i.l.bf16 %v9284_v49  ;;  %5503 = vadd.xlane.f32.xlu0 %v5502_v63  ;;  %9572 = vpow2.f32 %v5492_v61 }
0x15f0   :  { %v11619_v3 = vpop.eup %9564  ;;  %v8928_v20 = vpack.c.bf16 %v9286_v56, %v9285_v52 }
0x15f1   :  { %v5505_v5 = vsel %vm733_vm4, %v11619_v3, 0.0  ;;  %v11623_v4 = vpop.eup %9566 }
0x15f2   :  { %5506 = vadd.xlane.f32.xlu1 %v5505_v5  ;;  %8929 = vmatprep.subr.bf16.mxu0 %v8928_v20  ;;  %v5511_v38 = vsel %vm733_vm4, %v11623_v4, 0.0 }
0x15f4   :  { %v11625_v18 = vpop.eup %9568 }
0x15f5   :  { %v5508_v29 = vsel %vm733_vm4, %v11625_v18, 0.0  ;;  %v11631_v57 = vpop.eup %9570 }
0x15f6   :  { %5512 = vadd.xlane.f32.xlu1 %v5511_v38  ;;  %5509 = vadd.xlane.f32.xlu0 %v5508_v29  ;;  %v5517_v13 = vsel %vm733_vm4, %v11631_v57, 0.0  ;;  %v12079_v38 = vld [vmem:[#allocation10_spill] sm:$0xff] }
0x15f8   :  { %v11635_v54 = vpop.eup %9572 }
0x15f9   :  { %v5514_v34 = vsel %vm733_vm4, %v11635_v54, 0.0 }
0x15fa   :  { %5518 = vadd.xlane.f32.xlu1 %v5517_v13 }
0x15fe   :  { %5515 = vadd.xlane.f32.xlu1 %v5514_v34 }
0x160c   :  { %9293 = vrot.lane.b32.xlu0 %v10980_v16, %s9648_s24 }
0x160f   :  { %9298 = vrot.lane.b32.xlu1 %v10991_v50, %s9648_s24 }
0x1626   :  { %v8326_v24 = vpop.f32.mrb[92].mxu0 }
0x1627   :  { %v5103_v51 = vpop.f32.mrb[93].mxu0 }
0x1628   :  { %8338 = vmatprep.mubr.msk.f32.mxu0 %vm579_vm2, %v5103_v51  ;;  %v12081_v51 = vld [vmem:[#allocation2_spill] sm:$0xff] }
0x1629   :  { %8339 = vmatmul.mubr.msk.f32.vlgmr.msra.gmra.mrb[84].mxu0 %vm579_vm2, %v8326_v24 }
0x162a   :  { %8931 = vmatpush3.bf16.msra.mxu0 %v8928_v20  ;;  %v8329_v53 = vpop.f32.mrb[94].mxu0 }
0x162b   :  { %8933 = vmatprep.subr.bf16.mxu0 %v8932_v58  ;;  %v5113_v30 = vpop.f32.mrb[95].mxu0 }
0x162c   :  { %8341 = vmatprep.mubr.msk.f32.mxu0 %vm579_vm2, %v5113_v30 }
0x162d   :  { %8342 = vmatmul.mubr.msk.f32.gmra.mrb[86].mxu0 %vm579_vm2, %v8329_v53 }
0x162e   :  { %8935 = vmatpush3.bf16.msra.mxu0 %v8932_v58  ;;  %v8332_v16 = vpop.f32.mrb[96].mxu0 }
0x162f   :  { %v5123_v50 = vpop.f32.mrb[97].mxu0 }
0x1630   :  { %8344 = vmatprep.mubr.msk.f32.mxu0 %vm579_vm2, %v5123_v50 }
0x1631   :  { %8345 = vmatmul.mubr.msk.f32.gmra.mrb[88].mxu0 %vm579_vm2, %v8332_v16 }
0x1632   :  { %v8335_v44 = vpop.f32.mrb[98].mxu0 }
0x1633   :  { %v5133_v1 = vpop.f32.mrb[99].mxu0 }
0x1634   :  { %8347 = vmatprep.mubr.msk.f32.mxu0 %vm579_vm2, %v5133_v1 }
0x1635   :  { %8348 = vmatmul.mubr.msk.f32.gmra.mrb[90].mxu0 %vm579_vm2, %v8335_v44  ;;  %v12082_v44 = vld [vmem:[#allocation3_spill] sm:$0xff] }
0x1676   :  { %v5501_v36 = vpop.xlane.xlu1 %5500 }
0x1677   :  { %v5498_v39 = vpop.xlane.xlu0 %5497 }
0x1678   :  { %9574 = vrcp.f32 %v5498_v39 }
0x1679   :  { %9576 = vrcp.f32 %v5501_v36  ;;  %v12083_v36 = vld [vmem:[#allocation5_spill] sm:$0xff] }
0x167b   :  { %v5504_v55 = vpop.xlane.xlu0 %5503 }
0x167c   :  { %9578 = vrcp.f32 %v5504_v55 }
0x167f   :  { %v5507_v6 = vpop.xlane.xlu1 %5506 }
0x1680   :  { %9580 = vrcp.f32 %v5507_v6 }
0x1682   :  { %v9575_v37 = vpop.eup %9574 }
0x1683   :  { %v5513_v32 = vpop.xlane.xlu1 %5512  ;;  %v5510_v9 = vpop.xlane.xlu0 %5509  ;;  %v5528_v11 = vmul.f32 %v9575_v37, %v11609_v22 }
0x1684   :  { %9582 = vrcp.f32 %v5510_v9  ;;  %v9577_v2 = vpop.eup %9576 }
0x1685   :  { %8394 = vmatprep.mubr.msk.f32.mxu0 %vm733_vm4, %v5528_v11  ;;  %9584 = vrcp.f32 %v5513_v32  ;;  %v5529_v15 = vmul.f32 %v9577_v2, %v11607_v0  ;;  %v12084_v11 = vld [vmem:[#allocation4_spill] sm:$0xff] }
0x1686   :  { %v9579_v12 = vpop.eup %9578 }
0x1687   :  { %v5519_v43 = vpop.xlane.xlu1 %5518  ;;  %v9294_v28 = vpop.permute.xlu0 %9293  ;;  %v5530_v47 = vmul.f32 %v9579_v12, %v11615_v48 }
0x1688   :  { %v9296_v19 = vunpack.i.h.bf16 %v9294_v28  ;;  %v9295_v59 = vunpack.i.l.bf16 %v9294_v28 }
0x168a   :  { %v8936_v10 = vpack.c.bf16 %v9296_v19, %v9295_v59  ;;  %v9581_v17 = vpop.eup %9580  ;;  %v12085_v59 = vld [vmem:[#allocation6_spill] sm:$0xff] }
0x168b   :  { %v5516_v42 = vpop.xlane.xlu1 %5515  ;;  %v5531_v60 = vmul.f32 %v9581_v17, %v11619_v3  ;;  %v7092_v3 = vld [vmem:[%s12020_s5 + $0x7] ss:$0 sm:$0xff] }
0x168c   :  { %8937 = vmatprep.subr.bf16.mxu0 %v8936_v10  ;;  %9586 = vrcp.f32 %v5516_v42 }
0x168d   :  { %8939 = vmatpush3.bf16.msra.mxu0 %v8936_v10  ;;  %9588 = vrcp.f32 %v5519_v43 }
0x168e   :  { %v9583_v23 = vpop.eup %9582 }
0x168f   :  { %v9299_v46 = vpop.permute.xlu1 %9298  ;;  %v9585_v41 = vpop.eup %9584  ;;  %v5532_v22 = vmul.f32 %v9583_v23, %v11625_v18 }
0x1690   :  { %v9301_v7 = vunpack.i.h.bf16 %v9299_v46  ;;  %v9300_v33 = vunpack.i.l.bf16 %v9299_v46  ;;  %v5533_v0 = vmul.f32 %v9585_v41, %v11623_v4  ;;  %v12086_v46 = vld [vmem:[#allocation7_spill] sm:$0xff] }
0x1692   :  { %v8940_v14 = vpack.c.bf16 %v9301_v7, %v9300_v33 }
0x1694   :  { %8941 = vmatprep.subr.bf16.mxu0 %v8940_v14 }
0x1695   :  { %8943 = vmatpush3.bf16.msra.mxu0 %v8940_v14 }
0x1696   :  { %8406 = vmatprep.subr.mxu0 %v6932_v31  ;;  %v9587_v27 = vpop.eup %9586 }
0x1697   :  { %v9589_v25 = vpop.eup %9588  ;;  %v5534_v45 = vmul.f32 %v9587_v27, %v11635_v54 }
0x1698   :  { %8395 = vmatmul.mubr.msk.f32.vlgmr.msra.gmra.mrb[100].mxu0 %vm733_vm4, %v5529_v15  ;;  %v5535_v21 = vmul.f32 %v9589_v25, %v11631_v57  ;;  %v12080_v57 = vld [vmem:[#allocation11_spill] sm:$0xff] }
0x1699   :  { %8397 = vmatprep.mubr.msk.f32.mxu0 %vm733_vm4, %v5530_v47  ;;  %8407 = vmatpush3.msra.mxu0 %v6932_v31 }
0x169c   :  { %8398 = vmatmul.mubr.msk.f32.gmra.mrb[102].mxu0 %vm733_vm4, %v5531_v60 }
0x169d   :  { %8400 = vmatprep.mubr.msk.f32.mxu0 %vm733_vm4, %v5532_v22 }
0x16a0   :  { %8401 = vmatmul.mubr.msk.f32.gmra.mrb[104].mxu0 %vm733_vm4, %v5533_v0 }
0x16a1   :  { %8403 = vmatprep.mubr.msk.f32.mxu0 %vm733_vm4, %v5534_v45 }
0x16a4   :  { %8404 = vmatmul.mubr.msk.f32.gmra.mrb[106].mxu0 %vm733_vm4, %v5535_v21 }
0x176b   :  { %v8396_v8 = vpop.f32.mrb[100].mxu0 }
0x176c   :  { %v5650_v40 = vpop.f32.mrb[101].mxu0 }
0x176d   :  { %8408 = vmatprep.mubr.msk.f32.mxu0 %vm579_vm2, %v5650_v40 }
0x176e   :  { %8409 = vmatmul.mubr.msk.f32.vlgmr.msra.gmra.mrb[84].mxu0 %vm579_vm2, %v8396_v8 }
0x176f   :  { %v8399_v48 = vpop.f32.mrb[102].mxu0 }
0x1770   :  { %v5660_v61 = vpop.f32.mrb[103].mxu0 }
0x1771   :  { %8411 = vmatprep.mubr.msk.f32.mxu0 %vm579_vm2, %v5660_v61 }
0x1772   :  { %8412 = vmatmul.mubr.msk.f32.gmra.mrb[86].mxu0 %vm579_vm2, %v8399_v48 }
0x1773   :  { %v8402_v49 = vpop.f32.mrb[104].mxu0 }
0x1774   :  { %v5670_v63 = vpop.f32.mrb[105].mxu0 }
0x1775   :  { %8414 = vmatprep.mubr.msk.f32.mxu0 %vm579_vm2, %v5670_v63 }
0x1776   :  { %8415 = vmatmul.mubr.msk.f32.gmra.mrb[88].mxu0 %vm579_vm2, %v8402_v49 }
0x1777   :  { %v8405_v56 = vpop.f32.mrb[106].mxu0 }
0x1778   :  { %v5680_v52 = vpop.f32.mrb[107].mxu0 }
0x1779   :  { %8417 = vmatprep.mubr.msk.f32.mxu0 %vm579_vm2, %v5680_v52 }
0x177a   :  { %8418 = vmatmul.mubr.msk.f32.gmra.mrb[90].mxu0 %vm579_vm2, %v8405_v56 }
0x1841   :  { %v8410_v20 = vpop.f32.mrb[84].mxu0 }
0x1842   :  { %v5835_v5 = vadd.f32 %v8410_v20, %v7092_v3  ;;  %v5779_v4 = vpop.f32.mrb[85].mxu0 }
0x1843   :  { %v5834_v18 = vadd.f32 %v7092_v3, %v5779_v4 }
0x1844   :  { %v5843_v29 = vadd.f32 %v5835_v5, %v12079_v38 }
0x1845   :  { %v5842_v13 = vadd.f32 %v5834_v18, %v12080_v57  ;;  %v8413_v54 = vpop.f32.mrb[86].mxu0 }
0x1846   :  { %v5837_v34 = vadd.f32 %v8413_v54, %v7092_v3  ;;  %v5789_v62 = vpop.f32.mrb[87].mxu0  ;;  %v5857_v35 = vsel %vm223_vm1, %v5843_v29, 0.0 }
0x1847   :  { %v5836_v26 = vadd.f32 %v7092_v3, %v5789_v62  ;;  %5858 = vadd.xlane.f32.xlu1 %v5857_v35  ;;  %v5854_v24 = vsel %vm223_vm1, %v5842_v13, 0.0 }
0x1848   :  { %v5845_v58 = vadd.f32 %v5837_v34, %v12081_v51  ;;  %5855 = vadd.xlane.f32.xlu0 %v5854_v24 }
0x1849   :  { %v8416_v53 = vpop.f32.mrb[88].mxu0  ;;  %v5844_v1 = vadd.f32 %v5836_v26, %v12082_v44  ;;  %v7100_v44 = vld [vmem:[%s12022_s6 + $0x38] sm:$0xff] }
0x184a   :  { %v5839_v30 = vadd.f32 %v8416_v53, %v7092_v3  ;;  %v5799_v16 = vpop.f32.mrb[89].mxu0  ;;  %v5863_v50 = vsel %vm223_vm1, %v5845_v58, 0.0  ;;  %v7097_v53 = vld [vmem:[%s12022_s6 + $0x20] sm:$0xff] }
0x184b   :  { %v5838_v39 = vadd.f32 %v7092_v3, %v5799_v16  ;;  %v5860_v19 = vsel %vm223_vm1, %v5844_v1, 0.0 }
0x184c   :  { %v5847_v55 = vadd.f32 %v5839_v30, %v12083_v36  ;;  %5864 = vadd.xlane.f32.xlu0 %v5863_v50  ;;  %v7098_v30 = vld [vmem:[%s12022_s6 + $0x28] sm:$0xff]  ;;  %v7099_v50 = vld [vmem:[%s12022_s6 + $0x30] sm:$0xff] }
0x184d   :  { %v8419_v6 = vpop.f32.mrb[90].mxu0  ;;  %v5846_v43 = vadd.f32 %v5838_v39, %v12084_v11  ;;  %v8944_v16 = vpack.c.bf16 %v7098_v30, %v7097_v53  ;;  %v7111_v39 = vld [vmem:[%s12023_s8 + $0x80] sm:$0xff]  ;;  %v7112_v36 = vld [vmem:[%s12023_s8 + $0x88] sm:$0xff]  ;;  %v7118_v53 = vld [vmem:[%s12023_s8 + $0xb8] sm:$0xff] }
0x184e   :  { %v5841_v37 = vadd.f32 %v8419_v6, %v7092_v3  ;;  %v5809_v32 = vpop.f32.mrb[91].mxu0  ;;  %v5869_v9 = vsel %vm223_vm1, %v5847_v55, 0.0 }
0x184f   :  { %v5840_v28 = vadd.f32 %v7092_v3, %v5809_v32  ;;  %5870 = vadd.xlane.f32.xlu1 %v5869_v9  ;;  %v5866_v33 = vsel %vm223_vm1, %v5846_v43, 0.0  ;;  %8945 = vmatprep.subr.bf16.mxu1 %v8944_v16 }
0x1850   :  { %v5849_v10 = vadd.f32 %v5841_v37, %v12085_v59  ;;  %5861 = vadd.xlane.f32.xlu0 %v5860_v19  ;;  %8947 = vmatpush3.bf16.msra.mxu1 %v8944_v16 }
0x1851   :  { %v5848_v7 = vadd.f32 %v5840_v28, %v12086_v46 }
0x1852   :  { %v5875_v42 = vsel %vm223_vm1, %v5849_v10, 0.0 }
0x1853   :  { %5876 = vadd.xlane.f32.xlu1 %v5875_v42  ;;  %v5872_v14 = vsel %vm223_vm1, %v5848_v7, 0.0 }
0x1854   :  { %5867 = vadd.xlane.f32.xlu0 %v5866_v33 }
0x1858   :  { %5873 = vadd.xlane.f32.xlu0 %v5872_v14 }
0x18d4   :  { %v5859_v2 = vpop.xlane.xlu1 %5858 }
0x18d5   :  { %v5879_v31 = vmul.f32 0.03125, %v5859_v2  ;;  %v5856_v12 = vpop.xlane.xlu0 %5855 }
0x18d6   :  { %v5878_v15 = vmul.f32 0.03125, %v5856_v12 }
0x18d7   :  { %v11697_v17 = vsub.f32 %v5843_v29, %v5879_v31 }
0x18d8   :  { %v11699_v47 = vsub.f32 %v5842_v13, %v5878_v15 }
0x18d9   :  { %v5865_v23 = vpop.xlane.xlu0 %5864  ;;  %v5895_v60 = vmul.f32 %v11697_v17, %v11697_v17 }
0x18da   :  { %v5881_v41 = vmul.f32 0.03125, %v5865_v23  ;;  %v5894_v22 = vmul.f32 %v11699_v47, %v11699_v47 }
0x18db   :  { %v5905_v27 = vsel %vm223_vm1, %v5895_v60, 0.0  ;;  %v7095_v60 = vld [vmem:[%s12020_s5 + $0x9] ss:$0 sm:$0xff] }
0x18dc   :  { %v11706_v0 = vsub.f32 %v5845_v58, %v5881_v41  ;;  %v5871_v25 = vpop.xlane.xlu1 %5870  ;;  %5906 = vadd.xlane.f32.xlu1 %v5905_v27  ;;  %v5902_v45 = vsel %vm223_vm1, %v5894_v22, 0.0 }
0x18dd   :  { %v5883_v21 = vmul.f32 0.03125, %v5871_v25  ;;  %v5862_v8 = vpop.xlane.xlu0 %5861  ;;  %5903 = vadd.xlane.f32.xlu0 %v5902_v45 }
0x18de   :  { %v5880_v40 = vmul.f32 0.03125, %v5862_v8  ;;  %v5897_v48 = vmul.f32 %v11706_v0, %v11706_v0  ;;  %v7096_v8 = vld [vmem:[%s12020_s5 + $0xb] ss:$0 sm:$0xff] }
0x18df   :  { %v11711_v61 = vsub.f32 %v5847_v55, %v5883_v21  ;;  %v8952_v55 = vpack.c.bf16 %v7112_v36, %v7111_v39 }
0x18e0   :  { %v11713_v49 = vsub.f32 %v5844_v1, %v5880_v40  ;;  %v5877_v63 = vpop.xlane.xlu1 %5876  ;;  %v5911_v56 = vsel %vm223_vm1, %v5897_v48, 0.0  ;;  %v8948_v1 = vpack.c.bf16 %v7100_v44, %v7099_v50 }
0x18e1   :  { %v5885_v52 = vmul.f32 0.03125, %v5877_v63  ;;  %v5868_v3 = vpop.xlane.xlu0 %5867  ;;  %5912 = vadd.xlane.f32.xlu1 %v5911_v56  ;;  %v5899_v20 = vmul.f32 %v11711_v61, %v11711_v61  ;;  %v7113_v56 = vld [vmem:[%s12023_s8 + $0x90] sm:$0xff] }
0x18e2   :  { %v5882_v5 = vmul.f32 0.03125, %v5868_v3  ;;  %v5896_v4 = vmul.f32 %v11713_v49, %v11713_v49  ;;  %8949 = vmatprep.subr.bf16.mxu1 %v8948_v1 }
0x18e3   :  { %v11720_v18 = vsub.f32 %v5849_v10, %v5885_v52  ;;  %v5917_v38 = vsel %vm223_vm1, %v5899_v20, 0.0  ;;  %8951 = vmatpush3.bf16.msra.mxu1 %v8948_v1 }
0x18e4   :  { %v11723_v29 = vsub.f32 %v5846_v43, %v5882_v5  ;;  %v5908_v57 = vsel %vm223_vm1, %v5896_v4, 0.0  ;;  %8953 = vmatprep.subr.bf16.mxu1 %v8952_v55 }
0x18e5   :  { %5918 = vadd.xlane.f32.xlu1 %v5917_v38  ;;  %5909 = vadd.xlane.f32.xlu0 %v5908_v57  ;;  %v5874_v13 = vpop.xlane.xlu0 %5873  ;;  %v5901_v54 = vmul.f32 %v11720_v18, %v11720_v18  ;;  %v7115_v38 = vld [vmem:[%s12023_s8 + $0xa0] sm:$0xff]  ;;  %v7116_v57 = vld [vmem:[%s12023_s8 + $0xa8] sm:$0xff] }
0x18e6   :  { %v5884_v34 = vmul.f32 0.03125, %v5874_v13  ;;  %v5898_v62 = vmul.f32 %v11723_v29, %v11723_v29 }
0x18e7   :  { %v5923_v35 = vsel %vm223_vm1, %v5901_v54, 0.0 }
0x18e8   :  { %v11731_v26 = vsub.f32 %v5848_v7, %v5884_v34  ;;  %v5914_v24 = vsel %vm223_vm1, %v5898_v62, 0.0  ;;  %v8960_v62 = vpack.c.bf16 %v7116_v57, %v7115_v38 }
0x18e9   :  { %5924 = vadd.xlane.f32.xlu1 %v5923_v35  ;;  %5915 = vadd.xlane.f32.xlu0 %v5914_v24 }
0x18ea   :  { %v5900_v51 = vmul.f32 %v11731_v26, %v11731_v26 }
0x18ec   :  { %v5920_v58 = vsel %vm223_vm1, %v5900_v51, 0.0 }
0x18ed   :  { %5921 = vadd.xlane.f32.xlu0 %v5920_v58  ;;  %v7117_v58 = vld [vmem:[%s12023_s8 + $0xb0] sm:$0xff] }
0x18ee   :  { %v8964_v1 = vpack.c.bf16 %v7118_v53, %v7117_v58 }
0x1969   :  { %v5907_v6 = vpop.xlane.xlu1 %5906 }
0x196a   :  { %v5927_v37 = vmul.f32 0.03125, %v5907_v6  ;;  %v5904_v32 = vpop.xlane.xlu0 %5903 }
0x196b   :  { %v5926_v9 = vmul.f32 0.03125, %v5904_v32 }
0x196c   :  { %v5935_v11 = vadd.f32 1e-05, %v5927_v37 }
0x196d   :  { %v5934_v43 = vadd.f32 1e-05, %v5926_v9 }
0x196e   :  { %9590 = vrsqrt.f32 %v5935_v11  ;;  %v5913_v28 = vpop.xlane.xlu1 %5912 }
0x196f   :  { %9592 = vrsqrt.f32 %v5934_v43  ;;  %v5929_v19 = vmul.f32 0.03125, %v5913_v28  ;;  %v7121_v43 = vld [vmem:[%s12023_s8 + $0xd0] sm:$0xff] }
0x1971   :  { %v5937_v59 = vadd.f32 1e-05, %v5929_v19 }
0x1972   :  { %v5919_v10 = vpop.xlane.xlu1 %5918  ;;  %v5910_v42 = vpop.xlane.xlu0 %5909 }
0x1973   :  { %9594 = vrsqrt.f32 %v5937_v59  ;;  %v5931_v46 = vmul.f32 0.03125, %v5919_v10  ;;  %v5928_v7 = vmul.f32 0.03125, %v5910_v42  ;;  %v7123_v10 = vld [vmem:[%s12023_s8 + $0xe0] sm:$0xff]  ;;  %v7124_v42 = vld [vmem:[%s12023_s8 + $0xe8] sm:$0xff] }
0x1975   :  { %v5939_v33 = vadd.f32 1e-05, %v5931_v46  ;;  %v5936_v14 = vadd.f32 1e-05, %v5928_v7  ;;  %v8976_v46 = vpack.c.bf16 %v7124_v42, %v7123_v10  ;;  %v7125_v7 = vld [vmem:[%s12023_s8 + $0xf0] sm:$0xff] }
0x1976   :  { %v5925_v2 = vpop.xlane.xlu1 %5924  ;;  %v5916_v31 = vpop.xlane.xlu0 %5915 }
0x1977   :  { %9596 = vrsqrt.f32 %v5939_v33  ;;  %v5933_v12 = vmul.f32 0.03125, %v5925_v2  ;;  %v5930_v15 = vmul.f32 0.03125, %v5916_v31  ;;  %v7126_v33 = vld [vmem:[%s12023_s8 + $0xf8] sm:$0xff]  ;;  %v7102_v2 = vld [vmem:[%s12024_s7 + $0x1] ss:$0 sm:$0xff] }
0x1978   :  { %v9591_v23 = vpop.eup %9590  ;;  %9598 = vrsqrt.f32 %v5936_v14  ;;  %v8980_v14 = vpack.c.bf16 %v7126_v33, %v7125_v7 }
0x1979   :  { %v9593_v41 = vpop.eup %9592  ;;  %v5951_v22 = vmul.f32 %v9591_v23, %v11697_v17  ;;  %v5941_v27 = vadd.f32 1e-05, %v5933_v12  ;;  %v5938_v25 = vadd.f32 1e-05, %v5930_v15  ;;  %v7114_v17 = vld [vmem:[%s12023_s8 + $0x98] sm:$0xff] }
0x197a   :  { %v5922_v45 = vpop.xlane.xlu0 %5921  ;;  %v5950_v21 = vmul.f32 %v9593_v41, %v11699_v47  ;;  %v8956_v5 = vpack.c.bf16 %v7114_v17, %v7113_v56 }
0x197b   :  { %v5965_v40 = vmul.f32 %v7095_v60, %v5951_v22  ;;  %9600 = vrsqrt.f32 %v5941_v27  ;;  %v5932_v48 = vmul.f32 0.03125, %v5922_v45 }
0x197c   :  { %9602 = vrsqrt.f32 %v5938_v25  ;;  %v5964_v63 = vmul.f32 %v7095_v60, %v5950_v21 }
0x197d   :  { %v9595_v52 = vpop.eup %9594  ;;  %v5940_v3 = vadd.f32 1e-05, %v5932_v48  ;;  %v11771_v20 = vadd.f32 %v7096_v8, %v5965_v40 }
0x197e   :  { %v11769_v47 = vadd.f32 %v7096_v8, %v5964_v63  ;;  %v5953_v4 = vmul.f32 %v9595_v52, %v11706_v0 }
0x197f   :  { %9604 = vrsqrt.f32 %v5940_v3 }
0x1980   :  { %8428 = vmatprep.mubr.msk.f32.mxu1 %vm223_vm1, %v11769_v47  ;;  %v5967_v35 = vmul.f32 %v7095_v60, %v5953_v4 }
0x1981   :  { %v9597_v13 = vpop.eup %9596  ;;  %8429 = vmatmul.mubr.msk.f32.vlgmr.msra.gmra.mrb[108].mxu1 %vm223_vm1, %v11771_v20 }
0x1982   :  { %v9599_v54 = vpop.eup %9598  ;;  %8955 = vmatpush3.bf16.msra.mxu1 %v8952_v55  ;;  %v5955_v0 = vmul.f32 %v9597_v13, %v11711_v61  ;;  %v11795_v50 = vadd.f32 %v7096_v8, %v5967_v35  ;;  %v7119_v55 = vld [vmem:[%s12023_s8 + $0xc0] sm:$0xff] }
0x1983   :  { %v5952_v34 = vmul.f32 %v9599_v54, %v11713_v49  ;;  %8957 = vmatprep.subr.bf16.mxu1 %v8956_v5  ;;  %v7128_v54 = vld [vmem:[%s12020_s5 + $0xd] ss:$0 sm:$0xff] }
0x1984   :  { %v5969_v61 = vmul.f32 %v7095_v60, %v5955_v0 }
0x1985   :  { %v9601_v24 = vpop.eup %9600  ;;  %v5966_v51 = vmul.f32 %v7095_v60, %v5952_v34 }
0x1986   :  { %v9603_v30 = vpop.eup %9602  ;;  %8959 = vmatpush3.bf16.msra.mxu1 %v8956_v5  ;;  %v5957_v44 = vmul.f32 %v9601_v24, %v11720_v18  ;;  %v11811_v37 = vadd.f32 %v7096_v8, %v5969_v61 }
0x1987   :  { %v11792_v16 = vadd.f32 %v7096_v8, %v5966_v51  ;;  %v5954_v49 = vmul.f32 %v9603_v30, %v11723_v29  ;;  %8961 = vmatprep.subr.bf16.mxu1 %v8960_v62  ;;  %v7120_v29 = vld [vmem:[%s12023_s8 + $0xc8] sm:$0xff] }
0x1988   :  { %v5971_v9 = vmul.f32 %v7095_v60, %v5957_v44  ;;  %v8968_v11 = vpack.c.bf16 %v7120_v29, %v7119_v55 }
0x1989   :  { %v9605_v39 = vpop.eup %9604  ;;  %8431 = vmatprep.mubr.msk.f32.mxu1 %vm223_vm1, %v11792_v16  ;;  %v5968_v36 = vmul.f32 %v7095_v60, %v5954_v49 }
0x198a   :  { %8432 = vmatmul.mubr.msk.f32.gmra.mrb[110].mxu1 %vm223_vm1, %v11795_v50  ;;  %v5956_v6 = vmul.f32 %v9605_v39, %v11731_v26  ;;  %v7122_v26 = vld [vmem:[%s12023_s8 + $0xd8] sm:$0xff]  ;;  %v11827_v19 = vadd.f32 %v7096_v8, %v5971_v9 }
0x198b   :  { %v11809_v18 = vadd.f32 %v7096_v8, %v5968_v36  ;;  %8963 = vmatpush3.bf16.msra.mxu1 %v8960_v62  ;;  %v8972_v59 = vpack.c.bf16 %v7122_v26, %v7121_v43 }
0x198c   :  { %v5970_v32 = vmul.f32 %v7095_v60, %v5956_v6  ;;  %8965 = vmatprep.subr.bf16.mxu1 %v8964_v1 }
0x198d   :  { %8434 = vmatprep.mubr.msk.f32.mxu1 %vm223_vm1, %v11809_v18 }
0x198e   :  { %8435 = vmatmul.mubr.msk.f32.gmra.mrb[112].mxu1 %vm223_vm1, %v11811_v37  ;;  %v11823_v28 = vadd.f32 %v7096_v8, %v5970_v32 }
0x198f   :  { %8967 = vmatpush3.bf16.msra.mxu1 %v8964_v1 }
0x1990   :  { %8437 = vmatprep.mubr.msk.f32.mxu1 %vm223_vm1, %v11823_v28  ;;  %8969 = vmatprep.subr.bf16.mxu1 %v8968_v11 }
0x1992   :  { %8438 = vmatmul.mubr.msk.f32.gmra.mrb[114].mxu1 %vm223_vm1, %v11827_v19 }
0x1993   :  { %8971 = vmatpush3.bf16.msra.mxu1 %v8968_v11 }
0x1994   :  { %8973 = vmatprep.subr.bf16.mxu1 %v8972_v59 }
0x1997   :  { %8975 = vmatpush3.bf16.msra.mxu1 %v8972_v59 }
0x1998   :  { %8977 = vmatprep.subr.bf16.mxu1 %v8976_v46 }
0x199b   :  { %8979 = vmatpush3.bf16.msra.mxu1 %v8976_v46 }
0x199c   :  { %8981 = vmatprep.subr.bf16.mxu1 %v8980_v14 }
0x199f   :  { %8983 = vmatpush3.bf16.msra.mxu1 %v8980_v14 }
0x1a54   :  { %v8430_v31 = vpop.f32.mrb[108].mxu1 }
0x1a55   :  { %v6095_v12 = vadd.f32 %v8430_v31, %v7102_v2  ;;  %v6089_v15 = vpop.f32.mrb[109].mxu1 }
0x1a56   :  { %v6090_v23 = vadd.f32 %v7102_v2, %v6089_v15 }
0x1a57   :  { %v6129_v41 = vmax.f32 %v6095_v12, 0.0 }
0x1a58   :  { %v6128_v60 = vmax.f32 %v6090_v23, 0.0 }
0x1a5a   :  { %8472 = vmatprep.mubr.f32.mxu1 %v6128_v60 }
0x1a5b   :  { %8473 = vmatmul.mubr.f32.vlgmr.msra.gmra.mrb[116].mxu1 %v6129_v41 }
0x1a5d   :  { %v8433_v22 = vpop.f32.mrb[110].mxu1 }
0x1a5e   :  { %v6105_v27 = vadd.f32 %v8433_v22, %v7102_v2  ;;  %v6099_v25 = vpop.f32.mrb[111].mxu1 }
0x1a5f   :  { %v6100_v45 = vadd.f32 %v7102_v2, %v6099_v25 }
0x1a60   :  { %v6131_v40 = vmax.f32 %v6105_v27, 0.0 }
0x1a61   :  { %v6130_v21 = vmax.f32 %v6100_v45, 0.0  ;;  %v8436_v8 = vpop.f32.mrb[112].mxu1 }
0x1a62   :  { %v6115_v48 = vadd.f32 %v8436_v8, %v7102_v2  ;;  %v6109_v63 = vpop.f32.mrb[113].mxu1 }
0x1a63   :  { %v6110_v56 = vadd.f32 %v7102_v2, %v6109_v63  ;;  %8475 = vmatprep.mubr.f32.mxu1 %v6130_v21 }
0x1a64   :  { %8476 = vmatmul.mubr.f32.gmra.mrb[118].mxu1 %v6131_v40  ;;  %v6133_v3 = vmax.f32 %v6115_v48, 0.0 }
0x1a65   :  { %v6132_v17 = vmax.f32 %v6110_v56, 0.0  ;;  %v8439_v52 = vpop.f32.mrb[114].mxu1 }
0x1a66   :  { %v6125_v5 = vadd.f32 %v8439_v52, %v7102_v2  ;;  %v6119_v4 = vpop.f32.mrb[115].mxu1 }
0x1a67   :  { %v6120_v38 = vadd.f32 %v7102_v2, %v6119_v4  ;;  %8478 = vmatprep.mubr.f32.mxu1 %v6132_v17 }
0x1a68   :  { %8479 = vmatmul.mubr.f32.gmra.mrb[120].mxu1 %v6133_v3  ;;  %v6135_v13 = vmax.f32 %v6125_v5, 0.0 }
0x1a69   :  { %v6134_v57 = vmax.f32 %v6120_v38, 0.0 }
0x1a6b   :  { %8481 = vmatprep.mubr.f32.mxu1 %v6134_v57 }
0x1a6c   :  { %8482 = vmatmul.mubr.f32.gmra.mrb[122].mxu1 %v6135_v13 }
0x1b2e   :  { %v8474_v34 = vpop.f32.mrb[116].mxu1 }
0x1b2f   :  { %v6233_v62 = vadd.f32 %v8474_v34, %v7128_v54  ;;  %v6227_v35 = vpop.f32.mrb[117].mxu1 }
0x1b30   :  { %v6228_v0 = vadd.f32 %v7128_v54, %v6227_v35 }
0x1b31   :  { %v6267_v24 = vadd.f32 %v6233_v62, %v11771_v20 }
0x1b32   :  { %v6266_v51 = vadd.f32 %v6228_v0, %v11769_v47 }
0x1b33   :  { %v6281_v58 = vsel %vm223_vm1, %v6267_v24, 0.0 }
0x1b34   :  { %6282 = vadd.xlane.f32.xlu1 %v6281_v58  ;;  %v6278_v53 = vsel %vm223_vm1, %v6266_v51, 0.0 }
0x1b35   :  { %6279 = vadd.xlane.f32.xlu0 %v6278_v53 }
0x1b37   :  { %v8477_v30 = vpop.f32.mrb[118].mxu1 }
0x1b38   :  { %v6243_v49 = vadd.f32 %v8477_v30, %v7128_v54  ;;  %v6237_v61 = vpop.f32.mrb[119].mxu1  ;;  %v6419_v30 = vld [vmem:[%s12025_s9] sm:$0xff] }
0x1b39   :  { %v6238_v44 = vadd.f32 %v7128_v54, %v6237_v61 }
0x1b3a   :  { %v6269_v1 = vadd.f32 %v6243_v49, %v11795_v50  ;;  %v6420_v49 = vld [vmem:[%s12025_s9 + $0x8] sm:$0xff] }
0x1b3b   :  { %v6268_v39 = vadd.f32 %v6238_v44, %v11792_v16  ;;  %v8480_v36 = vpop.f32.mrb[120].mxu1  ;;  %v8984_v61 = vpack.c.bf16 %v6420_v49, %v6419_v30  ;;  %v6421_v44 = vld [vmem:[%s12025_s9 + $0x10] sm:$0xff] }
0x1b3c   :  { %v6253_v55 = vadd.f32 %v8480_v36, %v7128_v54  ;;  %v6247_v29 = vpop.f32.mrb[121].mxu1  ;;  %v6287_v20 = vsel %vm223_vm1, %v6269_v1, 0.0  ;;  %v6566_v36 = vld [vmem:[%s12026_s10] sm:$0xff] }
0x1b3d   :  { %v6248_v47 = vadd.f32 %v7128_v54, %v6247_v29  ;;  %6288 = vadd.xlane.f32.xlu1 %v6287_v20  ;;  %v6284_v6 = vsel %vm223_vm1, %v6268_v39, 0.0  ;;  %8985 = vmatprep.subr.bf16.mxu0 %v8984_v61 }
0x1b3e   :  { %v6271_v32 = vadd.f32 %v6253_v55, %v11811_v37  ;;  %6285 = vadd.xlane.f32.xlu0 %v6284_v6  ;;  %8987 = vmatpush3.bf16.msra.mxu0 %v8984_v61  ;;  %v6567_v55 = vld [vmem:[%s12026_s10 + $0x8] sm:$0xff] }
0x1b3f   :  { %v6270_v9 = vadd.f32 %v6248_v47, %v11809_v18  ;;  %v8483_v11 = vpop.f32.mrb[122].mxu1  ;;  %v8992_v29 = vpack.c.bf16 %v6567_v55, %v6566_v36 }
0x1b40   :  { %v6263_v43 = vadd.f32 %v8483_v11, %v7128_v54  ;;  %v6257_v26 = vpop.f32.mrb[123].mxu1  ;;  %v6293_v50 = vsel %vm223_vm1, %v6271_v32, 0.0 }
0x1b41   :  { %v6258_v16 = vadd.f32 %v7128_v54, %v6257_v26  ;;  %6294 = vadd.xlane.f32.xlu1 %v6293_v50  ;;  %v6290_v59 = vsel %vm223_vm1, %v6270_v9, 0.0 }
0x1b42   :  { %v6273_v10 = vadd.f32 %v6263_v43, %v11827_v19  ;;  %6291 = vadd.xlane.f32.xlu0 %v6290_v59 }
0x1b43   :  { %v6272_v42 = vadd.f32 %v6258_v16, %v11823_v28 }
0x1b44   :  { %v6299_v46 = vsel %vm223_vm1, %v6273_v10, 0.0 }
0x1b45   :  { %6300 = vadd.xlane.f32.xlu1 %v6299_v46  ;;  %v6296_v37 = vsel %vm223_vm1, %v6272_v42, 0.0 }
0x1b46   :  { %6297 = vadd.xlane.f32.xlu0 %v6296_v37 }
0x1bc1   :  { %v6283_v18 = vpop.xlane.xlu1 %6282 }
0x1bc2   :  { %v6303_v7 = vmul.f32 0.03125, %v6283_v18  ;;  %v6280_v33 = vpop.xlane.xlu0 %6279 }
0x1bc3   :  { %v6302_v14 = vmul.f32 0.03125, %v6280_v33 }
0x1bc4   :  { %v11865_v2 = vsub.f32 %v6267_v24, %v6303_v7  ;;  %v11926_v7 = vld [vmem:[%s12020_s5 + $0xf] ss:$0 sm:$0xff] }
0x1bc5   :  { %v11867_v31 = vsub.f32 %v6266_v51, %v6302_v14 }
0x1bc6   :  { %v6319_v19 = vmul.f32 %v11865_v2, %v11865_v2 }
0x1bc7   :  { %v6318_v28 = vmul.f32 %v11867_v31, %v11867_v31 }
0x1bc8   :  { %v6329_v12 = vsel %vm223_vm1, %v6319_v19, 0.0 }
0x1bc9   :  { %6330 = vadd.xlane.f32.xlu1 %v6329_v12  ;;  %v6326_v15 = vsel %vm223_vm1, %v6318_v28, 0.0  ;;  %v7132_v12 = vld [vmem:[%s12020_s5 + $0x11] ss:$0 sm:$0xff] }
0x1bca   :  { %v6289_v23 = vpop.xlane.xlu1 %6288  ;;  %6327 = vadd.xlane.f32.xlu0 %v6326_v15 }
0x1bcb   :  { %v6305_v60 = vmul.f32 0.03125, %v6289_v23  ;;  %v6286_v41 = vpop.xlane.xlu0 %6285 }
0x1bcc   :  { %v6304_v22 = vmul.f32 0.03125, %v6286_v41 }
0x1bcd   :  { %v11875_v27 = vsub.f32 %v6269_v1, %v6305_v60  ;;  %v6422_v1 = vld [vmem:[%s12025_s9 + $0x18] sm:$0xff] }
0x1bce   :  { %v11877_v25 = vsub.f32 %v6268_v39, %v6304_v22  ;;  %v6295_v45 = vpop.xlane.xlu1 %6294  ;;  %v8988_v39 = vpack.c.bf16 %v6422_v1, %v6421_v44 }
0x1bcf   :  { %v6307_v21 = vmul.f32 0.03125, %v6295_v45  ;;  %v6292_v8 = vpop.xlane.xlu0 %6291  ;;  %v6321_v40 = vmul.f32 %v11875_v27, %v11875_v27 }
0x1bd0   :  { %v6306_v48 = vmul.f32 0.03125, %v6292_v8  ;;  %v6320_v63 = vmul.f32 %v11877_v25, %v11877_v25  ;;  %8989 = vmatprep.subr.bf16.mxu0 %v8988_v39 }
0x1bd1   :  { %v11883_v56 = vsub.f32 %v6271_v32, %v6307_v21  ;;  %v6335_v17 = vsel %vm223_vm1, %v6321_v40, 0.0  ;;  %8991 = vmatpush3.bf16.msra.mxu0 %v8988_v39 }
0x1bd2   :  { %v11886_v52 = vsub.f32 %v6270_v9, %v6306_v48  ;;  %6336 = vadd.xlane.f32.xlu1 %v6335_v17  ;;  %v6301_v3 = vpop.xlane.xlu1 %6300  ;;  %v6332_v5 = vsel %vm223_vm1, %v6320_v63, 0.0  ;;  %8993 = vmatprep.subr.bf16.mxu0 %v8992_v29  ;;  %v6568_v17 = vld [vmem:[%s12026_s10 + $0x10] sm:$0xff] }
0x1bd3   :  { %v6309_v4 = vmul.f32 0.03125, %v6301_v3  ;;  %6333 = vadd.xlane.f32.xlu0 %v6332_v5  ;;  %v6298_v38 = vpop.xlane.xlu0 %6297  ;;  %v6323_v57 = vmul.f32 %v11883_v56, %v11883_v56 }
0x1bd4   :  { %v6308_v13 = vmul.f32 0.03125, %v6298_v38  ;;  %v6322_v54 = vmul.f32 %v11886_v52, %v11886_v52 }
0x1bd5   :  { %v11893_v34 = vsub.f32 %v6273_v10, %v6309_v4  ;;  %v6341_v62 = vsel %vm223_vm1, %v6323_v57, 0.0 }
0x1bd6   :  { %v11896_v35 = vsub.f32 %v6272_v42, %v6308_v13  ;;  %6342 = vadd.xlane.f32.xlu1 %v6341_v62  ;;  %v6338_v0 = vsel %vm223_vm1, %v6322_v54, 0.0  ;;  %v6570_v54 = vld [vmem:[%s12026_s10 + $0x20] sm:$0xff]  ;;  %v6571_v62 = vld [vmem:[%s12026_s10 + $0x28] sm:$0xff] }
0x1bd7   :  { %6339 = vadd.xlane.f32.xlu0 %v6338_v0  ;;  %v6325_v24 = vmul.f32 %v11893_v34, %v11893_v34 }
0x1bd8   :  { %v6324_v51 = vmul.f32 %v11896_v35, %v11896_v35 }
0x1bd9   :  { %v6347_v58 = vsel %vm223_vm1, %v6325_v24, 0.0 }
0x1bda   :  { %6348 = vadd.xlane.f32.xlu1 %v6347_v58  ;;  %v6344_v53 = vsel %vm223_vm1, %v6324_v51, 0.0 }
0x1bdb   :  { %6345 = vadd.xlane.f32.xlu0 %v6344_v53 }
0x1c56   :  { %v6331_v20 = vpop.xlane.xlu1 %6330 }
0x1c57   :  { %v6351_v47 = vmul.f32 0.03125, %v6331_v20  ;;  %v6328_v6 = vpop.xlane.xlu0 %6327 }
0x1c58   :  { %v6350_v32 = vmul.f32 0.03125, %v6328_v6 }
0x1c59   :  { %v6359_v9 = vadd.f32 1e-05, %v6351_v47 }
0x1c5a   :  { %v6358_v11 = vadd.f32 1e-05, %v6350_v32 }
0x1c5b   :  { %9606 = vrsqrt.f32 %v6359_v9 }
0x1c5c   :  { %9608 = vrsqrt.f32 %v6358_v11 }
0x1c5f   :  { %v6337_v43 = vpop.xlane.xlu1 %6336 }
0x1c60   :  { %v6353_v26 = vmul.f32 0.03125, %v6337_v43  ;;  %v6334_v50 = vpop.xlane.xlu0 %6333 }
0x1c61   :  { %v6352_v16 = vmul.f32 0.03125, %v6334_v50 }
0x1c62   :  { %v6361_v59 = vadd.f32 1e-05, %v6353_v26 }
0x1c63   :  { %v6360_v10 = vadd.f32 1e-05, %v6352_v16  ;;  %v6343_v42 = vpop.xlane.xlu1 %6342  ;;  %v6573_v16 = vld [vmem:[%s12026_s10 + $0x38] sm:$0xff] }
0x1c64   :  { %9610 = vrsqrt.f32 %v6361_v59  ;;  %v6355_v46 = vmul.f32 0.03125, %v6343_v42  ;;  %v6340_v37 = vpop.xlane.xlu0 %6339 }
0x1c65   :  { %v9607_v18 = vpop.eup %9606  ;;  %9612 = vrsqrt.f32 %v6360_v10  ;;  %v6354_v33 = vmul.f32 0.03125, %v6340_v37  ;;  %v7133_v10 = vld [vmem:[%s12027_s11] ss:$0 sm:$0xff] }
0x1c66   :  { %v9609_v14 = vpop.eup %9608  ;;  %v6375_v19 = vmul.f32 %v9607_v18, %v11865_v2  ;;  %v6363_v28 = vadd.f32 1e-05, %v6355_v46  ;;  %6574 = vrot.lane.b32.xlu0 %v7133_v10, %s9649_s25 }
0x1c67   :  { %v6362_v15 = vadd.f32 1e-05, %v6354_v33  ;;  %v6349_v23 = vpop.xlane.xlu1 %6348  ;;  %v6374_v60 = vmul.f32 %v9609_v14, %v11867_v31  ;;  %v6569_v31 = vld [vmem:[%s12026_s10 + $0x18] sm:$0xff] }
0x1c68   :  { %v6389_v41 = vmul.f32 %v11926_v7, %v6375_v19  ;;  %9614 = vrsqrt.f32 %v6363_v28  ;;  %v6357_v22 = vmul.f32 0.03125, %v6349_v23  ;;  %v6346_v45 = vpop.xlane.xlu0 %6345  ;;  %v8996_v38 = vpack.c.bf16 %v6569_v31, %v6568_v17 }
0x1c69   :  { %9616 = vrsqrt.f32 %v6362_v15  ;;  %v6356_v21 = vmul.f32 0.03125, %v6346_v45  ;;  %v6388_v8 = vmul.f32 %v11926_v7, %v6374_v60 }
0x1c6a   :  { %v6403_v40 = vadd.f32 %v7132_v12, %v6389_v41  ;;  %v6365_v2 = vadd.f32 1e-05, %v6357_v22 }
0x1c6b   :  { %v6364_v48 = vadd.f32 1e-05, %v6356_v21  ;;  %v6402_v63 = vadd.f32 %v7132_v12, %v6388_v8 }
0x1c6c   :  { %9618 = vrsqrt.f32 %v6365_v2  ;;  %v6412_v4 = vmax.f32 %v6403_v40, 0.0 }
0x1c6d   :  { %9620 = vrsqrt.f32 %v6364_v48  ;;  %v6411_v3 = vmax.f32 %v6402_v63, 0.0 }
0x1c6e   :  { %v9611_v5 = vpop.eup %9610 }
0x1c6f   :  { %v9613_v57 = vpop.eup %9612  ;;  %8492 = vmatprep.mubr.msk.f32.mxu0 %vm223_vm1, %v6411_v3  ;;  %v6377_v13 = vmul.f32 %v9611_v5, %v11875_v27  ;;  %v9000_v27 = vpack.c.bf16 %v6571_v62, %v6570_v54 }
0x1c70   :  { %8493 = vmatmul.mubr.msk.f32.vlgmr.msra.gmra.mrb[108].mxu0 %vm223_vm1, %v6412_v4  ;;  %v6376_v0 = vmul.f32 %v9613_v57, %v11877_v25 }
0x1c71   :  { %v6391_v24 = vmul.f32 %v11926_v7, %v6377_v13  ;;  %8995 = vmatpush3.bf16.msra.mxu0 %v8992_v29 }
0x1c72   :  { %v9615_v51 = vpop.eup %9614  ;;  %v6390_v58 = vmul.f32 %v11926_v7, %v6376_v0  ;;  %8997 = vmatprep.subr.bf16.mxu0 %v8996_v38 }
0x1c73   :  { %v9617_v53 = vpop.eup %9616  ;;  %v6405_v30 = vadd.f32 %v7132_v12, %v6391_v24  ;;  %v6379_v49 = vmul.f32 %v9615_v51, %v11883_v56 }
0x1c74   :  { %v6404_v61 = vadd.f32 %v7132_v12, %v6390_v58  ;;  %v6378_v44 = vmul.f32 %v9617_v53, %v11886_v52 }
0x1c75   :  { %v6393_v1 = vmul.f32 %v11926_v7, %v6379_v49  ;;  %8999 = vmatpush3.bf16.msra.mxu0 %v8996_v38  ;;  %v6414_v20 = vmax.f32 %v6405_v30, 0.0 }
0x1c76   :  { %v9619_v39 = vpop.eup %9618  ;;  %v6413_v25 = vmax.f32 %v6404_v61, 0.0  ;;  %v6392_v36 = vmul.f32 %v11926_v7, %v6378_v44  ;;  %9001 = vmatprep.subr.bf16.mxu0 %v9000_v27 }
0x1c77   :  { %v9621_v55 = vpop.eup %9620  ;;  %v6381_v29 = vmul.f32 %v9619_v39, %v11893_v34  ;;  %v6407_v47 = vadd.f32 %v7132_v12, %v6393_v1 }
0x1c78   :  { %8495 = vmatprep.mubr.msk.f32.mxu0 %vm223_vm1, %v6413_v25  ;;  %v6406_v6 = vadd.f32 %v7132_v12, %v6392_v36  ;;  %v6380_v56 = vmul.f32 %v9621_v55, %v11896_v35  ;;  %v6572_v35 = vld [vmem:[%s12026_s10 + $0x30] sm:$0xff] }
0x1c79   :  { %8496 = vmatmul.mubr.msk.f32.gmra.mrb[110].mxu0 %vm223_vm1, %v6414_v20  ;;  %v6395_v52 = vmul.f32 %v11926_v7, %v6381_v29  ;;  %v6416_v11 = vmax.f32 %v6407_v47, 0.0  ;;  %v9004_v59 = vpack.c.bf16 %v6573_v16, %v6572_v35 }
0x1c7a   :  { %v6415_v32 = vmax.f32 %v6406_v6, 0.0  ;;  %v6394_v9 = vmul.f32 %v11926_v7, %v6380_v56  ;;  %9003 = vmatpush3.bf16.msra.mxu0 %v9000_v27 }
0x1c7b   :  { %v6409_v43 = vadd.f32 %v7132_v12, %v6395_v52  ;;  %9005 = vmatprep.subr.bf16.mxu0 %v9004_v59 }
0x1c7c   :  { %8498 = vmatprep.mubr.msk.f32.mxu0 %vm223_vm1, %v6415_v32  ;;  %v6408_v34 = vadd.f32 %v7132_v12, %v6394_v9 }
0x1c7d   :  { %8499 = vmatmul.mubr.msk.f32.gmra.mrb[112].mxu0 %vm223_vm1, %v6416_v11  ;;  %v6418_v50 = vmax.f32 %v6409_v43, 0.0 }
0x1c7e   :  { %v6417_v26 = vmax.f32 %v6408_v34, 0.0  ;;  %9007 = vmatpush3.bf16.msra.mxu0 %v9004_v59 }
0x1c80   :  { %8501 = vmatprep.mubr.msk.f32.mxu0 %vm223_vm1, %v6417_v26 }
0x1c81   :  { %8502 = vmatmul.mubr.msk.f32.gmra.mrb[114].mxu0 %vm223_vm1, %v6418_v50 }
0x1cd8   :  { %v6575_v3 = vpop.permute.xlu0 %6574 }
0x1d43   :  { %v8494_v42 = vpop.f32.mrb[108].mxu0 }
0x1d44   :  { %v6525_v46 = vadd.f32 %v8494_v42, %v7133_v10  ;;  %v6519_v37 = vpop.f32.mrb[109].mxu0 }
0x1d45   :  { %v6520_v18 = vadd.f32 %v7133_v10, %v6519_v37 }
0x1d46   :  { %v6559_v33 = vmax.f32 %v6525_v46, 0.0 }
0x1d47   :  { %v6558_v7 = vmax.f32 %v6520_v18, 0.0 }
0x1d49   :  { %8520 = vmatprep.mubr.msk.f32.mxu0 %vm733_vm4, %v6558_v7 }
0x1d4a   :  { %8521 = vmatmul.mubr.msk.f32.vlgmr.msra.gmra.mrb[116].mxu0 %vm733_vm4, %v6559_v33 }
0x1d4c   :  { %v8497_v14 = vpop.f32.mrb[110].mxu0 }
0x1d4d   :  { %v6535_v19 = vadd.f32 %v8497_v14, %v7133_v10  ;;  %v6529_v28 = vpop.f32.mrb[111].mxu0 }
0x1d4e   :  { %v6530_v12 = vadd.f32 %v7133_v10, %v6529_v28 }
0x1d4f   :  { %v6561_v60 = vmax.f32 %v6535_v19, 0.0 }
0x1d50   :  { %v6560_v15 = vmax.f32 %v6530_v12, 0.0  ;;  %v8500_v23 = vpop.f32.mrb[112].mxu0 }
0x1d51   :  { %v6545_v41 = vadd.f32 %v8500_v23, %v7133_v10  ;;  %v6539_v22 = vpop.f32.mrb[113].mxu0 }
0x1d52   :  { %v6540_v45 = vadd.f32 %v7133_v10, %v6539_v22  ;;  %8523 = vmatprep.mubr.msk.f32.mxu0 %vm733_vm4, %v6560_v15 }
0x1d53   :  { %8524 = vmatmul.mubr.msk.f32.gmra.mrb[118].mxu0 %vm733_vm4, %v6561_v60  ;;  %v6563_v40 = vmax.f32 %v6545_v41, 0.0 }
0x1d54   :  { %v6562_v21 = vmax.f32 %v6540_v45, 0.0  ;;  %v8503_v8 = vpop.f32.mrb[114].mxu0 }
0x1d55   :  { %v6555_v2 = vadd.f32 %v8503_v8, %v7133_v10  ;;  %v6549_v48 = vpop.f32.mrb[115].mxu0 }
0x1d56   :  { %v6550_v63 = vadd.f32 %v7133_v10, %v6549_v48  ;;  %8526 = vmatprep.mubr.msk.f32.mxu0 %vm733_vm4, %v6562_v21 }
0x1d57   :  { %8527 = vmatmul.mubr.msk.f32.gmra.mrb[120].mxu0 %vm733_vm4, %v6563_v40  ;;  %v6565_v31 = vmax.f32 %v6555_v2, 0.0 }
0x1d58   :  { %v6564_v17 = vmax.f32 %v6550_v63, 0.0 }
0x1d5a   :  { %8529 = vmatprep.mubr.msk.f32.mxu0 %vm733_vm4, %v6564_v17 }
0x1d5b   :  { %8530 = vmatmul.mubr.msk.f32.gmra.mrb[122].mxu0 %vm733_vm4, %v6565_v31 }
0x1e1d   :  { %v8522_v5 = vpop.f32.mrb[116].mxu0 }
0x1e1e   :  { %v6673_v4 = vadd.f32 %v8522_v5, %v6575_v3  ;;  %v6667_v38 = vpop.f32.mrb[117].mxu0 }
0x1e1f   :  { %v6668_v57 = vadd.f32 %v6667_v38, %v6575_v3 }
0x1e20   :  { %6708 = vst.msk [vmem:[%s12028_s12 + $0x8] sm:$0xff] %vm6706_vm5, %v6673_v4 }
0x1e21   :  { %6707 = vst.msk [vmem:[%s12028_s12] sm:$0xff] %vm6706_vm5, %v6668_v57 }
0x1e26   :  { %v8525_v13 = vpop.f32.mrb[118].mxu0 }
0x1e27   :  { %v6683_v54 = vadd.f32 %v8525_v13, %v6575_v3  ;;  %v6677_v62 = vpop.f32.mrb[119].mxu0 }
0x1e28   :  { %v6678_v0 = vadd.f32 %v6677_v62, %v6575_v3 }
0x1e29   :  { %6710 = vst.msk [vmem:[%s12028_s12 + $0x18] sm:$0xff] %vm6706_vm5, %v6683_v54 }
0x1e2a   :  { %6709 = vst.msk [vmem:[%s12028_s12 + $0x10] sm:$0xff] %vm6706_vm5, %v6678_v0  ;;  %v8528_v24 = vpop.f32.mrb[120].mxu0 }
0x1e2b   :  { %v6693_v51 = vadd.f32 %v8528_v24, %v6575_v3  ;;  %v6687_v58 = vpop.f32.mrb[121].mxu0 }
0x1e2c   :  { %v6688_v27 = vadd.f32 %v6687_v58, %v6575_v3 }
0x1e2d   :  { %6712 = vst.msk [vmem:[%s12028_s12 + $0x28] sm:$0xff] %vm6706_vm5, %v6693_v51 }
0x1e2e   :  { %6711 = vst.msk [vmem:[%s12028_s12 + $0x20] sm:$0xff] %vm6706_vm5, %v6688_v27  ;;  %v8531_v53 = vpop.f32.mrb[122].mxu0 }
0x1e2f   :  { %v6703_v30 = vadd.f32 %v8531_v53, %v6575_v3  ;;  %v6697_v49 = vpop.f32.mrb[123].mxu0 }
0x1e30   :  { %v6698_v61 = vadd.f32 %v6697_v49, %v6575_v3 }
0x1e31   :  { %6714 = vst.msk [vmem:[%s12028_s12 + $0x38] sm:$0xff] %vm6706_vm5, %v6703_v30 }
0x1e32   :  { %6713 = vst.msk [vmem:[%s12028_s12 + $0x30] sm:$0xff] %vm6706_vm5, %v6698_v61 }

</bundles_post_ra>
